<compile_context>
chip_gen: v5e
topology: v5e:2x2
jax: 0.10.0
libtpu: 0.0.40
codegen_flags: <defaults>
</compile_context>

<pallas_src>
import jax
import jax.numpy as jnp
from jax.experimental import pallas as pl
from jax.experimental.pallas import tpu as pltpu

EPS = 1e-5  # PyTorch InstanceNorm2d default eps


# ---------------------------------------------------------------- the kernel
def residual_block_kernel(x_ref, w1_ref, w2_ref, o_ref):
    Nb, H, W, C = x_ref.shape
    M = Nb * H * W
    HW = H * W

    x = x_ref[...].astype(jnp.float32)                       # (Nb, H, W, C)

    def reflect_pad(h):
        # ReflectionPad2d(1) on H and W (batched over Nb; no cross-image mixing)
        h = jnp.concatenate([h[:, 1:2], h, h[:, H - 2:H - 1]], axis=1)
        h = jnp.concatenate([h[:, :, 1:2], h, h[:, :, W - 2:W - 1]], axis=2)
        return h                                             # (Nb, H+2, W+2, C)

    def conv3x3(h, w_ref):
        # im2col in bf16: cast the padded activations ONCE, slice the 9 shifted
        # taps and concatenate along the lane axis, then do a single
        # (M, 9C) x (9C, C) MXU matmul with f32 accumulation.
        # NOTE: bias is intentionally omitted (cancelled by InstanceNorm below).
        hp = reflect_pad(h).astype(jnp.bfloat16)             # (Nb, H+2, W+2, C)
        taps = [hp[:, ky:ky + H, kx:kx + W, :]
                for ky in range(3) for kx in range(3)]       # 9 x (Nb,H,W,C)
        patches = jnp.concatenate(taps, axis=-1).reshape(M, 9 * C)   # bf16
        return jnp.dot(patches, w_ref[...],
                       preferred_element_type=jnp.float32)   # (M, C) f32

    def instance_norm(y):
        # one-pass stats per image / per channel over the spatial axis
        yb = y.reshape(Nb, HW, C)
        inv_n = 1.0 / HW
        mean = jnp.sum(yb, axis=1, keepdims=True) * inv_n
        ex2 = jnp.sum(yb * yb, axis=1, keepdims=True) * inv_n
        var = jnp.maximum(ex2 - mean * mean, 0.0)
        return ((yb - mean) * jax.lax.rsqrt(var + EPS)).reshape(M, C)

    # conv1 -> instance norm -> relu
    y = jnp.maximum(instance_norm(conv3x3(x, w1_ref)), 0.0)

    # reflection pad -> conv2 -> instance norm
    z = instance_norm(conv3x3(y.reshape(Nb, H, W, C), w2_ref))

    # residual add (f32), write back in output dtype
    out = x.reshape(M, C) + z
    o_ref[...] = out.reshape(Nb, H, W, C).astype(o_ref.dtype)


# ---------------------------------------------------------------- helpers
def _num_tensorcores():
    """2 TensorCores per chip on v7x, 1 on v5e/v6e."""
    try:
        kind = jax.devices()[0].device_kind.lower()
    except Exception:
        return 1
    return 2 if "v7" in kind else 1


def _pick_images_per_step(N, H, W, num_tc):
    """Largest divisor of N with M = d*H*W >= 256 AND grid >= num_tc; fallbacks."""
    divisors = [d for d in range(1, N + 1) if N % d == 0]
    good = [d for d in divisors if d * H * W >= 256 and N // d >= num_tc]
    if good:
        return max(good)
    ok = [d for d in divisors if N // d >= num_tc]
    return max(ok) if ok else max(divisors)


def prepare_conv_weights(w):
    """PyTorch (C_out, C_in, 3, 3) -> im2col (9*C_in, C_out) bf16. Call ONCE."""
    c_out, c_in, kh, kw = w.shape
    return (jnp.transpose(w, (2, 3, 1, 0))
            .reshape(kh * kw * c_in, c_out)
            .astype(jnp.bfloat16))


# ---------------------------------------------------------------- wrapper
def residual_block_forward(x_nchw, w1_im2col, w2_im2col):
    """x_nchw: (N, C, H, W) f32; w*_im2col: (9C, C) bf16 from prepare_conv_weights.

    Biases of the original module are NOT needed: InstanceNorm2d(affine=False)
    subtracts the per-channel mean immediately after each conv, cancelling any
    per-channel bias exactly.
    """
    N, C, H, W = x_nchw.shape
    num_tc = _num_tensorcores()
    Nb = _pick_images_per_step(N, H, W, num_tc)

    x = jnp.transpose(x_nchw, (0, 2, 3, 1))                  # NHWC, lane-dense C

    itemsize = jnp.dtype(x.dtype).itemsize
    cost = pl.CostEstimate(
        flops=2 * (2 * N * H * W * (9 * C) * C),             # two convs
        transcendentals=2 * N * C,                           # rsqrt per norm
        bytes_accessed=(2 * N * H * W * C * itemsize         # input + output
                        + 2 * (9 * C * C) * 2),              # bf16 weights
    )

    # v7x has 64 MiB physical VMEM per TC -> cap at 48 MiB; v5e/v6e have 128 MiB.
    vmem_limit = (48 if num_tc == 2 else 96) * 1024 * 1024

    out_nhwc = pl.pallas_call(
        residual_block_kernel,
        out_shape=jax.ShapeDtypeStruct((N, H, W, C), x.dtype),
        grid_spec=pltpu.PrefetchScalarGridSpec(
            num_scalar_prefetch=0,
            grid=(N // Nb,),
            in_specs=[
                pl.BlockSpec((Nb, H, W, C), lambda n: (n, 0, 0, 0)),
                pl.BlockSpec((9 * C, C), lambda n: (0, 0)),
                pl.BlockSpec((9 * C, C), lambda n: (0, 0)),
            ],
            out_specs=pl.BlockSpec((Nb, H, W, C), lambda n: (n, 0, 0, 0)),
        ),
        compiler_params=pltpu.CompilerParams(
            dimension_semantics=("parallel",),               # batch steps independent
            vmem_limit_bytes=vmem_limit),
        cost_estimate=cost,
    )(x, w1_im2col, w2_im2col)

    return jnp.transpose(out_nhwc, (0, 3, 1, 2))             # back to NCHW


# ---------------------------------------------------------------- pure-JAX reference
def ref_forward(x_nchw, w1, b1, w2, b2):
    x = jnp.transpose(x_nchw, (0, 2, 3, 1))

    def conv(h, w, b):
        hp = jnp.pad(h, ((0, 0), (1, 1), (1, 1), (0, 0)), mode="reflect")
        y = jax.lax.conv_general_dilated(
            hp, jnp.transpose(w, (2, 3, 1, 0)),
            window_strides=(1, 1), padding="VALID",
            dimension_numbers=("NHWC", "HWIO", "NHWC"))
        return y + b

    def inorm(y):
        m = jnp.mean(y, axis=(1, 2), keepdims=True)
        v = jnp.mean((y - m) ** 2, axis=(1, 2), keepdims=True)
        return (y - m) / jnp.sqrt(v + EPS)

    h = jnp.maximum(inorm(conv(x, w1, b1)), 0.0)
    z = inorm(conv(h, w2, b2))
    return jnp.transpose(x + z, (0, 3, 1, 2))


# ---------------------------------------------------------------- main
if __name__ == "__main__":
    hidden_dimension = 32
    C = 4 * hidden_dimension          # 128
    N, H, W = 4, 8, 8

    key = jax.random.PRNGKey(0)
    kx, kw1, kb1, kw2, kb2 = jax.random.split(key, 5)

    x = jax.random.normal(kx, (N, C, H, W), jnp.float32)
    w1 = jax.random.normal(kw1, (C, C, 3, 3), jnp.float32) * 0.05
    b1 = jax.random.normal(kb1, (C,), jnp.float32) * 0.05
    w2 = jax.random.normal(kw2, (C, C, 3, 3), jnp.float32) * 0.05
    b2 = jax.random.normal(kb2, (C,), jnp.float32) * 0.05

    # weight prep hoisted out of the per-call path (done once)
    w1k = prepare_conv_weights(w1)
    w2k = prepare_conv_weights(w2)

    out = jax.jit(residual_block_forward)(x, w1k, w2k)
    jax.block_until_ready(out)

    # reference includes the biases; the kernel drops them because
    # InstanceNorm(affine=False) cancels them exactly (up to rounding).
    ref = ref_forward(x, w1, b1, w2, b2)
    assert out.shape == x.shape
    # tolerance widened vs. a pure-f32 path: matmul inputs are bf16 on the MXU
    assert jnp.allclose(out, ref, atol=5e-2, rtol=5e-2)

    print("KERNEL_OK")
</pallas_src>

<mosaic_0001>
module attributes {stable_mosaic.version = 11 : i64} {
  func.func @residual_block_kernel(%arg0: i32, %arg1: memref<4x8x8x128xf32, #tpu.memory_space<vmem>>, %arg2: memref<1152x128xbf16, #tpu.memory_space<vmem>>, %arg3: memref<1152x128xbf16, #tpu.memory_space<vmem>>, %arg4: memref<4x8x8x128xf32, #tpu.memory_space<vmem>>) attributes {dimension_semantics = [#tpu.dimension_semantics<parallel>], iteration_bounds = array<i64: 1>, scalar_prefetch = 0 : i64, scratch_operands = 0 : i64, tpu.core_type = #tpu.core_type<tc>, window_params = [{transform_indices = @transform_0, window_bounds = array<i64: 4, 8, 8, 128>}, {pipeline_mode = #tpu.pipeline_mode<synchronous>, transform_indices = @transform_1, window_bounds = array<i64: 1152, 128>}, {pipeline_mode = #tpu.pipeline_mode<synchronous>, transform_indices = @transform_2, window_bounds = array<i64: 1152, 128>}, {transform_indices = @transform_3, window_bounds = array<i64: 4, 8, 8, 128>}]} {
    %c0 = arith.constant 0 : index
    %c0_0 = arith.constant 0 : index
    %c0_1 = arith.constant 0 : index
    %c0_2 = arith.constant 0 : index
    %0 = vector.load %arg1[%c0, %c0_0, %c0_1, %c0_2] : memref<4x8x8x128xf32, #tpu.memory_space<vmem>>, vector<4x8x8x128xf32>
    %1 = vector.extract_strided_slice %0 {offsets = [0, 1, 0, 0], sizes = [4, 1, 8, 128], strides = [1, 1, 1, 1]} : vector<4x8x8x128xf32> to vector<4x1x8x128xf32>
    %2 = vector.extract_strided_slice %0 {offsets = [0, 6, 0, 0], sizes = [4, 1, 8, 128], strides = [1, 1, 1, 1]} : vector<4x8x8x128xf32> to vector<4x1x8x128xf32>
    %3 = tpu.concatenate %1, %0, %2 in 1 : vector<4x1x8x128xf32>, vector<4x8x8x128xf32>, vector<4x1x8x128xf32> -> vector<4x10x8x128xf32>
    %4 = vector.extract_strided_slice %3 {offsets = [0, 0, 1, 0], sizes = [4, 10, 1, 128], strides = [1, 1, 1, 1]} : vector<4x10x8x128xf32> to vector<4x10x1x128xf32>
    %5 = vector.extract_strided_slice %3 {offsets = [0, 0, 6, 0], sizes = [4, 10, 1, 128], strides = [1, 1, 1, 1]} : vector<4x10x8x128xf32> to vector<4x10x1x128xf32>
    %6 = tpu.concatenate %4, %3, %5 in 2 : vector<4x10x1x128xf32>, vector<4x10x8x128xf32>, vector<4x10x1x128xf32> -> vector<4x10x10x128xf32>
    %7 = arith.truncf %6 : vector<4x10x10x128xf32> to vector<4x10x10x128xbf16>
    %8 = vector.extract_strided_slice %7 {offsets = [0, 0, 0, 0], sizes = [4, 8, 8, 128], strides = [1, 1, 1, 1]} : vector<4x10x10x128xbf16> to vector<4x8x8x128xbf16>
    %9 = vector.extract_strided_slice %7 {offsets = [0, 0, 1, 0], sizes = [4, 8, 8, 128], strides = [1, 1, 1, 1]} : vector<4x10x10x128xbf16> to vector<4x8x8x128xbf16>
    %10 = vector.extract_strided_slice %7 {offsets = [0, 0, 2, 0], sizes = [4, 8, 8, 128], strides = [1, 1, 1, 1]} : vector<4x10x10x128xbf16> to vector<4x8x8x128xbf16>
    %11 = vector.extract_strided_slice %7 {offsets = [0, 1, 0, 0], sizes = [4, 8, 8, 128], strides = [1, 1, 1, 1]} : vector<4x10x10x128xbf16> to vector<4x8x8x128xbf16>
    %12 = vector.extract_strided_slice %7 {offsets = [0, 1, 1, 0], sizes = [4, 8, 8, 128], strides = [1, 1, 1, 1]} : vector<4x10x10x128xbf16> to vector<4x8x8x128xbf16>
    %13 = vector.extract_strided_slice %7 {offsets = [0, 1, 2, 0], sizes = [4, 8, 8, 128], strides = [1, 1, 1, 1]} : vector<4x10x10x128xbf16> to vector<4x8x8x128xbf16>
    %14 = vector.extract_strided_slice %7 {offsets = [0, 2, 0, 0], sizes = [4, 8, 8, 128], strides = [1, 1, 1, 1]} : vector<4x10x10x128xbf16> to vector<4x8x8x128xbf16>
    %15 = vector.extract_strided_slice %7 {offsets = [0, 2, 1, 0], sizes = [4, 8, 8, 128], strides = [1, 1, 1, 1]} : vector<4x10x10x128xbf16> to vector<4x8x8x128xbf16>
    %16 = vector.extract_strided_slice %7 {offsets = [0, 2, 2, 0], sizes = [4, 8, 8, 128], strides = [1, 1, 1, 1]} : vector<4x10x10x128xbf16> to vector<4x8x8x128xbf16>
    %17 = tpu.concatenate %8, %9, %10, %11, %12, %13, %14, %15, %16 in 3 : vector<4x8x8x128xbf16>, vector<4x8x8x128xbf16>, vector<4x8x8x128xbf16>, vector<4x8x8x128xbf16>, vector<4x8x8x128xbf16>, vector<4x8x8x128xbf16>, vector<4x8x8x128xbf16>, vector<4x8x8x128xbf16>, vector<4x8x8x128xbf16> -> vector<4x8x8x1152xbf16>
    %18 = vector.shape_cast %17 : vector<4x8x8x1152xbf16> to vector<256x1152xbf16>
    %c0_3 = arith.constant 0 : index
    %c0_4 = arith.constant 0 : index
    %19 = vector.load %arg2[%c0_3, %c0_4] : memref<1152x128xbf16, #tpu.memory_space<vmem>>, vector<1152x128xbf16>
    %cst = arith.constant dense<0.000000e+00> : vector<256x128xf32>
    %20 = tpu.matmul %18, %19, %cst {dimension_numbers = #tpu.dot_dimension_numbers<[1], [0], [0], [1], [0, 0, 1, 1], [], []>} : vector<256x1152xbf16>, vector<1152x128xbf16>, vector<256x128xf32> -> vector<256x128xf32>
    %21 = vector.shape_cast %20 : vector<256x128xf32> to vector<4x64x128xf32>
    %cst_5 = arith.constant dense<0.000000e+00> : vector<4x128xf32>
    %22 = vector.multi_reduction <add>, %21, %cst_5 [1] : vector<4x64x128xf32> to vector<4x128xf32>
    %23 = vector.shape_cast %22 : vector<4x128xf32> to vector<4x1x128xf32>
    %cst_6 = arith.constant 1.562500e-02 : f32
    %24 = vector.broadcast %cst_6 : f32 to vector<4x1x128xf32>
    %25 = arith.mulf %23, %24 : vector<4x1x128xf32>
    %26 = arith.mulf %21, %21 : vector<4x64x128xf32>
    %cst_7 = arith.constant dense<0.000000e+00> : vector<4x128xf32>
    %27 = vector.multi_reduction <add>, %26, %cst_7 [1] : vector<4x64x128xf32> to vector<4x128xf32>
    %28 = vector.shape_cast %27 : vector<4x128xf32> to vector<4x1x128xf32>
    %cst_8 = arith.constant 1.562500e-02 : f32
    %29 = vector.broadcast %cst_8 : f32 to vector<4x1x128xf32>
    %30 = arith.mulf %28, %29 : vector<4x1x128xf32>
    %31 = arith.mulf %25, %25 : vector<4x1x128xf32>
    %32 = arith.subf %30, %31 : vector<4x1x128xf32>
    %cst_9 = arith.constant 0.000000e+00 : f32
    %33 = vector.broadcast %cst_9 : f32 to vector<4x1x128xf32>
    %34 = arith.maximumf %32, %33 : vector<4x1x128xf32>
    %35 = vector.broadcast %25 : vector<4x1x128xf32> to vector<4x64x128xf32>
    %36 = arith.subf %21, %35 : vector<4x64x128xf32>
    %cst_10 = arith.constant 9.99999974E-6 : f32
    %37 = vector.broadcast %cst_10 : f32 to vector<4x1x128xf32>
    %38 = arith.addf %34, %37 : vector<4x1x128xf32>
    %39 = math.rsqrt %38 : vector<4x1x128xf32>
    %40 = vector.broadcast %39 : vector<4x1x128xf32> to vector<4x64x128xf32>
    %41 = arith.mulf %36, %40 : vector<4x64x128xf32>
    %42 = vector.shape_cast %41 : vector<4x64x128xf32> to vector<256x128xf32>
    %cst_11 = arith.constant 0.000000e+00 : f32
    %43 = vector.broadcast %cst_11 : f32 to vector<256x128xf32>
    %44 = arith.maximumf %42, %43 : vector<256x128xf32>
    %45 = vector.shape_cast %44 : vector<256x128xf32> to vector<4x8x8x128xf32>
    %46 = vector.extract_strided_slice %45 {offsets = [0, 1, 0, 0], sizes = [4, 1, 8, 128], strides = [1, 1, 1, 1]} : vector<4x8x8x128xf32> to vector<4x1x8x128xf32>
    %47 = vector.extract_strided_slice %45 {offsets = [0, 6, 0, 0], sizes = [4, 1, 8, 128], strides = [1, 1, 1, 1]} : vector<4x8x8x128xf32> to vector<4x1x8x128xf32>
    %48 = tpu.concatenate %46, %45, %47 in 1 : vector<4x1x8x128xf32>, vector<4x8x8x128xf32>, vector<4x1x8x128xf32> -> vector<4x10x8x128xf32>
    %49 = vector.extract_strided_slice %48 {offsets = [0, 0, 1, 0], sizes = [4, 10, 1, 128], strides = [1, 1, 1, 1]} : vector<4x10x8x128xf32> to vector<4x10x1x128xf32>
    %50 = vector.extract_strided_slice %48 {offsets = [0, 0, 6, 0], sizes = [4, 10, 1, 128], strides = [1, 1, 1, 1]} : vector<4x10x8x128xf32> to vector<4x10x1x128xf32>
    %51 = tpu.concatenate %49, %48, %50 in 2 : vector<4x10x1x128xf32>, vector<4x10x8x128xf32>, vector<4x10x1x128xf32> -> vector<4x10x10x128xf32>
    %52 = arith.truncf %51 : vector<4x10x10x128xf32> to vector<4x10x10x128xbf16>
    %53 = vector.extract_strided_slice %52 {offsets = [0, 0, 0, 0], sizes = [4, 8, 8, 128], strides = [1, 1, 1, 1]} : vector<4x10x10x128xbf16> to vector<4x8x8x128xbf16>
    %54 = vector.extract_strided_slice %52 {offsets = [0, 0, 1, 0], sizes = [4, 8, 8, 128], strides = [1, 1, 1, 1]} : vector<4x10x10x128xbf16> to vector<4x8x8x128xbf16>
    %55 = vector.extract_strided_slice %52 {offsets = [0, 0, 2, 0], sizes = [4, 8, 8, 128], strides = [1, 1, 1, 1]} : vector<4x10x10x128xbf16> to vector<4x8x8x128xbf16>
    %56 = vector.extract_strided_slice %52 {offsets = [0, 1, 0, 0], sizes = [4, 8, 8, 128], strides = [1, 1, 1, 1]} : vector<4x10x10x128xbf16> to vector<4x8x8x128xbf16>
    %57 = vector.extract_strided_slice %52 {offsets = [0, 1, 1, 0], sizes = [4, 8, 8, 128], strides = [1, 1, 1, 1]} : vector<4x10x10x128xbf16> to vector<4x8x8x128xbf16>
    %58 = vector.extract_strided_slice %52 {offsets = [0, 1, 2, 0], sizes = [4, 8, 8, 128], strides = [1, 1, 1, 1]} : vector<4x10x10x128xbf16> to vector<4x8x8x128xbf16>
    %59 = vector.extract_strided_slice %52 {offsets = [0, 2, 0, 0], sizes = [4, 8, 8, 128], strides = [1, 1, 1, 1]} : vector<4x10x10x128xbf16> to vector<4x8x8x128xbf16>
    %60 = vector.extract_strided_slice %52 {offsets = [0, 2, 1, 0], sizes = [4, 8, 8, 128], strides = [1, 1, 1, 1]} : vector<4x10x10x128xbf16> to vector<4x8x8x128xbf16>
    %61 = vector.extract_strided_slice %52 {offsets = [0, 2, 2, 0], sizes = [4, 8, 8, 128], strides = [1, 1, 1, 1]} : vector<4x10x10x128xbf16> to vector<4x8x8x128xbf16>
    %62 = tpu.concatenate %53, %54, %55, %56, %57, %58, %59, %60, %61 in 3 : vector<4x8x8x128xbf16>, vector<4x8x8x128xbf16>, vector<4x8x8x128xbf16>, vector<4x8x8x128xbf16>, vector<4x8x8x128xbf16>, vector<4x8x8x128xbf16>, vector<4x8x8x128xbf16>, vector<4x8x8x128xbf16>, vector<4x8x8x128xbf16> -> vector<4x8x8x1152xbf16>
    %63 = vector.shape_cast %62 : vector<4x8x8x1152xbf16> to vector<256x1152xbf16>
    %c0_12 = arith.constant 0 : index
    %c0_13 = arith.constant 0 : index
    %64 = vector.load %arg3[%c0_12, %c0_13] : memref<1152x128xbf16, #tpu.memory_space<vmem>>, vector<1152x128xbf16>
    %cst_14 = arith.constant dense<0.000000e+00> : vector<256x128xf32>
    %65 = tpu.matmul %63, %64, %cst_14 {dimension_numbers = #tpu.dot_dimension_numbers<[1], [0], [0], [1], [0, 0, 1, 1], [], []>} : vector<256x1152xbf16>, vector<1152x128xbf16>, vector<256x128xf32> -> vector<256x128xf32>
    %66 = vector.shape_cast %65 : vector<256x128xf32> to vector<4x64x128xf32>
    %cst_15 = arith.constant dense<0.000000e+00> : vector<4x128xf32>
    %67 = vector.multi_reduction <add>, %66, %cst_15 [1] : vector<4x64x128xf32> to vector<4x128xf32>
    %68 = vector.shape_cast %67 : vector<4x128xf32> to vector<4x1x128xf32>
    %cst_16 = arith.constant 1.562500e-02 : f32
    %69 = vector.broadcast %cst_16 : f32 to vector<4x1x128xf32>
    %70 = arith.mulf %68, %69 : vector<4x1x128xf32>
    %71 = arith.mulf %66, %66 : vector<4x64x128xf32>
    %cst_17 = arith.constant dense<0.000000e+00> : vector<4x128xf32>
    %72 = vector.multi_reduction <add>, %71, %cst_17 [1] : vector<4x64x128xf32> to vector<4x128xf32>
    %73 = vector.shape_cast %72 : vector<4x128xf32> to vector<4x1x128xf32>
    %cst_18 = arith.constant 1.562500e-02 : f32
    %74 = vector.broadcast %cst_18 : f32 to vector<4x1x128xf32>
    %75 = arith.mulf %73, %74 : vector<4x1x128xf32>
    %76 = arith.mulf %70, %70 : vector<4x1x128xf32>
    %77 = arith.subf %75, %76 : vector<4x1x128xf32>
    %cst_19 = arith.constant 0.000000e+00 : f32
    %78 = vector.broadcast %cst_19 : f32 to vector<4x1x128xf32>
    %79 = arith.maximumf %77, %78 : vector<4x1x128xf32>
    %80 = vector.broadcast %70 : vector<4x1x128xf32> to vector<4x64x128xf32>
    %81 = arith.subf %66, %80 : vector<4x64x128xf32>
    %cst_20 = arith.constant 9.99999974E-6 : f32
    %82 = vector.broadcast %cst_20 : f32 to vector<4x1x128xf32>
    %83 = arith.addf %79, %82 : vector<4x1x128xf32>
    %84 = math.rsqrt %83 : vector<4x1x128xf32>
    %85 = vector.broadcast %84 : vector<4x1x128xf32> to vector<4x64x128xf32>
    %86 = arith.mulf %81, %85 : vector<4x64x128xf32>
    %87 = vector.shape_cast %86 : vector<4x64x128xf32> to vector<256x128xf32>
    %88 = vector.shape_cast %0 : vector<4x8x8x128xf32> to vector<256x128xf32>
    %89 = arith.addf %88, %87 : vector<256x128xf32>
    %90 = vector.shape_cast %89 : vector<256x128xf32> to vector<4x8x8x128xf32>
    %c0_21 = arith.constant 0 : index
    %c0_22 = arith.constant 0 : index
    %c0_23 = arith.constant 0 : index
    %c0_24 = arith.constant 0 : index
    %91 = vector.load %arg4[%c0_21, %c0_22, %c0_23, %c0_24] : memref<4x8x8x128xf32, #tpu.memory_space<vmem>>, vector<4x8x8x128xf32>
    tpu.vector_store %arg4[%c0_21, %c0_22, %c0_23, %c0_24], %90 {strides = array<i32>} : memref<4x8x8x128xf32, #tpu.memory_space<vmem>>, vector<4x8x8x128xf32>,
    return
  }
  func.func @transform_0(%arg0: i32) -> (i32, i32, i32, i32) {
    %c0_i32 = arith.constant 0 : i32
    %c0_i32_0 = arith.constant 0 : i32
    %c0_i32_1 = arith.constant 0 : i32
    %c0_i32_2 = arith.constant 0 : i32
    return %arg0, %c0_i32, %c0_i32_0, %c0_i32_1 : i32, i32, i32, i32
  }
  func.func @transform_1(%arg0: i32) -> (i32, i32) {
    %c0_i32 = arith.constant 0 : i32
    %c0_i32_0 = arith.constant 0 : i32
    %c0_i32_1 = arith.constant 0 : i32
    return %c0_i32, %c0_i32_0 : i32, i32
  }
  func.func @transform_2(%arg0: i32) -> (i32, i32) {
    %c0_i32 = arith.constant 0 : i32
    %c0_i32_0 = arith.constant 0 : i32
    %c0_i32_1 = arith.constant 0 : i32
    return %c0_i32, %c0_i32_0 : i32, i32
  }
  func.func @transform_3(%arg0: i32) -> (i32, i32, i32, i32) {
    %c0_i32 = arith.constant 0 : i32
    %c0_i32_0 = arith.constant 0 : i32
    %c0_i32_1 = arith.constant 0 : i32
    %c0_i32_2 = arith.constant 0 : i32
    return %arg0, %c0_i32, %c0_i32_0, %c0_i32_1 : i32, i32, i32, i32
  }
}

</mosaic_0001>

<bundles_post_ra>
// kernel: residual_block_forward.1
= control target key start
LH: loop header
LB: loop body
LE: loop exit
PB: predicated region body
PF: predicated region fallthrough
CT: control target
= control target key end

     0   :  { %8 = vsyncpa [#allocation3], 0  ;;  %s9446_s0 = inlined_call_operand.hbm [shape: f32[4,8,8,128], index: 0, kind: input, shape index: {}]   ;;  %s9447_s1 = inlined_call_operand.hbm [shape: bf16[1152,128], index: 1, kind: input, shape index: {}]   ;;  %s9448_s2 = inlined_call_operand.hbm [shape: bf16[1152,128], index: 2, kind: input, shape index: {}]   ;;  %s9449_s3 = inlined_call_operand.hbm [shape: f32[4,8,8,128], index: 3, kind: output, shape index: {}]  }
   0x1   :  { %9 = vsyncpa [#allocation6], 0  ;;  %s28_s14 = sshll.u32 %s9447_s1, 4  ;;  %s29_s14 = int_to_ptr.hbm [resolvable:$true] %s28_s14 }
   0x2   :  { %10 = vsyncpa [#allocation4], 0  ;;  %s6483_s15 = smov [#allocation5]   ;;  %s15_s19 = sshll.u32 %s9446_s0, 4  ;;  %s16_s19 = int_to_ptr.hbm [resolvable:$true] %s15_s19 }
   0x3   :  { %s30_s16 = sshll.u32 %s6483_s15, 4  ;;  %s6484_s20 = smov 64   ;;  %s31_s16 = int_to_ptr.vmem [resolvable:$true] %s30_s16 }
   0x4   :  { %s6485_s21 = smov 4   ;;  %s6486_s22 = smov [#allocation2]  }
   0x5   :  { %36 = dma.hbm_to_vmem [thread:$0]  %s29_s14, 9216, %s31_s16, [#allocation6], %s6484_s20, %s6484_s20, %s6485_s21  }
   0x6   :  { %s17_s23 = sshll.u32 %s6486_s22, 4  ;;  %s6487_s24 = smov 128   ;;  %s18_s23 = int_to_ptr.vmem [resolvable:$true] %s17_s23 }
   0x7   :  { %s6488_s25 = smov 8   ;;  %s41_s27 = sshll.u32 %s9448_s2, 4  ;;  %s42_s27 = int_to_ptr.hbm [resolvable:$true] %s41_s27 }
   0x8   :  { %23 = dma.hbm_to_vmem [thread:$0]  %s16_s19, 4096, %s18_s23, [#allocation3], %s6487_s24, %s6487_s24, %s6488_s25  }
   0x9   :  { %s6489_s28 = smov [#allocation7]  }
   0xa   :  { %s43_s0 = sshll.u32 %s6489_s28, 4  ;;  %s44_s0 = int_to_ptr.vmem [resolvable:$true] %s43_s0 }
   0xb   :  { %49 = dma.hbm_to_vmem [thread:$0]  %s42_s27, 9216, %s44_s0, [#allocation6], %s6484_s20, %s6484_s20, %s6485_s21  }
   0xc   :  { %6477 = dma.done.wait [#allocation3], 4096  }
   0xd   :  { %6478 = vsyncadd [#allocation3], 4294963200 }
   0xe   :  { %6479 = dma.done.wait [#allocation6], 18432  }
   0xf   :  { %6480 = vsyncadd [#allocation6], 4294948864  ;;  %v6172_v0 = vld [vmem:[#allocation5 + $0x38] sm:$0xff]  ;;  %v6171_v2 = vld [vmem:[#allocation5 + $0x30] sm:$0xff]  ;;  %vm318_vm0 = vcmask 1040384   ;;  %s6490_s2 = smov [#allocation8]  }
  0x10   :  { %v6180_v1 = vld [vmem:[#allocation5 + $0x78] sm:$0xff]  ;;  %1719 = vmatpush.bf16.msra.mxu0 %v6172_v0  ;;  %6309 = vmatpush.bf16.msra.mxu2 %v6172_v0  ;;  %v6179_v3 = vld [vmem:[#allocation5 + $0x70] sm:$0xff]  ;;  %v6170_v4 = vld [vmem:[#allocation5 + $0x28] sm:$0xff]  ;;  %s5573_s29 = sshll.u32 %s6490_s2, 4  ;;  %s5575_s5 = sshll.u32 %s9449_s3, 4  ;;  %s5574_s29 = int_to_ptr.vmem [resolvable:$true] %s5573_s29  ;;  %s5576_s5 = int_to_ptr.hbm [resolvable:$true] %s5575_s5 }
  0x11   :  { %6317 = vmatpush.bf16.msra.mxu3 %v6180_v1  ;;  %1808 = vmatpush.bf16.msra.mxu1 %v6180_v1  ;;  %v62_v5 = vld [vmem:[#allocation2] sm:$0xff]  ;;  %v63_v6 = vld [vmem:[#allocation2 + $0x8] sm:$0xff]  ;;  %v6528_v31 = vld [vmem:[#allocation2 + $0x10] sm:$0xff] }
  0x12   :  { %v126_v7 = vrot.slane %v63_v6, 1  ;;  %v127_v8 = vrot.slane %v62_v5, 1  ;;  %v190_v9 = vrot.slane %v63_v6, 7  ;;  %v191_v10 = vrot.slane %v62_v5, 7  ;;  %v78_v11 = vld [vmem:[#allocation2 + $0x80] sm:$0xff]  ;;  %v79_v12 = vld [vmem:[#allocation2 + $0x88] sm:$0xff] }
  0x13   :  { %v6178_v13 = vld [vmem:[#allocation5 + $0x68] sm:$0xff]  ;;  %v142_v14 = vrot.slane %v79_v12, 1  ;;  %v143_v15 = vrot.slane %v78_v11, 1  ;;  %v206_v16 = vrot.slane %v79_v12, 7  ;;  %v207_v17 = vrot.slane %v78_v11, 7  ;;  %v6169_v26 = vld [vmem:[#allocation5 + $0x20] sm:$0xff] }
  0x14   :  { %1720 = vmatpush.bf16.msra.mxu0 %v6171_v2  ;;  %6310 = vmatpush.bf16.msra.mxu2 %v6171_v2  ;;  %v319_v18 = vsel %vm318_vm0, %v126_v7, %v190_v9  ;;  %v320_v19 = vsel %vm318_vm0, %v127_v8, %v191_v10  ;;  %v270_v20 = vrot.slane %v79_v12, 5  ;;  %v271_v21 = vrot.slane %v78_v11, 5  ;;  %v6177_v32 = vld [vmem:[#allocation5 + $0x60] sm:$0xff]  ;;  %v80_v39 = vld [vmem:[#allocation2 + $0x90] sm:$0xff]  ;;  %v6168_v44 = vld [vmem:[#allocation5 + $0x18] sm:$0xff] }
  0x15   :  { %6318 = vmatpush.bf16.msra.mxu3 %v6179_v3  ;;  %1809 = vmatpush.bf16.msra.mxu1 %v6179_v3  ;;  %v383_v22 = vpack.c.bf16 %v319_v18, %v319_v18  ;;  %v385_v23 = vpack.c.bf16 %v320_v19, %v320_v19  ;;  %v335_v24 = vsel %vm318_vm0, %v142_v14, %v206_v16  ;;  %v254_v30 = vrot.slane %v63_v6, 5  ;;  %v6176_v49 = vld [vmem:[#allocation5 + $0x58] sm:$0xff]  ;;  %v6167_v62 = vld [vmem:[#allocation5 + $0x10] sm:$0xff] }
  0x16   :  { %v336_v25 = vsel %vm318_vm0, %v143_v15, %v207_v17  ;;  %v415_v27 = vpack.c.bf16 %v335_v24, %v335_v24  ;;  %v367_v29 = vsel %vm318_vm0, %v206_v16, %v270_v20  ;;  %v368_v33 = vsel %vm318_vm0, %v207_v17, %v271_v21  ;;  %v6175_v2 = vld [vmem:[#allocation5 + $0x50] sm:$0xff]  ;;  %v6166_v15 = vld [vmem:[#allocation5 + $0x8] sm:$0xff]  ;;  %v6568_v19 = vld [vmem:[#allocation2 + $0x18] sm:$0xff] }
  0x17   :  { %v417_v28 = vpack.c.bf16 %v336_v25, %v336_v25  ;;  %v416_v34 = vpack.c.bf16 %v367_v29, %v367_v29  ;;  %v418_v37 = vpack.c.bf16 %v368_v33, %v368_v33  ;;  %v255_v38 = vrot.slane %v62_v5, 5  ;;  %v6570_v20 = vld [vmem:[#allocation2 + $0x20] sm:$0xff]  ;;  %v6174_v21 = vld [vmem:[#allocation5 + $0x48] sm:$0xff]  ;;  %v81_v29 = vld [vmem:[#allocation2 + $0x98] sm:$0xff] }
  0x18   :  { %1721 = vmatpush.bf16.msra.mxu0 %v6170_v4  ;;  %6311 = vmatpush.bf16.msra.mxu2 %v6170_v4  ;;  %v6531_v35 = vunpack.c.l.b16 %v415_v27  ;;  %v6535_v40 = vunpack.c.l.b16 %v383_v22  ;;  %v351_v42 = vsel %vm318_vm0, %v190_v9, %v254_v30  ;;  %v128_v43 = vrot.slane %v6528_v31, 1 }
  0x19   :  { %6319 = vmatpush.bf16.msra.mxu3 %v6178_v13  ;;  %1810 = vmatpush.bf16.msra.mxu1 %v6178_v13  ;;  %v6533_v36 = vunpack.c.l.b16 %v417_v28  ;;  %v532_v41 = vunpack.c.l.b16 %v416_v34  ;;  %v6539_v45 = vunpack.c.l.b16 %v385_v23  ;;  %v534_v46 = vunpack.c.l.b16 %v418_v37  ;;  %v6165_v37 = vld [vmem:[#allocation5] sm:$0xff] }
  0x1a   :  { %9640 = vst [vmem:[#allocation12_spill] sm:$0xff] %v6531_v35  ;;  %v352_v47 = vsel %vm318_vm0, %v191_v10, %v255_v38  ;;  %v384_v48 = vpack.c.bf16 %v351_v42, %v351_v42  ;;  %v192_v52 = vrot.slane %v6528_v31, 7  ;;  %v144_v53 = vrot.slane %v80_v39, 1  ;;  %v82_v42 = vld [vmem:[#allocation2 + $0xa0] sm:$0xff] }
  0x1b   :  { %9641 = vst [vmem:[#allocation13_spill] sm:$0xff] %v6533_v36  ;;  %v6543_v50 = vpack.c.b16 %v532_v41, %v6531_v35  ;;  %v386_v51 = vpack.c.bf16 %v352_v47, %v352_v47  ;;  %v6547_v54 = vpack.c.b16 %v534_v46, %v6533_v36  ;;  %v208_v56 = vrot.slane %v80_v39, 7 }
  0x1c   :  { %1722 = vmatpush.bf16.msra.mxu0 %v6169_v26  ;;  %6312 = vmatpush.bf16.msra.mxu2 %v6169_v26  ;;  %v504_v55 = vunpack.c.l.b16 %v384_v48  ;;  %v272_v57 = vrot.slane %v80_v39, 5  ;;  %v321_v61 = vsel %vm318_vm0, %v128_v43, %v192_v52  ;;  %v256_v24 = vrot.slane %v6528_v31, 5  ;;  %v6173_v43 = vld [vmem:[#allocation5 + $0x40] sm:$0xff] }
  0x1d   :  { %6320 = vmatpush.bf16.msra.mxu3 %v6177_v32  ;;  %1811 = vmatpush.bf16.msra.mxu1 %v6177_v32  ;;  %9642 = vst [vmem:[#allocation14_spill] sm:$0xff] %v6543_v50  ;;  %v686_v58 = vshrl.u32 %v6543_v50, 16  ;;  %v688_v59 = vshll.u32 %v6543_v50, 16  ;;  %v506_v60 = vunpack.c.l.b16 %v386_v51  ;;  %v693_v63 = vshrl.u32 %v6547_v54, 16 }
  0x1e   :  { %9643 = vst [vmem:[#allocation15_spill] sm:$0xff] %v6547_v54  ;;  %v695_v0 = vshll.u32 %v6547_v54, 16  ;;  %v6555_v1 = vpack.c.b16 %v504_v55, %v6535_v40  ;;  %v337_v5 = vsel %vm318_vm0, %v144_v53, %v208_v56  ;;  %v369_v6 = vsel %vm318_vm0, %v208_v56, %v272_v57  ;;  %v6196_v53 = vld [vmem:[#allocation5 + $0xf8] sm:$0xff] }
  0x1f   :  { %v690_v3 = vrot.slane %v688_v59, 1  ;;  %v6558_v4 = vpack.c.b16 %v506_v60, %v6539_v45  ;;  %v387_v10 = vpack.c.bf16 %v321_v61, %v321_v61  ;;  %v419_v14 = vpack.c.bf16 %v337_v5, %v337_v5 }
  0x20   :  { %1723 = vmatpush.bf16.msra.mxu0 %v6168_v44  ;;  %6313 = vmatpush.bf16.msra.mxu2 %v6168_v44  ;;  %v697_v7 = vrot.slane %v695_v0, 1  ;;  %v588_v8 = vshrl.u32 %v6555_v1, 16  ;;  %v590_v9 = vshll.u32 %v6555_v1, 16  ;;  %v420_v18 = vpack.c.bf16 %v369_v6, %v369_v6 }
  0x21   :  { %6321 = vmatpush.bf16.msra.mxu3 %v6176_v49  ;;  %1812 = vmatpush.bf16.msra.mxu1 %v6176_v49  ;;  %v691_v11 = vor.u32 %v690_v3, %v686_v58  ;;  %v595_v12 = vshrl.u32 %v6558_v4, 16  ;;  %v597_v13 = vshll.u32 %v6558_v4, 16  ;;  %v6572_v23 = vunpack.c.l.b16 %v419_v14 }
  0x22   :  { %v6566_v16 = vor.u32 %v697_v7, %v693_v63  ;;  %v592_v17 = vrot.slane %v590_v9, 1  ;;  %v6577_v27 = vunpack.c.l.b16 %v387_v10  ;;  %v536_v28 = vunpack.c.l.b16 %v420_v18  ;;  %v6187_v9 = vld [vmem:[#allocation5 + $0xb0] sm:$0xff] }
  0x23   :  { %v599_v22 = vrot.slane %v597_v13, 1  ;;  %9645 = vst [vmem:[#allocation17_spill] sm:$0xff] %v6572_v23  ;;  %v6575_v25 = vunpack.c.l.b16 %v691_v11  ;;  %v353_v32 = vsel %vm318_vm0, %v192_v52, %v256_v24  ;;  %v129_v33 = vrot.slane %v6568_v19, 1  ;;  %v6188_v52 = vld [vmem:[#allocation5 + $0xb8] sm:$0xff]  ;;  %v6195_v11 = vld [vmem:[#allocation5 + $0xf0] sm:$0xff] }
  0x24   :  { %1724 = vmatpush.bf16.msra.mxu0 %v6167_v62  ;;  %6314 = vmatpush.bf16.msra.mxu2 %v6167_v62  ;;  %9644 = vst [vmem:[#allocation16_spill] sm:$0xff] %v6566_v16  ;;  %v593_v26 = vor.u32 %v592_v17, %v588_v8  ;;  %v130_v34 = vrot.slane %v6570_v20, 1  ;;  %v9451_v31 = vunpack.c.l.b16 %v6566_v16  ;;  %v6588_v39 = vpack.c.b16 %v536_v28, %v6572_v23 }
  0x25   :  { %6322 = vmatpush.bf16.msra.mxu3 %v6175_v2  ;;  %1813 = vmatpush.bf16.msra.mxu1 %v6175_v2  ;;  %9646 = vst [vmem:[#allocation18_spill] sm:$0xff] %v6575_v25  ;;  %v6579_v30 = vor.u32 %v599_v22, %v595_v12  ;;  %v388_v41 = vpack.c.bf16 %v353_v32, %v353_v32  ;;  %v193_v46 = vrot.slane %v6568_v19, 7  ;;  %v194_v47 = vrot.slane %v6570_v20, 7  ;;  %v6204_v2 = vld [vmem:[#allocation5 + $0x138] sm:$0xff] }
  0x26   :  { %v6585_v38 = vunpack.c.l.b16 %v593_v26  ;;  %9647 = vst [vmem:[#allocation19_spill] sm:$0xff] %v6588_v39  ;;  %v145_v48 = vrot.slane %v81_v29, 1  ;;  %v1071_v49 = vpack.c.b16 %v6539_v45, %v6535_v40  ;;  %v1125_v51 = vpack.c.b16 %v6533_v36, %v6531_v35  ;;  %v6203_v26 = vld [vmem:[#allocation5 + $0x130] sm:$0xff] }
  0x27   :  { %v9453_v44 = vunpack.c.l.b16 %v6579_v30  ;;  %v702_v55 = vshll.u32 %v6588_v39, 16  ;;  %v508_v56 = vunpack.c.l.b16 %v388_v41  ;;  %v322_v57 = vsel %vm318_vm0, %v129_v33, %v193_v46  ;;  %v6622_v33 = vld [vmem:[#allocation2 + $0x28] sm:$0xff] }
  0x28   :  { %1725 = vmatpush.bf16.msra.mxu0 %v6166_v15  ;;  %6315 = vmatpush.bf16.msra.mxu2 %v6166_v15  ;;  %v323_v58 = vsel %vm318_vm0, %v130_v34, %v194_v47  ;;  %v146_v59 = vrot.slane %v82_v42, 1  ;;  %v209_v60 = vrot.slane %v81_v29, 7  ;;  %v1126_v61 = vpack.c.b16 %v9451_v31, %v6575_v25  ;;  %v6186_v41 = vld [vmem:[#allocation5 + $0xa8] sm:$0xff] }
  0x29   :  { %6323 = vmatpush.bf16.msra.mxu3 %v6174_v21  ;;  %1814 = vmatpush.bf16.msra.mxu1 %v6174_v21  ;;  %v1072_v62 = vpack.c.b16 %v9453_v44, %v6585_v38  ;;  %v700_v63 = vshrl.u32 %v6588_v39, 16  ;;  %v6612_v0 = vpack.c.b16 %v508_v56, %v6577_v27  ;;  %v210_v3 = vrot.slane %v82_v42, 7 }
  0x2a   :  { %v338_v5 = vsel %vm318_vm0, %v145_v48, %v209_v60  ;;  %v273_v6 = vrot.slane %v81_v29, 5  ;;  %v274_v7 = vrot.slane %v82_v42, 5  ;;  %v704_v8 = vrot.slane %v702_v55, 1 }
  0x2b   :  { %v604_v10 = vshll.u32 %v6612_v0, 16  ;;  %v389_v12 = vpack.c.bf16 %v322_v57, %v322_v57  ;;  %v391_v13 = vpack.c.bf16 %v323_v58, %v323_v58  ;;  %v339_v14 = vsel %vm318_vm0, %v146_v59, %v210_v3 }
  0x2c   :  { %1726 = vmatpush.bf16.msra.mxu0 %v6165_v37  ;;  %6316 = vmatpush.bf16.msra.mxu2 %v6165_v37  ;;  %v421_v15 = vpack.c.bf16 %v338_v5, %v338_v5  ;;  %v370_v17 = vsel %vm318_vm0, %v209_v60, %v273_v6  ;;  %v602_v18 = vshrl.u32 %v6612_v0, 16  ;;  %v423_v22 = vpack.c.bf16 %v339_v14, %v339_v14  ;;  %v84_v14 = vld [vmem:[#allocation2 + $0xb0] sm:$0xff] }
  0x2d   :  { %6324 = vmatpush.bf16.msra.mxu3 %v6173_v43  ;;  %1815 = vmatpush.bf16.msra.mxu1 %v6173_v43  ;;  %v606_v21 = vrot.slane %v604_v10, 1  ;;  %v371_v24 = vsel %vm318_vm0, %v210_v3, %v274_v7  ;;  %v422_v29 = vpack.c.bf16 %v370_v17, %v370_v17  ;;  %v6624_v34 = vor.u32 %v704_v8, %v700_v63  ;;  %v6194_v43 = vld [vmem:[#allocation5 + $0xe8] sm:$0xff] }
  0x2e   :  { %v6620_v28 = vunpack.c.l.b16 %v421_v15  ;;  %v424_v32 = vpack.c.bf16 %v371_v24, %v371_v24  ;;  %v6626_v37 = vunpack.c.l.b16 %v423_v22  ;;  %v257_v42 = vrot.slane %v6568_v19, 5  ;;  %v6202_v63 = vld [vmem:[#allocation5 + $0x128] sm:$0xff] }
  0x2f   :  { %1727 = vmatmul.bf16.vlgmr.msra.gmra.mxu0 %v1071_v49  ;;  %1767 = vmatmul.bf16.vlgmr.msra.gmra.mxu2 %v1125_v51  ;;  %9649 = vst [vmem:[#allocation21_spill] sm:$0xff] %v6624_v34  ;;  %v6629_v48 = vunpack.c.l.b16 %v389_v12  ;;  %v538_v49 = vunpack.c.l.b16 %v422_v29  ;;  %v6634_v55 = vor.u32 %v606_v21, %v602_v18  ;;  %v6636_v56 = vunpack.c.l.b16 %v391_v13 }
  0x30   :  { %1897 = vmatpush.bf16.msrb.mxu2 %v6188_v52  ;;  %1856 = vmatmul.bf16.vlgmr.msra.gmra.mxu3 %v1126_v61  ;;  %9648 = vst [vmem:[#allocation20_spill] sm:$0xff] %v6620_v28  ;;  %v540_v51 = vunpack.c.l.b16 %v424_v32  ;;  %v258_v52 = vrot.slane %v6570_v20, 5  ;;  %v354_v57 = vsel %vm318_vm0, %v193_v46, %v257_v42  ;;  %v131_v58 = vrot.slane %v6622_v33, 1 }
  0x31   :  { %1986 = vmatpush.bf16.msrb.mxu3 %v6196_v53  ;;  %1816 = vmatmul.bf16.vlgmr.msra.gmra.mxu1 %v1072_v62  ;;  %9650 = vst [vmem:[#allocation22_spill] sm:$0xff] %v6626_v37  ;;  %v6632_v53 = vld [vmem:[#allocation2 + $0x30] sm:$0xff]  ;;  %v6643_v59 = vpack.c.b16 %v538_v49, %v6620_v28  ;;  %v390_v62 = vpack.c.bf16 %v354_v57, %v354_v57  ;;  %v195_v46 = vrot.slane %v6622_v33, 7  ;;  %v9450_v5 = vunpack.c.l.b16 %v6624_v34 }
  0x32   :  { %2075 = vmatpush.bf16.msrb.mxu0 %v6204_v2  ;;  %v6646_v60 = vpack.c.b16 %v540_v51, %v6626_v37  ;;  %v355_v61 = vsel %vm318_vm0, %v194_v47, %v258_v52  ;;  %v132_v19 = vrot.slane %v6632_v53, 1  ;;  %v196_v3 = vrot.slane %v6632_v53, 7 }
  0x33   :  { %9651 = vst [vmem:[#allocation23_spill] sm:$0xff] %v6643_v59  ;;  %v392_v2 = vpack.c.bf16 %v355_v61, %v355_v61  ;;  %v709_v6 = vshll.u32 %v6643_v59, 16  ;;  %v9452_v20 = vunpack.c.l.b16 %v6634_v55  ;;  %v510_v47 = vunpack.c.l.b16 %v390_v62 }
  0x34   :  { %1898 = vmatpush.bf16.msrb.mxu2 %v6187_v9  ;;  %9652 = vst [vmem:[#allocation24_spill] sm:$0xff] %v6646_v60  ;;  %v716_v7 = vshll.u32 %v6646_v60, 16  ;;  %v83_v9 = vld [vmem:[#allocation2 + $0xa8] sm:$0xff]  ;;  %v6660_v10 = vpack.c.b16 %v6577_v27, %v6535_v40  ;;  %v707_v12 = vshrl.u32 %v6643_v59, 16  ;;  %v324_v18 = vsel %vm318_vm0, %v131_v58, %v195_v46 }
  0x35   :  { %1987 = vmatpush.bf16.msrb.mxu3 %v6195_v11  ;;  %v512_v8 = vunpack.c.l.b16 %v392_v2  ;;  %v6664_v11 = vpack.c.b16 %v6572_v23, %v6531_v35  ;;  %v711_v13 = vrot.slane %v709_v6, 1  ;;  %v6668_v15 = vpack.c.b16 %v510_v47, %v6629_v48 }
  0x36   :  { %2076 = vmatpush.bf16.msrb.mxu0 %v6203_v26  ;;  %9653 = vst [vmem:[#allocation25_spill] sm:$0xff] %v6660_v10  ;;  %v325_v21 = vsel %vm318_vm0, %v132_v19, %v196_v3  ;;  %v6682_v22 = vpack.c.b16 %v9450_v5, %v6575_v25  ;;  %v714_v24 = vshrl.u32 %v6646_v60, 16  ;;  %v718_v26 = vrot.slane %v716_v7, 1  ;;  %v6192_v60 = vld [vmem:[#allocation5 + $0xd8] sm:$0xff] }
  0x37   :  { %9654 = vst [vmem:[#allocation26_spill] sm:$0xff] %v6664_v11  ;;  %v6671_v17 = vpack.c.b16 %v512_v8, %v6636_v56  ;;  %v147_v29 = vrot.slane %v83_v9, 1  ;;  %v6688_v32 = vpack.c.b16 %v9452_v20, %v6585_v38  ;;  %v6692_v49 = vor.u32 %v711_v13, %v707_v12  ;;  %v6185_v12 = vld [vmem:[#allocation5 + $0xa0] sm:$0xff] }
  0x38   :  { %1899 = vmatpush.bf16.msrb.mxu2 %v6186_v41  ;;  %9655 = vst [vmem:[#allocation27_spill] sm:$0xff] %v6682_v22  ;;  %v611_v41 = vshll.u32 %v6668_v15, 16  ;;  %v393_v51 = vpack.c.bf16 %v324_v18, %v324_v18  ;;  %v395_v52 = vpack.c.bf16 %v325_v21, %v325_v21  ;;  %v211_v57 = vrot.slane %v83_v9, 7  ;;  %v6193_v18 = vld [vmem:[#allocation5 + $0xe0] sm:$0xff] }
  0x39   :  { %1988 = vmatpush.bf16.msrb.mxu3 %v6194_v43  ;;  %9656 = vst [vmem:[#allocation28_spill] sm:$0xff] %v6688_v32  ;;  %v618_v42 = vshll.u32 %v6671_v17, 16  ;;  %v148_v43 = vrot.slane %v84_v14, 1  ;;  %v609_v58 = vshrl.u32 %v6668_v15, 16  ;;  %v212_v62 = vrot.slane %v84_v14, 7  ;;  %v6201_v21 = vld [vmem:[#allocation5 + $0x120] sm:$0xff] }
  0x3a   :  { %2077 = vmatpush.bf16.msrb.mxu0 %v6202_v63  ;;  %9657 = vst [vmem:[#allocation29_spill] sm:$0xff] %v6692_v49  ;;  %v613_v61 = vrot.slane %v611_v41, 1  ;;  %v275_v63 = vrot.slane %v83_v9, 5  ;;  %v6697_v2 = vor.u32 %v718_v26, %v714_v24  ;;  %v340_v19 = vsel %vm318_vm0, %v147_v29, %v211_v57 }
  0x3b   :  { %v276_v6 = vrot.slane %v84_v14, 5  ;;  %v259_v7 = vrot.slane %v6622_v33, 5  ;;  %v616_v47 = vshrl.u32 %v6671_v17, 16  ;;  %v620_v8 = vrot.slane %v618_v42, 1  ;;  %v6712_v42 = vld [vmem:[#allocation2 + $0x40] sm:$0xff] }
  0x3c   :  { %9658 = vst [vmem:[#allocation30_spill] sm:$0xff] %v6697_v2  ;;  %v341_v9 = vsel %vm318_vm0, %v148_v43, %v212_v62  ;;  %v260_v13 = vrot.slane %v6632_v53, 5  ;;  %v425_v24 = vpack.c.bf16 %v340_v19, %v340_v19  ;;  %v372_v14 = vsel %vm318_vm0, %v211_v57, %v275_v63  ;;  %1900 = vmatpush.bf16.msrb.mxu2 %v6185_v12  ;;  %v6714_v43 = vld [vmem:[#allocation2 + $0x48] sm:$0xff] }
  0x3d   :  { %v427_v26 = vpack.c.bf16 %v341_v9, %v341_v9  ;;  %v373_v29 = vsel %vm318_vm0, %v212_v62, %v276_v6  ;;  %v6708_v41 = vor.u32 %v613_v61, %v609_v58  ;;  %v6710_v5 = vunpack.c.l.b16 %v393_v51  ;;  %1989 = vmatpush.bf16.msrb.mxu3 %v6193_v18 }
  0x3e   :  { %v426_v31 = vpack.c.bf16 %v372_v14, %v372_v14  ;;  %v428_v20 = vpack.c.bf16 %v373_v29, %v373_v29  ;;  %v6716_v44 = vunpack.c.l.b16 %v425_v24  ;;  %v356_v57 = vsel %vm318_vm0, %v195_v46, %v259_v7  ;;  %2078 = vmatpush.bf16.msrb.mxu0 %v6201_v21  ;;  %v87_v24 = vld [vmem:[#allocation2 + $0xc8] sm:$0xff] }
  0x3f   :  { %1732 = vmatmul.bf16.gmra.mxu0 %v6660_v10  ;;  %1772 = vmatmul.bf16.gmra.mxu2 %v6664_v11  ;;  %v6718_v19 = vunpack.c.l.b16 %v427_v26  ;;  %v357_v51 = vsel %vm318_vm0, %v196_v3, %v260_v13  ;;  %v6726_v58 = vor.u32 %v620_v8, %v616_v47  ;;  %v394_v63 = vpack.c.bf16 %v356_v57, %v356_v57 }
  0x40   :  { %1861 = vmatmul.bf16.gmra.mxu3 %v6682_v22  ;;  %9659 = vst [vmem:[#allocation31_spill] sm:$0xff] %v6716_v44  ;;  %v542_v61 = vunpack.c.l.b16 %v426_v31  ;;  %v544_v62 = vunpack.c.l.b16 %v428_v20  ;;  %v6728_v6 = vunpack.c.l.b16 %v395_v52  ;;  %v396_v9 = vpack.c.bf16 %v357_v51, %v357_v51  ;;  %v86_v51 = vld [vmem:[#allocation2 + $0xc0] sm:$0xff] }
  0x41   :  { %1821 = vmatmul.bf16.gmra.mxu1 %v6688_v32  ;;  %9660 = vst [vmem:[#allocation32_spill] sm:$0xff] %v6718_v19  ;;  %v134_v12 = vrot.slane %v6714_v43, 1  ;;  %v135_v18 = vrot.slane %v6712_v42, 1  ;;  %v514_v46 = vunpack.c.l.b16 %v394_v63  ;;  %v9455_v3 = vrot.slane %v6714_v43, 7  ;;  %1990 = vmatpush.bf16.msrb.mxu3 %v6192_v60 }
  0x42   :  { %v6733_v33 = vpack.c.b16 %v542_v61, %v6716_v44  ;;  %v6736_v53 = vpack.c.b16 %v544_v62, %v6718_v19  ;;  %v9462_v31 = vunpack.c.l.b16 %v6692_v49  ;;  %v516_v52 = vunpack.c.l.b16 %v396_v9 }
  0x43   :  { %v9456_v7 = vrot.slane %v6712_v42, 7  ;;  %v6748_v26 = vpack.c.b16 %v6636_v56, %v6629_v48  ;;  %v6752_v14 = vpack.c.b16 %v6626_v37, %v6620_v28  ;;  %v6755_v29 = vpack.c.b16 %v514_v46, %v6710_v5 }
  0x44   :  { %9661 = vst [vmem:[#allocation33_spill] sm:$0xff] %v6733_v33  ;;  %v723_v13 = vshll.u32 %v6733_v33, 16  ;;  %v730_v21 = vshll.u32 %v6736_v53, 16  ;;  %v6758_v57 = vpack.c.b16 %v516_v52, %v6728_v6  ;;  %v721_v61 = vshrl.u32 %v6733_v33, 16 }
  0x45   :  { %9662 = vst [vmem:[#allocation34_spill] sm:$0xff] %v6736_v53  ;;  %v327_v63 = vsel %vm318_vm0, %v134_v12, %v9455_v3  ;;  %v328_v9 = vsel %vm318_vm0, %v135_v18, %v9456_v7  ;;  %v728_v8 = vshrl.u32 %v6736_v53, 16  ;;  %v625_v46 = vshll.u32 %v6755_v29, 16 }
  0x46   :  { %9663 = vst [vmem:[#allocation35_spill] sm:$0xff] %v6748_v26  ;;  %v725_v62 = vrot.slane %v723_v13, 1  ;;  %v732_v47 = vrot.slane %v730_v21, 1  ;;  %v150_v20 = vrot.slane %v87_v24, 1  ;;  %v9665_v52 = vunpack.c.l.b16 %v6697_v2 }
  0x47   :  { %9664 = vst [vmem:[#allocation36_spill] sm:$0xff] %v6752_v14  ;;  %v9667_v13 = vunpack.c.l.b16 %v6708_v41  ;;  %v9668_v12 = vunpack.c.l.b16 %v6726_v58  ;;  %v632_v18 = vshll.u32 %v6758_v57, 16  ;;  %v151_v7 = vrot.slane %v86_v51, 1 }
  0x48   :  { %v6773_v22 = vpack.c.b16 %v9665_v52, %v9462_v31  ;;  %v399_v11 = vpack.c.bf16 %v327_v63, %v327_v63  ;;  %v401_v21 = vpack.c.bf16 %v328_v9, %v328_v9  ;;  %v214_v32 = vrot.slane %v87_v24, 7  ;;  %v6184_v9 = vld [vmem:[#allocation5 + $0x98] sm:$0xff] }
  0x49   :  { %v6779_v3 = vpack.c.b16 %v9668_v12, %v9667_v13  ;;  %v215_v10 = vrot.slane %v86_v51, 7  ;;  %v6782_v53 = vor.u32 %v725_v62, %v721_v61  ;;  %v623_v37 = vshrl.u32 %v6755_v29, 16  ;;  %1901 = vmatpush.bf16.msrb.mxu2 %v6184_v9 }
  0x4a   :  { %9666 = vst [vmem:[#allocation37_spill] sm:$0xff] %v6773_v22  ;;  %v630_v52 = vshrl.u32 %v6758_v57, 16  ;;  %v278_v31 = vrot.slane %v87_v24, 5  ;;  %v733_v13 = vor.u32 %v732_v47, %v728_v8  ;;  %v627_v12 = vrot.slane %v625_v46, 1 }
  0x4b   :  { %9669 = vst [vmem:[#allocation38_spill] sm:$0xff] %v6779_v3  ;;  %v343_v2 = vsel %vm318_vm0, %v150_v20, %v214_v32  ;;  %v279_v33 = vrot.slane %v86_v51, 5  ;;  %v634_v61 = vrot.slane %v632_v18, 1  ;;  %v344_v62 = vsel %vm318_vm0, %v151_v7, %v215_v10  ;;  %v72_v7 = vld [vmem:[#allocation2 + $0x50] sm:$0xff] }
  0x4c   :  { %9670 = vst [vmem:[#allocation39_spill] sm:$0xff] %v6782_v53  ;;  %v431_v63 = vpack.c.bf16 %v343_v2, %v343_v2  ;;  %v262_v24 = vrot.slane %v6714_v43, 5  ;;  %v6793_v28 = vunpack.c.l.b16 %v399_v11  ;;  %v6795_v47 = vunpack.c.l.b16 %v401_v21 }
  0x4d   :  { %v433_v8 = vpack.c.bf16 %v344_v62, %v344_v62  ;;  %v375_v20 = vsel %vm318_vm0, %v214_v32, %v278_v31  ;;  %v376_v46 = vsel %vm318_vm0, %v215_v10, %v279_v33  ;;  %v263_v2 = vrot.slane %v6712_v42, 5  ;;  %v88_v32 = vld [vmem:[#allocation2 + $0xd0] sm:$0xff] }
  0x4e   :  { %9671 = vst [vmem:[#allocation40_spill] sm:$0xff] %v6793_v28  ;;  %v6798_v51 = vunpack.c.l.b16 %v431_v63  ;;  %v432_v18 = vpack.c.bf16 %v375_v20, %v375_v20  ;;  %v434_v11 = vpack.c.bf16 %v376_v46, %v376_v46  ;;  %v9675_v21 = vrot.slane %v6714_v43, 7 }
  0x4f   :  { %1737 = vmatmul.bf16.gmra.mxu0 %v6748_v26  ;;  %1777 = vmatmul.bf16.gmra.mxu2 %v6752_v14  ;;  %v6200_v26 = vld [vmem:[#allocation5 + $0x118] sm:$0xff]  ;;  %9672 = vst [vmem:[#allocation41_spill] sm:$0xff] %v6795_v47  ;;  %v6804_v14 = vunpack.c.l.b16 %v433_v8  ;;  %v635_v31 = vor.u32 %v634_v61, %v630_v52  ;;  %v9676_v10 = vrot.slane %v6712_v42, 7  ;;  %v152_v43 = vrot.slane %v88_v32, 1 }
  0x50   :  { %1866 = vmatmul.bf16.gmra.mxu3 %v6773_v22  ;;  %9673 = vst [vmem:[#allocation42_spill] sm:$0xff] %v6798_v51  ;;  %v6802_v22 = vor.u32 %v627_v12, %v623_v37  ;;  %v359_v62 = vsel %vm318_vm0, %v9675_v21, %v262_v24  ;;  %2079 = vmatpush.bf16.msrb.mxu0 %v6200_v26  ;;  %v546_v63 = vunpack.c.l.b16 %v432_v18  ;;  %v548_v60 = vunpack.c.l.b16 %v434_v11 }
  0x51   :  { %1826 = vmatmul.bf16.gmra.mxu1 %v6779_v3  ;;  %9674 = vst [vmem:[#allocation43_spill] sm:$0xff] %v6804_v14  ;;  %v360_v33 = vsel %vm318_vm0, %v9676_v10, %v263_v2  ;;  %v400_v9 = vpack.c.bf16 %v359_v62, %v359_v62  ;;  %v136_v37 = vrot.slane %v72_v7, 1  ;;  %v200_v12 = vrot.slane %v72_v7, 7 }
  0x52   :  { %v402_v20 = vpack.c.bf16 %v360_v33, %v360_v33  ;;  %v6813_v8 = vpack.c.b16 %v546_v63, %v6798_v51  ;;  %v216_v3 = vrot.slane %v88_v32, 7  ;;  %v9477_v26 = vunpack.c.l.b16 %v6782_v53 }
  0x53   :  { %v518_v46 = vunpack.c.l.b16 %v400_v9  ;;  %v6816_v24 = vunpack.c.l.b16 %v733_v13  ;;  %v6819_v52 = vpack.c.b16 %v548_v60, %v6804_v14  ;;  %v9478_v61 = vunpack.c.l.b16 %v6802_v22 }
  0x54   :  { %9677 = vst [vmem:[#allocation44_spill] sm:$0xff] %v6813_v8  ;;  %v520_v42 = vunpack.c.l.b16 %v402_v20  ;;  %v6822_v18 = vunpack.c.l.b16 %v635_v31  ;;  %v280_v11 = vrot.slane %v88_v32, 5  ;;  %v345_v62 = vsel %vm318_vm0, %v152_v43, %v216_v3 }
  0x55   :  { %9678 = vst [vmem:[#allocation45_spill] sm:$0xff] %v6816_v24  ;;  %v6825_v2 = vpack.c.b16 %v518_v46, %v6793_v28  ;;  %v737_v13 = vshll.u32 %v6813_v8, 16  ;;  %v744_v63 = vshll.u32 %v6819_v52, 16  ;;  %v329_v10 = vsel %vm318_vm0, %v136_v37, %v200_v12 }
  0x56   :  { %9679 = vst [vmem:[#allocation46_spill] sm:$0xff] %v6819_v52  ;;  %v6828_v21 = vpack.c.b16 %v520_v42, %v6795_v47  ;;  %v6836_v33 = vpack.c.b16 %v6728_v6, %v6710_v5  ;;  %v6840_v31 = vpack.c.b16 %v6718_v19, %v6716_v44  ;;  %v6847_v60 = vpack.c.b16 %v6816_v24, %v9477_v26 }
  0x57   :  { %9680 = vst [vmem:[#allocation47_spill] sm:$0xff] %v6822_v18  ;;  %v639_v32 = vshll.u32 %v6825_v2, 16  ;;  %v6852_v20 = vpack.c.b16 %v6822_v18, %v9478_v61  ;;  %v435_v37 = vpack.c.bf16 %v345_v62, %v345_v62  ;;  %v377_v46 = vsel %vm318_vm0, %v216_v3, %v280_v11  ;;  %v89_v3 = vld [vmem:[#allocation2 + $0xd8] sm:$0xff]  ;;  %v90_v11 = vld [vmem:[#allocation2 + $0xe0] sm:$0xff] }
  0x58   :  { %9681 = vst [vmem:[#allocation48_spill] sm:$0xff] %v6836_v33  ;;  %v646_v9 = vshll.u32 %v6828_v21, 16  ;;  %v735_v43 = vshrl.u32 %v6813_v8, 16  ;;  %v403_v42 = vpack.c.bf16 %v329_v10, %v329_v10  ;;  %v436_v19 = vpack.c.bf16 %v377_v46, %v377_v46  ;;  %v6191_v46 = vld [vmem:[#allocation5 + $0xd0] sm:$0xff] }
  0x59   :  { %9682 = vst [vmem:[#allocation49_spill] sm:$0xff] %v6840_v31  ;;  %v739_v44 = vrot.slane %v737_v13, 1  ;;  %v742_v23 = vshrl.u32 %v6819_v52, 16  ;;  %v746_v49 = vrot.slane %v744_v63, 1  ;;  %v264_v53 = vrot.slane %v72_v7, 5  ;;  %v6183_v7 = vld [vmem:[#allocation5 + $0x90] sm:$0xff]  ;;  %1991 = vmatpush.bf16.msrb.mxu3 %v6191_v46 }
  0x5a   :  { %9683 = vst [vmem:[#allocation50_spill] sm:$0xff] %v6847_v60  ;;  %v637_v26 = vshrl.u32 %v6825_v2, 16  ;;  %v641_v61 = vrot.slane %v639_v32, 1  ;;  %v644_v62 = vshrl.u32 %v6828_v21, 16  ;;  %v648_v24 = vrot.slane %v646_v9, 1  ;;  %1902 = vmatpush.bf16.msrb.mxu2 %v6183_v7  ;;  %v73_v9 = vld [vmem:[#allocation2 + $0x58] sm:$0xff] }
  0x5b   :  { %9684 = vst [vmem:[#allocation51_spill] sm:$0xff] %v6852_v20  ;;  %v6863_v13 = vunpack.c.l.b16 %v435_v37  ;;  %v550_v63 = vunpack.c.l.b16 %v436_v19  ;;  %v361_v10 = vsel %vm318_vm0, %v200_v12, %v264_v53  ;;  %v740_v52 = vor.u32 %v739_v44, %v735_v43  ;;  %v74_v43 = vld [vmem:[#allocation2 + $0x60] sm:$0xff] }
  0x5c   :  { %v404_v32 = vpack.c.bf16 %v361_v10, %v361_v10  ;;  %v6868_v8 = vor.u32 %v746_v49, %v742_v23  ;;  %v217_v34 = vrot.slane %v89_v3, 7  ;;  %v6870_v37 = vor.u32 %v648_v24, %v644_v62 }
  0x5d   :  { %9685 = vst [vmem:[#allocation52_spill] sm:$0xff] %v6863_v13  ;;  %v154_v59 = vrot.slane %v90_v11, 1  ;;  %v1098_v53 = vpack.c.b16 %v6795_v47, %v6793_v28  ;;  %v6875_v12 = vpack.c.b16 %v550_v63, %v6863_v13  ;;  %v218_v44 = vrot.slane %v90_v11, 7 }
  0x5e   :  { %9687 = vst [vmem:[#allocation54_spill] sm:$0xff] %v6868_v8  ;;  %v522_v19 = vunpack.c.l.b16 %v404_v32  ;;  %v1152_v23 = vpack.c.b16 %v6804_v14, %v6798_v51  ;;  %v201_v24 = vrot.slane %v73_v9, 7  ;;  %v282_v62 = vrot.slane %v90_v11, 5 }
  0x5f   :  { %1742 = vmatmul.bf16.gmra.mxu0 %v6836_v33  ;;  %1782 = vmatmul.bf16.gmra.mxu2 %v6840_v31  ;;  %v6199_v31 = vld [vmem:[#allocation5 + $0x110] sm:$0xff]  ;;  %v6866_v33 = vunpack.c.l.b16 %v403_v42  ;;  %9688 = vst [vmem:[#allocation55_spill] sm:$0xff] %v6875_v12  ;;  %v281_v42 = vrot.slane %v89_v3, 5  ;;  %v347_v46 = vsel %vm318_vm0, %v154_v59, %v218_v44  ;;  %v751_v32 = vshll.u32 %v6875_v12, 16 }
  0x60   :  { %1871 = vmatmul.bf16.gmra.mxu3 %v6847_v60  ;;  %v153_v60 = vrot.slane %v89_v3, 1  ;;  %2080 = vmatpush.bf16.msrb.mxu0 %v6199_v31  ;;  %v202_v14 = vrot.slane %v74_v43, 7  ;;  %v379_v11 = vsel %vm318_vm0, %v218_v44, %v282_v62  ;;  %v439_v7 = vpack.c.bf16 %v347_v46, %v347_v46 }
  0x61   :  { %1831 = vmatmul.bf16.gmra.mxu1 %v6852_v20  ;;  %9686 = vst [vmem:[#allocation53_spill] sm:$0xff] %v6866_v33  ;;  %v642_v20 = vor.u32 %v641_v61, %v637_v26  ;;  %v6880_v49 = vpack.c.b16 %v522_v19, %v6866_v33  ;;  %v137_v26 = vrot.slane %v73_v9, 1  ;;  %v6882_v61 = vunpack.c.l.b16 %v740_v52 }
  0x62   :  { %v346_v31 = vsel %vm318_vm0, %v153_v60, %v217_v34  ;;  %v138_v19 = vrot.slane %v74_v43, 1  ;;  %v378_v39 = vsel %vm318_vm0, %v217_v34, %v281_v42  ;;  %v440_v35 = vpack.c.bf16 %v379_v11, %v379_v11 }
  0x63   :  { %9689 = vst [vmem:[#allocation56_spill] sm:$0xff] %v6880_v49  ;;  %v6886_v63 = vunpack.c.l.b16 %v642_v20  ;;  %v653_v52 = vshll.u32 %v6880_v49, 16  ;;  %v330_v60 = vsel %vm318_vm0, %v137_v26, %v201_v24  ;;  %v437_v3 = vpack.c.bf16 %v346_v31, %v346_v31 }
  0x64   :  { %9690 = vst [vmem:[#allocation57_spill] sm:$0xff] %v6882_v61  ;;  %v438_v20 = vpack.c.bf16 %v378_v39, %v378_v39  ;;  %v265_v36 = vrot.slane %v73_v9, 5  ;;  %v9692_v59 = vunpack.c.l.b16 %v6868_v8  ;;  %v9693_v25 = vunpack.c.l.b16 %v6870_v37 }
  0x65   :  { %9691 = vst [vmem:[#allocation58_spill] sm:$0xff] %v6886_v63  ;;  %v749_v34 = vshrl.u32 %v6875_v12, 16  ;;  %v266_v42 = vrot.slane %v74_v43, 5  ;;  %v753_v54 = vrot.slane %v751_v32, 1  ;;  %v331_v26 = vsel %vm318_vm0, %v138_v19, %v202_v14  ;;  %v6182_v19 = vld [vmem:[#allocation5 + $0x88] sm:$0xff] }
  0x66   :  { %v1153_v10 = vpack.c.b16 %v9692_v59, %v6882_v61  ;;  %v1099_v16 = vpack.c.b16 %v9693_v25, %v6886_v63  ;;  %v405_v31 = vpack.c.bf16 %v330_v60, %v330_v60  ;;  %v362_v44 = vsel %vm318_vm0, %v201_v24, %v265_v36  ;;  %v6190_v36 = vld [vmem:[#allocation5 + $0xc8] sm:$0xff]  ;;  %1903 = vmatpush.bf16.msrb.mxu2 %v6182_v19 }
  0x67   :  { %v651_v39 = vshrl.u32 %v6880_v49, 16  ;;  %v655_v9 = vrot.slane %v653_v52, 1  ;;  %v6905_v62 = vunpack.c.l.b16 %v437_v3  ;;  %v363_v46 = vsel %vm318_vm0, %v202_v14, %v266_v42  ;;  %v6198_v24 = vld [vmem:[#allocation5 + $0x108] sm:$0xff]  ;;  %v6212_v3 = vld [vmem:[#allocation5 + $0x178] sm:$0xff]  ;;  %1992 = vmatpush.bf16.msrb.mxu3 %v6190_v36 }
  0x68   :  { %v6908_v11 = vunpack.c.l.b16 %v439_v7  ;;  %v552_v59 = vunpack.c.l.b16 %v438_v20  ;;  %v554_v25 = vunpack.c.l.b16 %v440_v35  ;;  %v406_v8 = vpack.c.bf16 %v362_v44, %v362_v44  ;;  %2081 = vmatpush.bf16.msrb.mxu0 %v6198_v24  ;;  %2164 = vmatpush.bf16.msrb.mxu1 %v6212_v3 }
  0x69   :  { %v407_v43 = vpack.c.bf16 %v331_v26, %v331_v26  ;;  %v408_v32 = vpack.c.bf16 %v363_v46, %v363_v46  ;;  %v6910_v60 = vor.u32 %v753_v54, %v749_v34  ;;  %v6912_v52 = vor.u32 %v655_v9, %v651_v39  ;;  %v75_v54 = vld [vmem:[#allocation2 + $0x68] sm:$0xff]  ;;  %v76_v34 = vld [vmem:[#allocation2 + $0x70] sm:$0xff] }
  0x6a   :  { %v6914_v14 = vunpack.c.l.b16 %v405_v31  ;;  %v6917_v7 = vpack.c.b16 %v552_v59, %v6905_v62  ;;  %v6920_v35 = vpack.c.b16 %v554_v25, %v6908_v11  ;;  %v6926_v20 = vpack.c.b16 %v6866_v33, %v6793_v28  ;;  %v92_v31 = vld [vmem:[#allocation2 + $0xf0] sm:$0xff] }
  0x6b   :  { %9694 = vst [vmem:[#allocation59_spill] sm:$0xff] %v6910_v60  ;;  %v6930_v42 = vpack.c.b16 %v6863_v13, %v6798_v51  ;;  %v9505_v26 = vunpack.c.l.b16 %v6910_v60  ;;  %v139_v59 = vrot.slane %v75_v54, 1  ;;  %v204_v19 = vrot.slane %v76_v34, 7 }
  0x6c   :  { %9695 = vst [vmem:[#allocation60_spill] sm:$0xff] %v6912_v52  ;;  %v758_v39 = vshll.u32 %v6917_v7, 16  ;;  %v765_v9 = vshll.u32 %v6920_v35, 16  ;;  %v156_v36 = vrot.slane %v92_v31, 1  ;;  %v220_v3 = vrot.slane %v92_v31, 7 }
  0x6d   :  { %9696 = vst [vmem:[#allocation61_spill] sm:$0xff] %v6917_v7  ;;  %v6945_v13 = vpack.c.b16 %v9505_v26, %v6882_v61  ;;  %v763_v51 = vshrl.u32 %v6920_v35, 16  ;;  %v284_v49 = vrot.slane %v92_v31, 5  ;;  %v267_v28 = vrot.slane %v75_v54, 5 }
  0x6e   :  { %9697 = vst [vmem:[#allocation62_spill] sm:$0xff] %v6920_v35  ;;  %v760_v50 = vrot.slane %v758_v39, 1  ;;  %v268_v61 = vrot.slane %v76_v34, 5  ;;  %v767_v47 = vrot.slane %v765_v9, 1 }
  0x6f   :  { %1747 = vmatmul.bf16.gmra.mxu0 %v1098_v53  ;;  %1787 = vmatmul.bf16.gmra.mxu2 %v1152_v23  ;;  %v524_v53 = vunpack.c.l.b16 %v406_v8  ;;  %v6922_v23 = vunpack.c.l.b16 %v407_v43  ;;  %9698 = vst [vmem:[#allocation63_spill] sm:$0xff] %v6926_v20  ;;  %v140_v43 = vrot.slane %v76_v34, 1  ;;  %v381_v35 = vsel %vm318_vm0, %v220_v3, %v284_v49  ;;  %v6181_v49 = vld [vmem:[#allocation5 + $0x80] sm:$0xff] }
  0x70   :  { %1876 = vmatmul.bf16.gmra.mxu3 %v1153_v10  ;;  %v526_v10 = vunpack.c.l.b16 %v408_v32  ;;  %9699 = vst [vmem:[#allocation64_spill] sm:$0xff] %v6930_v42  ;;  %v203_v32 = vrot.slane %v75_v54, 7  ;;  %v365_v31 = vsel %vm318_vm0, %v204_v19, %v268_v61  ;;  %1904 = vmatpush.bf16.msrb.mxu2 %v6181_v49 }
  0x71   :  { %1836 = vmatmul.bf16.gmra.mxu1 %v1099_v16  ;;  %v91_v16 = vld [vmem:[#allocation2 + $0xe8] sm:$0xff]  ;;  %v6937_v46 = vpack.c.b16 %v524_v53, %v6914_v14  ;;  %9700 = vst [vmem:[#allocation65_spill] sm:$0xff] %v6945_v13  ;;  %v9701_v53 = vunpack.c.l.b16 %v6912_v52  ;;  %v333_v26 = vsel %vm318_vm0, %v140_v43, %v204_v19  ;;  %v349_v52 = vsel %vm318_vm0, %v156_v36, %v220_v3 }
  0x72   :  { %v155_v44 = vrot.slane %v91_v16, 1  ;;  %v6940_v25 = vpack.c.b16 %v526_v10, %v6922_v23  ;;  %v219_v24 = vrot.slane %v91_v16, 7  ;;  %v283_v8 = vrot.slane %v91_v16, 5 }
  0x73   :  { %v6950_v12 = vpack.c.b16 %v9701_v53, %v6886_v63  ;;  %v756_v10 = vshrl.u32 %v6917_v7, 16  ;;  %v660_v33 = vshll.u32 %v6937_v46, 16  ;;  %v332_v60 = vsel %vm318_vm0, %v139_v59, %v203_v32 }
  0x74   :  { %v667_v16 = vshll.u32 %v6940_v25, 16  ;;  %v348_v53 = vsel %vm318_vm0, %v155_v44, %v219_v24  ;;  %v380_v7 = vsel %vm318_vm0, %v219_v24, %v283_v8  ;;  %v658_v39 = vshrl.u32 %v6937_v46, 16  ;;  %v6211_v24 = vld [vmem:[#allocation5 + $0x170] sm:$0xff] }
  0x75   :  { %9702 = vst [vmem:[#allocation66_spill] sm:$0xff] %v6950_v12  ;;  %v364_v54 = vsel %vm318_vm0, %v203_v32, %v267_v28  ;;  %v662_v63 = vrot.slane %v660_v33, 1  ;;  %v665_v59 = vshrl.u32 %v6940_v25, 16  ;;  %v409_v43 = vpack.c.bf16 %v332_v60, %v332_v60  ;;  %v6189_v32 = vld [vmem:[#allocation5 + $0xc0] sm:$0xff]  ;;  %2165 = vmatpush.bf16.msrb.mxu1 %v6211_v24  ;;  %v6210_v60 = vld [vmem:[#allocation5 + $0x168] sm:$0xff] }
  0x76   :  { %v411_v34 = vpack.c.bf16 %v333_v26, %v333_v26  ;;  %v669_v44 = vrot.slane %v667_v16, 1  ;;  %v441_v9 = vpack.c.bf16 %v348_v53, %v348_v53  ;;  %v443_v8 = vpack.c.bf16 %v349_v52, %v349_v52  ;;  %v6197_v26 = vld [vmem:[#allocation5 + $0x100] sm:$0xff]  ;;  %1993 = vmatpush.bf16.msrb.mxu3 %v6189_v32 }
  0x77   :  { %v442_v36 = vpack.c.bf16 %v380_v7, %v380_v7  ;;  %v444_v28 = vpack.c.bf16 %v381_v35, %v381_v35  ;;  %v410_v33 = vpack.c.bf16 %v364_v54, %v364_v54  ;;  %v412_v61 = vpack.c.bf16 %v365_v31, %v365_v31  ;;  %2082 = vmatpush.bf16.msrb.mxu0 %v6197_v26 }
  0x78   :  { %v6970_v19 = vor.u32 %v760_v50, %v756_v10  ;;  %v6972_v3 = vor.u32 %v767_v47, %v763_v51  ;;  %v6974_v16 = vor.u32 %v662_v63, %v658_v39  ;;  %v6976_v52 = vunpack.c.l.b16 %v409_v43  ;;  %v6209_v51 = vld [vmem:[#allocation5 + $0x160] sm:$0xff] }
  0x79   :  { %v6978_v7 = vor.u32 %v669_v44, %v665_v59  ;;  %v6980_v35 = vunpack.c.l.b16 %v411_v34  ;;  %v6982_v53 = vunpack.c.l.b16 %v441_v9  ;;  %v556_v54 = vunpack.c.l.b16 %v442_v36  ;;  %2166 = vmatpush.bf16.msrb.mxu1 %v6210_v60 }
  0x7a   :  { %v6984_v31 = vunpack.c.l.b16 %v443_v8  ;;  %v558_v50 = vunpack.c.l.b16 %v444_v28  ;;  %v528_v10 = vunpack.c.l.b16 %v410_v33  ;;  %v530_v47 = vunpack.c.l.b16 %v412_v61  ;;  %v6208_v33 = vld [vmem:[#allocation5 + $0x158] sm:$0xff] }
  0x7b   :  { %9703 = vst [vmem:[#allocation67_spill] sm:$0xff] %v6980_v35  ;;  %v9513_v63 = vunpack.c.l.b16 %v6970_v19  ;;  %v9512_v39 = vunpack.c.l.b16 %v6972_v3  ;;  %v9515_v59 = vunpack.c.l.b16 %v6974_v16  ;;  %v6990_v43 = vpack.c.b16 %v556_v54, %v6982_v53 }
  0x7c   :  { %v9514_v34 = vunpack.c.l.b16 %v6978_v7  ;;  %v6994_v44 = vpack.c.b16 %v558_v50, %v6984_v31  ;;  %v6997_v9 = vpack.c.b16 %v528_v10, %v6976_v52  ;;  %v7000_v8 = vpack.c.b16 %v530_v47, %v6980_v35 }
  0x7d   :  { %2167 = vmatpush.bf16.msrb.mxu1 %v6209_v51  ;;  %v7004_v36 = vpack.c.b16 %v6922_v23, %v6914_v14  ;;  %v7008_v24 = vpack.c.b16 %v6908_v11, %v6905_v62  ;;  %v7014_v28 = vpack.c.b16 %v9512_v39, %v9513_v63  ;;  %v772_v49 = vshll.u32 %v6990_v43, 16  ;;  %v6207_v51 = vld [vmem:[#allocation5 + $0x150] sm:$0xff] }
  0x7e   :  { %v7021_v61 = vpack.c.b16 %v9514_v34, %v9515_v59  ;;  %v779_v32 = vshll.u32 %v6994_v44, 16  ;;  %v674_v60 = vshll.u32 %v6997_v9, 16  ;;  %v681_v26 = vshll.u32 %v7000_v8, 16  ;;  %v6220_v59 = vld [vmem:[#allocation5 + $0x1b8] sm:$0xff] }
  0x7f   :  { %1752 = vmatmul.bf16.gmra.mxu0 %v6926_v20  ;;  %1792 = vmatmul.bf16.gmra.mxu2 %v6930_v42  ;;  %9704 = vst [vmem:[#allocation68_spill] sm:$0xff] %v7004_v36  ;;  %v770_v54 = vshrl.u32 %v6990_v43, 16  ;;  %v774_v50 = vrot.slane %v772_v49, 1  ;;  %v777_v10 = vshrl.u32 %v6994_v44, 16  ;;  %v672_v47 = vshrl.u32 %v6997_v9, 16  ;;  %v6206_v49 = vld [vmem:[#allocation5 + $0x148] sm:$0xff] }
  0x80   :  { %1881 = vmatmul.bf16.gmra.mxu3 %v6945_v13  ;;  %9705 = vst [vmem:[#allocation69_spill] sm:$0xff] %v7008_v24  ;;  %v781_v39 = vrot.slane %v779_v32, 1  ;;  %v676_v63 = vrot.slane %v674_v60, 1  ;;  %v683_v34 = vrot.slane %v681_v26, 1  ;;  %v6228_v13 = vld [vmem:[#allocation5 + $0x1f8] sm:$0xff]  ;;  %2253 = vmatpush.bf16.msra.mxu2 %v6220_v59  ;;  %v784_v59 = vrot.slane %v6558_v4, 1 }
  0x81   :  { %1841 = vmatmul.bf16.gmra.mxu1 %v6950_v12  ;;  %9706 = vst [vmem:[#allocation70_spill] sm:$0xff] %v7014_v28  ;;  %2342 = vmatpush.bf16.msra.mxu3 %v6228_v13  ;;  %v7046_v13 = vpack.c.b16 %v6980_v35, %v6976_v52  ;;  %v6227_v4 = vld [vmem:[#allocation5 + $0x1f0] sm:$0xff] }
  0x82   :  { %9707 = vst [vmem:[#allocation71_spill] sm:$0xff] %v7021_v61  ;;  %2168 = vmatpush.bf16.msrb.mxu1 %v6208_v33  ;;  %v679_v33 = vshrl.u32 %v7000_v8, 16  ;;  %v782_v42 = vor.u32 %v781_v39, %v777_v10 }
  0x83   :  { %9709 = vst [vmem:[#allocation73_spill] sm:$0xff] %v7046_v13 }
  0x84   :  { %v684_v12 = vor.u32 %v683_v34, %v679_v33  ;;  %v7039_v60 = vunpack.c.l.b16 %v782_v42  ;;  %v783_v42 = vrot.slane %v6555_v1, 1  ;;  %v6219_v1 = vld [vmem:[#allocation5 + $0x1b0] sm:$0xff] }
  0x85   :  { %2254 = vmatpush.bf16.msra.mxu2 %v6219_v1  ;;  %2343 = vmatpush.bf16.msra.mxu3 %v6227_v4 }
  0x86   :  { %2169 = vmatpush.bf16.msrb.mxu1 %v6207_v51  ;;  %v7042_v20 = vunpack.c.l.b16 %v684_v12  ;;  %v864_v34 = vunpack.c.l.b16 %v783_v42 }
  0x88   :  { %9708 = vst [vmem:[#allocation72_spill] sm:$0xff] %v7042_v20 }
  0x8a   :  { %2170 = vmatpush.bf16.msrb.mxu1 %v6206_v49 }
  0x8f   :  { %1757 = vmatmul.bf16.gmra.mxu0 %v7004_v36  ;;  %1797 = vmatmul.bf16.gmra.mxu2 %v7008_v24  ;;  %v7034_v24 = vor.u32 %v774_v50, %v770_v54  ;;  %v7036_v36 = vor.u32 %v676_v63, %v672_v47  ;;  %v7050_v63 = vpack.c.b16 %v6984_v31, %v6982_v53  ;;  %v9713_v54 = vunpack.c.l.b16 %v6579_v30 }
  0x90   :  { %1886 = vmatmul.bf16.gmra.mxu3 %v7014_v28  ;;  %v6205_v28 = vld [vmem:[#allocation5 + $0x140] sm:$0xff]  ;;  %v1074_v47 = vpack.c.b16 %v6535_v40, %v6539_v45  ;;  %v786_v40 = vrot.slane %v6668_v15, 1  ;;  %v9714_v15 = vunpack.c.l.b16 %v6634_v55 }
  0x91   :  { %1846 = vmatmul.bf16.gmra.mxu1 %v7021_v61  ;;  %v6236_v61 = vld [vmem:[#allocation5 + $0x238] sm:$0xff]  ;;  %v9524_v32 = vunpack.c.l.b16 %v7034_v24  ;;  %v9525_v26 = vunpack.c.l.b16 %v7036_v36  ;;  %9710 = vst [vmem:[#allocation74_spill] sm:$0xff] %v7050_v63  ;;  %v1075_v50 = vpack.c.b16 %v6585_v38, %v9713_v54  ;;  %v785_v38 = vrot.slane %v6612_v0, 1 }
  0x92   :  { %2431 = vmatpush.bf16.msra.mxu0 %v6236_v61  ;;  %2171 = vmatpush.bf16.msrb.mxu1 %v6205_v28  ;;  %v866_v28 = vunpack.c.l.b16 %v784_v59  ;;  %v1080_v0 = vpack.c.b16 %v6629_v48, %v6577_v27 }
  0x93   :  { %v7055_v39 = vpack.c.b16 %v7039_v60, %v9524_v32  ;;  %v7060_v12 = vpack.c.b16 %v7042_v20, %v9525_v26 }
  0x94   :  { %v1073_v61 = vpack.c.b16 %v866_v28, %v864_v34  ;;  %v1076_v51 = vpack.c.b16 %v864_v34, %v866_v28  ;;  %v69_v28 = vld [vmem:[#allocation2 + $0x38] sm:$0xff] }
  0x95   :  { %9711 = vst [vmem:[#allocation75_spill] sm:$0xff] %v7055_v39  ;;  %v261_v1 = vrot.slane %v69_v28, 5 }
  0x96   :  { %9712 = vst [vmem:[#allocation76_spill] sm:$0xff] %v7060_v12 }
  0x9f   :  { %1762 = vmatmul.bf16.gmra.mxu0 %v7046_v13  ;;  %1802 = vmatmul.bf16.gmra.mxu2 %v7050_v63 }
  0xa0   :  { %1891 = vmatmul.bf16.gmra.mxu3 %v7055_v39 }
  0xa1   :  { %1851 = vmatmul.bf16.gmra.mxu1 %v7060_v12 }
  0xac   :  { %v1728_v10 = vpop.f32.mrf.mxu0 }
  0xae   :  { %v1817_v33 = vpop.f32.mrf.mxu1 }
  0xaf   :  { %v7073_v49 = vadd.f32 %v1817_v33, %v1728_v10  ;;  %1905 = vmatmul.bf16.vlgmr.msrb.gmra.mxu2 %v1073_v61  ;;  %2083 = vmatmul.bf16.vlgmr.msrb.gmra.mxu0 %v1075_v50  ;;  %v6235_v61 = vld [vmem:[#allocation5 + $0x230] sm:$0xff]  ;;  %v868_v50 = vunpack.c.l.b16 %v785_v38  ;;  %v197_v33 = vrot.slane %v69_v28, 7 }
  0xb0   :  { %1994 = vmatmul.bf16.vlgmr.msrb.gmra.mxu3 %v1074_v47  ;;  %v870_v47 = vunpack.c.l.b16 %v786_v40  ;;  %2432 = vmatpush.bf16.msra.mxu0 %v6235_v61 }
  0xb1   :  { %2172 = vmatmul.bf16.vlgmr.msrb.gmra.mxu1 %v1076_v51  ;;  %v133_v51 = vrot.slane %v69_v28, 1  ;;  %v7081_v26 = vpack.c.b16 %v868_v50, %v864_v34  ;;  %v358_v28 = vsel %vm318_vm0, %v197_v33, %v261_v1  ;;  %v788_v1 = vrot.slane %v6755_v29, 1 }
  0xb2   :  { %v1768_v42 = vpop.f32.mrf.mxu2  ;;  %v1082_v40 = vpack.c.b16 %v870_v47, %v868_v50  ;;  %v398_v48 = vpack.c.bf16 %v358_v28, %v358_v28  ;;  %v9717_v28 = vunpack.c.l.b16 %v6802_v22  ;;  %v6218_v22 = vld [vmem:[#allocation5 + $0x1a8] sm:$0xff] }
  0xb3   :  { %v1857_v30 = vpop.f32.mrf.mxu3  ;;  %2255 = vmatpush.bf16.msra.mxu2 %v6218_v22 }
  0xb4   :  { %v7076_v59 = vadd.f32 %v1857_v30, %v1768_v42  ;;  %v1730_v54 = vpop.f32.mrf.mxu0  ;;  %v9715_v42 = vunpack.c.l.b16 %v6708_v41  ;;  %v820_v50 = vunpack.c.l.b16 %v398_v48 }
  0xb6   :  { %v1819_v45 = vpop.f32.mrf.mxu1  ;;  %v1081_v30 = vpack.c.b16 %v9715_v42, %v9714_v15 }
  0xb7   :  { %v7079_v10 = vadd.f32 %v1819_v45, %v1730_v54  ;;  %v326_v45 = vsel %vm318_vm0, %v133_v51, %v197_v33 }
  0xb8   :  { %v397_v27 = vpack.c.bf16 %v326_v45, %v326_v45 }
  0xba   :  { %v1770_v4 = vpop.f32.mrf.mxu2  ;;  %v7097_v34 = vunpack.c.l.b16 %v397_v27 }
  0xbb   :  { %v1859_v32 = vpop.f32.mrf.mxu3 }
  0xbc   :  { %v7089_v54 = vadd.f32 %v1859_v32, %v1770_v4  ;;  %v1733_v38 = vpop.f32.mrf.mxu0  ;;  %v787_v32 = vrot.slane %v6671_v17, 1  ;;  %v9716_v17 = vunpack.c.l.b16 %v6726_v58  ;;  %v6226_v58 = vld [vmem:[#allocation5 + $0x1e8] sm:$0xff]  ;;  %v1092_v22 = vpack.c.b16 %v7097_v34, %v6728_v6 }
  0xbd   :  { %2344 = vmatpush.bf16.msra.mxu3 %v6226_v58 }
  0xbe   :  { %v1822_v61 = vpop.f32.mrf.mxu1  ;;  %v872_v42 = vunpack.c.l.b16 %v787_v32 }
  0xbf   :  { %v7093_v39 = vadd.f32 %v1822_v61, %v1733_v38  ;;  %1910 = vmatmul.bf16.gmra.mxu2 %v7081_v26  ;;  %2088 = vmatmul.bf16.gmra.mxu0 %v1081_v30  ;;  %v827_v30 = vpack.c.b16 %v820_v50, %v7097_v34  ;;  %v1087_v61 = vpack.c.b16 %v9717_v28, %v9716_v17 }
  0xc0   :  { %1999 = vmatmul.bf16.gmra.mxu3 %v1080_v0  ;;  %v874_v0 = vunpack.c.l.b16 %v788_v1  ;;  %v7105_v45 = vpack.c.b16 %v872_v42, %v870_v47 }
  0xc1   :  { %2177 = vmatmul.bf16.gmra.mxu1 %v1082_v40  ;;  %v834_v27 = vshll.u32 %v827_v30, 16  ;;  %v832_v47 = vshrl.u32 %v827_v30, 16 }
  0xc2   :  { %v1773_v55 = vpop.f32.mrf.mxu2 }
  0xc3   :  { %v1862_v41 = vpop.f32.mrf.mxu3 }
  0xc4   :  { %v7099_v51 = vadd.f32 %v1862_v41, %v1773_v55  ;;  %v1735_v33 = vpop.f32.mrf.mxu0  ;;  %v1086_v55 = vpack.c.b16 %v6710_v5, %v6636_v56  ;;  %v1088_v41 = vpack.c.b16 %v874_v0, %v872_v42 }
  0xc6   :  { %v1824_v4 = vpop.f32.mrf.mxu1 }
  0xc7   :  { %v7102_v15 = vadd.f32 %v1824_v4, %v1735_v33  ;;  %v836_v33 = vrot.slane %v834_v27, 1 }
  0xc9   :  { %v7119_v56 = vor.u32 %v836_v33, %v832_v47 }
  0xca   :  { %v1775_v38 = vpop.f32.mrf.mxu2 }
  0xcb   :  { %v1864_v40 = vpop.f32.mrf.mxu3  ;;  %9718 = vst [vmem:[#allocation77_spill] sm:$0xff] %v7119_v56 }
  0xcc   :  { %v7111_v48 = vadd.f32 %v1864_v40, %v1775_v38  ;;  %v1738_v29 = vpop.f32.mrf.mxu0  ;;  %v789_v38 = vrot.slane %v6758_v57, 1  ;;  %v859_v40 = vrot.slane %v827_v30, 1 }
  0xce   :  { %v1827_v32 = vpop.f32.mrf.mxu1  ;;  %v7125_v27 = vunpack.c.l.b16 %v789_v38 }
  0xcf   :  { %v7115_v50 = vadd.f32 %v1827_v32, %v1738_v29  ;;  %1915 = vmatmul.bf16.gmra.mxu2 %v7105_v45  ;;  %2093 = vmatmul.bf16.gmra.mxu0 %v1087_v61  ;;  %v6234_v61 = vld [vmem:[#allocation5 + $0x228] sm:$0xff]  ;;  %v9527_v29 = vunpack.c.l.b16 %v7119_v56 }
  0xd0   :  { %2004 = vmatmul.bf16.gmra.mxu3 %v1086_v55  ;;  %9719 = vst [vmem:[#allocation78_spill] sm:$0xff] %v7125_v27  ;;  %v7128_v55 = vunpack.c.l.b16 %v859_v40  ;;  %2433 = vmatpush.bf16.msra.mxu0 %v6234_v61  ;;  %v7131_v57 = vpack.c.b16 %v7125_v27, %v874_v0  ;;  %v791_v40 = vrot.slane %v6828_v21, 1  ;;  %v9726_v21 = vld [vmem:[#allocation40_spill] sm:$0xff] }
  0xd1   :  { %2182 = vmatmul.bf16.gmra.mxu1 %v1088_v41  ;;  %v1093_v30 = vpack.c.b16 %v9527_v29, %v6822_v18  ;;  %v9725_v18 = vld [vmem:[#allocation41_spill] sm:$0xff] }
  0xd2   :  { %v1778_v1 = vpop.f32.mrf.mxu2  ;;  %9720 = vst [vmem:[#allocation79_spill] sm:$0xff] %v7128_v55  ;;  %v1094_v58 = vpack.c.b16 %v7128_v55, %v7125_v27 }
  0xd3   :  { %v1867_v4 = vpop.f32.mrf.mxu3 }
  0xd4   :  { %v7121_v5 = vadd.f32 %v1867_v4, %v1778_v1  ;;  %v1740_v42 = vpop.f32.mrf.mxu0 }
  0xd6   :  { %v1829_v17 = vpop.f32.mrf.mxu1 }
  0xd7   :  { %v7123_v28 = vadd.f32 %v1829_v17, %v1740_v42  ;;  %v790_v42 = vrot.slane %v6825_v2, 1 }
  0xd9   :  { %v880_v29 = vunpack.c.l.b16 %v790_v42  ;;  %v6217_v42 = vld [vmem:[#allocation5 + $0x1a0] sm:$0xff] }
  0xda   :  { %v1780_v41 = vpop.f32.mrf.mxu2  ;;  %2256 = vmatpush.bf16.msra.mxu2 %v6217_v42 }
  0xdb   :  { %v1869_v32 = vpop.f32.mrf.mxu3 }
  0xdc   :  { %v7136_v47 = vadd.f32 %v1869_v32, %v1780_v41  ;;  %v1743_v33 = vpop.f32.mrf.mxu0 }
  0xde   :  { %v1832_v1 = vpop.f32.mrf.mxu1 }
  0xdf   :  { %v7142_v4 = vadd.f32 %v1832_v1, %v1743_v33  ;;  %1920 = vmatmul.bf16.gmra.mxu2 %v7131_v57  ;;  %2098 = vmatmul.bf16.gmra.mxu0 %v1093_v30  ;;  %v882_v33 = vunpack.c.l.b16 %v791_v40  ;;  %v9722_v30 = vunpack.c.l.b16 %v6870_v37  ;;  %v6225_v40 = vld [vmem:[#allocation5 + $0x1e0] sm:$0xff] }
  0xe0   :  { %2009 = vmatmul.bf16.gmra.mxu3 %v1092_v22  ;;  %v9723_v22 = vld [vmem:[#allocation58_spill] sm:$0xff] }
  0xe1   :  { %2187 = vmatmul.bf16.gmra.mxu1 %v1094_v58  ;;  %v1100_v12 = vpack.c.b16 %v882_v33, %v880_v29  ;;  %v1102_v58 = vpack.c.b16 %v9723_v22, %v9722_v30  ;;  %2345 = vmatpush.bf16.msra.mxu3 %v6225_v40 }
  0xe2   :  { %v1783_v0 = vpop.f32.mrf.mxu2 }
  0xe3   :  { %v1872_v38 = vpop.f32.mrf.mxu3 }
  0xe4   :  { %v7147_v17 = vadd.f32 %v1872_v38, %v1783_v0  ;;  %v1745_v61 = vpop.f32.mrf.mxu0  ;;  %v1101_v0 = vpack.c.b16 %v9726_v21, %v9725_v18  ;;  %v1103_v38 = vpack.c.b16 %v880_v29, %v882_v33  ;;  %v793_v18 = vrot.slane %v6937_v46, 1 }
  0xe6   :  { %9721 = vst [vmem:[#allocation80_spill] sm:$0xff] %v7147_v17  ;;  %v1834_v41 = vpop.f32.mrf.mxu1 }
  0xe7   :  { %v7149_v32 = vadd.f32 %v1834_v41, %v1745_v61 }
  0xea   :  { %v1785_v1 = vpop.f32.mrf.mxu2 }
  0xeb   :  { %v1874_v63 = vpop.f32.mrf.mxu3 }
  0xec   :  { %v7154_v13 = vadd.f32 %v1874_v63, %v1785_v1  ;;  %v1748_v2 = vpop.f32.mrf.mxu0  ;;  %v9727_v63 = vld [vmem:[#allocation56_spill] sm:$0xff] }
  0xed   :  { %v792_v41 = vrot.slane %v9727_v63, 1  ;;  %v9730_v63 = vld [vmem:[#allocation60_spill] sm:$0xff] }
  0xee   :  { %9724 = vst [vmem:[#allocation58_spill] sm:$0xff] %v7154_v13  ;;  %v1837_v17 = vpop.f32.mrf.mxu1  ;;  %v9731_v46 = vunpack.c.l.b16 %v9730_v63 }
  0xef   :  { %v7158_v56 = vadd.f32 %v1837_v17, %v1748_v2  ;;  %1925 = vmatmul.bf16.gmra.mxu2 %v1100_v12  ;;  %2103 = vmatmul.bf16.gmra.mxu0 %v1102_v58  ;;  %v77_v17 = vld [vmem:[#allocation2 + $0x78] sm:$0xff]  ;;  %v6233_v12 = vld [vmem:[#allocation5 + $0x220] sm:$0xff]  ;;  %v884_v58 = vunpack.c.l.b16 %v792_v41  ;;  %v886_v2 = vunpack.c.l.b16 %v793_v18 }
  0xf0   :  { %2014 = vmatmul.bf16.gmra.mxu3 %v1101_v0  ;;  %2434 = vmatpush.bf16.msra.mxu0 %v6233_v12  ;;  %v141_v21 = vrot.slane %v77_v17, 1  ;;  %v205_v0 = vrot.slane %v77_v17, 7 }
  0xf1   :  { %2192 = vmatmul.bf16.gmra.mxu1 %v1103_v38  ;;  %v269_v38 = vrot.slane %v77_v17, 5  ;;  %v7166_v13 = vpack.c.b16 %v884_v58, %v880_v29  ;;  %v1109_v18 = vpack.c.b16 %v886_v2, %v884_v58 }
  0xf2   :  { %v1788_v61 = vpop.f32.mrf.mxu2  ;;  %v334_v12 = vsel %vm318_vm0, %v141_v21, %v205_v0 }
  0xf3   :  { %v1877_v37 = vpop.f32.mrf.mxu3  ;;  %v366_v17 = vsel %vm318_vm0, %v205_v0, %v269_v38 }
  0xf4   :  { %v7161_v1 = vadd.f32 %v1877_v37, %v1788_v61  ;;  %v1750_v30 = vpop.f32.mrf.mxu0  ;;  %v9729_v61 = vld [vmem:[#allocation53_spill] sm:$0xff]  ;;  %v414_v29 = vpack.c.bf16 %v366_v17, %v366_v17 }
  0xf5   :  { %v1107_v37 = vpack.c.b16 %v6914_v14, %v9729_v61  ;;  %v413_v14 = vpack.c.bf16 %v334_v12, %v334_v12  ;;  %v9737_v12 = vunpack.c.l.b16 %v7036_v36  ;;  %v6224_v36 = vld [vmem:[#allocation5 + $0x1d8] sm:$0xff] }
  0xf6   :  { %9728 = vst [vmem:[#allocation41_spill] sm:$0xff] %v7161_v1  ;;  %v1839_v33 = vpop.f32.mrf.mxu1  ;;  %v9732_v1 = vunpack.c.l.b16 %v6974_v16  ;;  %v822_v58 = vunpack.c.l.b16 %v414_v29  ;;  %2346 = vmatpush.bf16.msra.mxu3 %v6224_v36 }
  0xf7   :  { %v7164_v22 = vadd.f32 %v1839_v33, %v1750_v30 }
  0xf8   :  { %v1108_v30 = vpack.c.b16 %v9732_v1, %v9731_v46 }
  0xfa   :  { %v1790_v42 = vpop.f32.mrf.mxu2 }
  0xfb   :  { %v1879_v40 = vpop.f32.mrf.mxu3 }
  0xfc   :  { %v7174_v33 = vadd.f32 %v1879_v40, %v1790_v42  ;;  %v1753_v41 = vpop.f32.mrf.mxu0  ;;  %v794_v42 = vrot.slane %v6940_v25, 1  ;;  %v7182_v40 = vunpack.c.l.b16 %v413_v14  ;;  %v9736_v25 = vunpack.c.l.b16 %v6978_v7  ;;  %v6216_v7 = vld [vmem:[#allocation5 + $0x198] sm:$0xff] }
  0xfd   :  { %2257 = vmatpush.bf16.msra.mxu2 %v6216_v7 }
  0xfe   :  { %v1842_v27 = vpop.f32.mrf.mxu1  ;;  %9733 = vst [vmem:[#allocation40_spill] sm:$0xff] %v7182_v40  ;;  %v888_v63 = vunpack.c.l.b16 %v794_v42  ;;  %v828_v46 = vpack.c.b16 %v822_v58, %v7182_v40  ;;  %v1114_v17 = vpack.c.b16 %v9737_v12, %v9736_v25  ;;  %v1119_v7 = vpack.c.b16 %v7182_v40, %v6980_v35 }
  0xff   :  { %v7178_v55 = vadd.f32 %v1842_v27, %v1753_v41  ;;  %1930 = vmatmul.bf16.gmra.mxu2 %v7166_v13  ;;  %2108 = vmatmul.bf16.gmra.mxu0 %v1108_v30  ;;  %v795_v27 = vrot.slane %v6997_v9, 1 }
 0x100   :  { %2019 = vmatmul.bf16.gmra.mxu3 %v1107_v37  ;;  %v841_v14 = vshll.u32 %v828_v46, 16 }
 0x101   :  { %2197 = vmatmul.bf16.gmra.mxu1 %v1109_v18  ;;  %v890_v37 = vunpack.c.l.b16 %v795_v27  ;;  %v7190_v18 = vpack.c.b16 %v888_v63, %v886_v2  ;;  %v839_v2 = vshrl.u32 %v828_v46, 16 }
 0x102   :  { %v1793_v16 = vpop.f32.mrf.mxu2 }
 0x103   :  { %v1882_v1 = vpop.f32.mrf.mxu3  ;;  %9735 = vst [vmem:[#allocation53_spill] sm:$0xff] %v7190_v18 }
 0x104   :  { %v7184_v21 = vadd.f32 %v1882_v1, %v1793_v16  ;;  %v1755_v0 = vpop.f32.mrf.mxu0  ;;  %v1113_v16 = vpack.c.b16 %v6976_v52, %v6922_v23  ;;  %v1115_v1 = vpack.c.b16 %v890_v37, %v888_v63 }
 0x106   :  { %9734 = vst [vmem:[#allocation56_spill] sm:$0xff] %v7184_v21  ;;  %v1844_v38 = vpop.f32.mrf.mxu1  ;;  %v9757_v21 = vld [vmem:[#allocation21_spill] sm:$0xff] }
 0x107   :  { %v7187_v61 = vadd.f32 %v1844_v38, %v1755_v0  ;;  %v843_v0 = vrot.slane %v841_v14, 1 }
 0x109   :  { %v7204_v23 = vor.u32 %v843_v0, %v839_v2 }
 0x10a   :  { %v1795_v30 = vpop.f32.mrf.mxu2 }
 0x10b   :  { %v1884_v41 = vpop.f32.mrf.mxu3  ;;  %9739 = vst [vmem:[#allocation81_spill] sm:$0xff] %v7204_v23  ;;  %v9535_v14 = vunpack.c.l.b16 %v7204_v23 }
 0x10c   :  { %v7196_v29 = vadd.f32 %v1884_v41, %v1795_v30  ;;  %v1758_v9 = vpop.f32.mrf.mxu0  ;;  %v796_v30 = vrot.slane %v7000_v8, 1  ;;  %v860_v41 = vrot.slane %v828_v46, 1 }
 0x10d   :  { %v1120_v2 = vpack.c.b16 %v9535_v14, %v7042_v20 }
 0x10e   :  { %9738 = vst [vmem:[#allocation60_spill] sm:$0xff] %v7196_v29  ;;  %v1847_v42 = vpop.f32.mrf.mxu1 }
 0x10f   :  { %v7200_v58 = vadd.f32 %v1847_v42, %v1758_v9  ;;  %1935 = vmatmul.bf16.gmra.mxu2 %v7190_v18  ;;  %2113 = vmatmul.bf16.gmra.mxu0 %v1114_v17  ;;  %v7210_v17 = vunpack.c.l.b16 %v796_v30  ;;  %v7213_v9 = vunpack.c.l.b16 %v860_v41 }
 0x110   :  { %2024 = vmatmul.bf16.gmra.mxu3 %v1113_v16  ;;  %v6232_v16 = vld [vmem:[#allocation5 + $0x218] sm:$0xff] }
 0x111   :  { %2202 = vmatmul.bf16.gmra.mxu1 %v1115_v1  ;;  %9741 = vst [vmem:[#allocation83_spill] sm:$0xff] %v7210_v17  ;;  %v7216_v8 = vpack.c.b16 %v7210_v17, %v890_v37  ;;  %2435 = vmatpush.bf16.msra.mxu0 %v6232_v16  ;;  %v1121_v36 = vpack.c.b16 %v7213_v9, %v7210_v17 }
 0x112   :  { %v1798_v27 = vpop.f32.mrf.mxu2  ;;  %9742 = vst [vmem:[#allocation84_spill] sm:$0xff] %v7213_v9 }
 0x113   :  { %v1887_v38 = vpop.f32.mrf.mxu3  ;;  %9743 = vst [vmem:[#allocation85_spill] sm:$0xff] %v7216_v8 }
 0x114   :  { %v7206_v52 = vadd.f32 %v1887_v38, %v1798_v27  ;;  %v1760_v63 = vpop.f32.mrf.mxu0 }
 0x116   :  { %9740 = vst [vmem:[#allocation82_spill] sm:$0xff] %v7206_v52  ;;  %v1849_v25 = vpop.f32.mrf.mxu1 }
 0x117   :  { %v7208_v12 = vadd.f32 %v1849_v25, %v1760_v63  ;;  %v9745_v63 = vld [vmem:[#allocation14_spill] sm:$0xff]  ;;  %v9746_v25 = vld [vmem:[#allocation15_spill] sm:$0xff] }
 0x118   :  { %v797_v41 = vrot.slane %v9745_v63, 1  ;;  %v798_v16 = vrot.slane %v9746_v25, 1  ;;  %v9753_v25 = vld [vmem:[#allocation12_spill] sm:$0xff] }
 0x11a   :  { %v1800_v1 = vpop.f32.mrf.mxu2  ;;  %v896_v23 = vunpack.c.l.b16 %v797_v41  ;;  %v6223_v41 = vld [vmem:[#allocation5 + $0x1d0] sm:$0xff] }
 0x11b   :  { %v1889_v42 = vpop.f32.mrf.mxu3  ;;  %2347 = vmatpush.bf16.msra.mxu3 %v6223_v41 }
 0x11c   :  { %v7221_v46 = vadd.f32 %v1889_v42, %v1800_v1  ;;  %v1763_v0 = vpop.f32.mrf.mxu0 }
 0x11e   :  { %9744 = vst [vmem:[#allocation86_spill] sm:$0xff] %v7221_v46  ;;  %v1852_v27 = vpop.f32.mrf.mxu1  ;;  %v9752_v46 = vld [vmem:[#allocation13_spill] sm:$0xff] }
 0x11f   :  { %v7227_v38 = vadd.f32 %v1852_v27, %v1763_v0  ;;  %1940 = vmatmul.bf16.gmra.mxu2 %v7216_v8  ;;  %2118 = vmatmul.bf16.gmra.mxu0 %v1120_v2  ;;  %v898_v0 = vunpack.c.l.b16 %v798_v16  ;;  %v9748_v2 = vld [vmem:[#allocation16_spill] sm:$0xff] }
 0x120   :  { %2029 = vmatmul.bf16.gmra.mxu3 %v1119_v7  ;;  %v9749_v7 = vunpack.c.l.b16 %v9748_v2 }
 0x121   :  { %2207 = vmatmul.bf16.gmra.mxu1 %v1121_v36  ;;  %v1127_v9 = vpack.c.b16 %v898_v0, %v896_v23  ;;  %v9750_v36 = vld [vmem:[#allocation18_spill] sm:$0xff] }
 0x122   :  { %v1803_v37 = vpop.f32.mrf.mxu2  ;;  %v1129_v35 = vpack.c.b16 %v9750_v36, %v9749_v7  ;;  %v9754_v7 = vld [vmem:[#allocation19_spill] sm:$0xff] }
 0x123   :  { %v1892_v30 = vpop.f32.mrf.mxu3  ;;  %v9755_v36 = vld [vmem:[#allocation23_spill] sm:$0xff] }
 0x124   :  { %v7232_v1 = vadd.f32 %v1892_v30, %v1803_v37  ;;  %v1765_v42 = vpop.f32.mrf.mxu0  ;;  %v1128_v37 = vpack.c.b16 %v9753_v25, %v9752_v46  ;;  %v1130_v30 = vpack.c.b16 %v896_v23, %v898_v0  ;;  %v85_v25 = vld [vmem:[#allocation2 + $0xb8] sm:$0xff] }
 0x125   :  { %v213_v52 = vrot.slane %v85_v25, 7  ;;  %v277_v8 = vrot.slane %v85_v25, 5 }
 0x126   :  { %9747 = vst [vmem:[#allocation14_spill] sm:$0xff] %v7232_v1  ;;  %v1854_v14 = vpop.f32.mrf.mxu1 }
 0x127   :  { %v7234_v20 = vadd.f32 %v1854_v14, %v1765_v42  ;;  %v6215_v14 = vld [vmem:[#allocation5 + $0x190] sm:$0xff] }
 0x128   :  { %2258 = vmatpush.bf16.msra.mxu2 %v6215_v14  ;;  %v6231_v14 = vld [vmem:[#allocation5 + $0x210] sm:$0xff] }
 0x129   :  { %2436 = vmatpush.bf16.msra.mxu0 %v6231_v14 }
 0x12a   :  { %v1805_v27 = vpop.f32.mrf.mxu2 }
 0x12b   :  { %v1894_v17 = vpop.f32.mrf.mxu3 }
 0x12c   :  { %v7239_v40 = vadd.f32 %v1894_v17, %v1805_v27  ;;  %v2084_v63 = vpop.f32.mrf.mxu0  ;;  %v799_v17 = vrot.slane %v9754_v7, 1 }
 0x12e   :  { %9751 = vst [vmem:[#allocation15_spill] sm:$0xff] %v7239_v40  ;;  %v2173_v1 = vpop.f32.mrf.mxu1  ;;  %v800_v40 = vrot.slane %v9755_v36, 1  ;;  %v9758_v36 = vunpack.c.l.b16 %v9757_v21 }
 0x12f   :  { %1945 = vmatmul.bf16.gmra.mxu2 %v1127_v9  ;;  %2123 = vmatmul.bf16.gmra.mxu0 %v1129_v35  ;;  %v900_v35 = vunpack.c.l.b16 %v799_v17  ;;  %v9762_v17 = vld [vmem:[#allocation20_spill] sm:$0xff] }
 0x130   :  { %2034 = vmatmul.bf16.gmra.mxu3 %v1128_v37  ;;  %v902_v37 = vunpack.c.l.b16 %v800_v40  ;;  %v9761_v40 = vld [vmem:[#allocation17_spill] sm:$0xff] }
 0x131   :  { %2212 = vmatmul.bf16.gmra.mxu1 %v1130_v30  ;;  %v149_v30 = vrot.slane %v85_v25, 1  ;;  %v7249_v41 = vpack.c.b16 %v900_v35, %v896_v23 }
 0x132   :  { %v1906_v16 = vpop.f32.mrf.mxu2  ;;  %v1136_v25 = vpack.c.b16 %v902_v37, %v900_v35 }
 0x133   :  { %v1907_v42 = vadd.f32 %v1906_v16, %v7073_v49  ;;  %v1995_v2 = vpop.f32.mrf.mxu3 }
 0x134   :  { %v2086_v27 = vpop.f32.mrf.mxu0 }
 0x135   :  { %v1996_v46 = vadd.f32 %v1995_v2, %v1907_v42  ;;  %v9759_v42 = vld [vmem:[#allocation29_spill] sm:$0xff] }
 0x136   :  { %v2175_v0 = vpop.f32.mrf.mxu1  ;;  %v9760_v2 = vunpack.c.l.b16 %v9759_v42 }
 0x137   :  { %v2085_v9 = vadd.f32 %v2084_v63, %v1996_v46  ;;  %v1134_v46 = vpack.c.b16 %v9762_v17, %v9761_v40 }
 0x138   :  { %v1135_v18 = vpack.c.b16 %v9760_v2, %v9758_v36  ;;  %v9763_v2 = vld [vmem:[#allocation24_spill] sm:$0xff] }
 0x139   :  { %v7246_v29 = vadd.f32 %v2173_v1, %v2085_v9  ;;  %v342_v1 = vsel %vm318_vm0, %v149_v30, %v213_v52  ;;  %v374_v9 = vsel %vm318_vm0, %v213_v52, %v277_v8  ;;  %v801_v30 = vrot.slane %v9763_v2, 1 }
 0x13a   :  { %v1908_v49 = vpop.f32.mrf.mxu2  ;;  %v429_v21 = vpack.c.bf16 %v342_v1, %v342_v1 }
 0x13b   :  { %9756 = vst [vmem:[#allocation16_spill] sm:$0xff] %v7246_v29  ;;  %v1909_v16 = vadd.f32 %v1908_v49, %v7079_v10  ;;  %v1997_v7 = vpop.f32.mrf.mxu3  ;;  %v430_v49 = vpack.c.bf16 %v374_v9, %v374_v9  ;;  %v904_v17 = vunpack.c.l.b16 %v801_v30  ;;  %v9771_v30 = vld [vmem:[#allocation31_spill] sm:$0xff] }
 0x13c   :  { %v2089_v63 = vpop.f32.mrf.mxu0  ;;  %v7264_v40 = vunpack.c.l.b16 %v429_v21  ;;  %v9766_v21 = vld [vmem:[#allocation30_spill] sm:$0xff] }
 0x13d   :  { %v1998_v29 = vadd.f32 %v1997_v7, %v1909_v16  ;;  %v824_v52 = vunpack.c.l.b16 %v430_v49  ;;  %v9765_v16 = vld [vmem:[#allocation33_spill] sm:$0xff]  ;;  %v9767_v49 = vunpack.c.l.b16 %v9766_v21 }
 0x13e   :  { %v2178_v10 = vpop.f32.mrf.mxu1  ;;  %9764 = vst [vmem:[#allocation18_spill] sm:$0xff] %v7264_v40  ;;  %v802_v7 = vrot.slane %v9765_v16, 1 }
 0x13f   :  { %1950 = vmatmul.bf16.gmra.mxu2 %v7249_v41  ;;  %2128 = vmatmul.bf16.gmra.mxu0 %v1135_v18  ;;  %v2087_v23 = vadd.f32 %v2086_v27, %v1998_v29 }
 0x140   :  { %2039 = vmatmul.bf16.gmra.mxu3 %v1134_v46  ;;  %v829_v46 = vpack.c.b16 %v824_v52, %v7264_v40 }
 0x141   :  { %2217 = vmatmul.bf16.gmra.mxu1 %v1136_v25  ;;  %v7260_v14 = vadd.f32 %v2175_v0, %v2087_v23  ;;  %v906_v0 = vunpack.c.l.b16 %v802_v7  ;;  %v7271_v23 = vpack.c.b16 %v904_v17, %v902_v37 }
 0x142   :  { %v1911_v36 = vpop.f32.mrf.mxu2 }
 0x143   :  { %v1912_v42 = vadd.f32 %v1911_v36, %v7093_v39  ;;  %v2000_v35 = vpop.f32.mrf.mxu3  ;;  %v9768_v36 = vld [vmem:[#allocation39_spill] sm:$0xff]  ;;  %v1142_v52 = vpack.c.b16 %v906_v0, %v904_v17  ;;  %v9772_v17 = vld [vmem:[#allocation34_spill] sm:$0xff] }
 0x144   :  { %v2091_v8 = vpop.f32.mrf.mxu0  ;;  %v9769_v2 = vunpack.c.l.b16 %v9768_v36 }
 0x145   :  { %v2001_v18 = vadd.f32 %v2000_v35, %v1912_v42  ;;  %v848_v42 = vshll.u32 %v829_v46, 16 }
 0x146   :  { %v2180_v29 = vpop.f32.mrf.mxu1  ;;  %v1141_v16 = vpack.c.b16 %v9769_v2, %v9767_v49  ;;  %v6222_v49 = vld [vmem:[#allocation5 + $0x1c8] sm:$0xff] }
 0x147   :  { %v2090_v27 = vadd.f32 %v2089_v63, %v2001_v18  ;;  %v9770_v63 = vld [vmem:[#allocation22_spill] sm:$0xff]  ;;  %2348 = vmatpush.bf16.msra.mxu3 %v6222_v49 }
 0x148   :  { %v1140_v18 = vpack.c.b16 %v9771_v30, %v9770_v63 }
 0x149   :  { %v7268_v25 = vadd.f32 %v2178_v10, %v2090_v27  ;;  %v850_v27 = vrot.slane %v848_v42, 1 }
 0x14a   :  { %v1913_v1 = vpop.f32.mrf.mxu2 }
 0x14b   :  { %v1914_v39 = vadd.f32 %v1913_v1, %v7102_v15  ;;  %v2002_v9 = vpop.f32.mrf.mxu3  ;;  %v846_v15 = vshrl.u32 %v829_v46, 16  ;;  %v6214_v1 = vld [vmem:[#allocation5 + $0x188] sm:$0xff] }
 0x14c   :  { %v2094_v35 = vpop.f32.mrf.mxu0  ;;  %2259 = vmatpush.bf16.msra.mxu2 %v6214_v1 }
 0x14d   :  { %v2003_v7 = vadd.f32 %v2002_v9, %v1914_v39  ;;  %v803_v39 = vrot.slane %v9772_v17, 1  ;;  %v7284_v9 = vor.u32 %v850_v27, %v846_v15 }
 0x14e   :  { %v2183_v37 = vpop.f32.mrf.mxu1 }
 0x14f   :  { %1955 = vmatmul.bf16.gmra.mxu2 %v7271_v23  ;;  %2133 = vmatmul.bf16.gmra.mxu0 %v1141_v16  ;;  %v2092_v10 = vadd.f32 %v2091_v8, %v2003_v7  ;;  %9773 = vst [vmem:[#allocation13_spill] sm:$0xff] %v7284_v9  ;;  %v861_v16 = vrot.slane %v829_v46, 1  ;;  %v9776_v46 = vld [vmem:[#allocation45_spill] sm:$0xff] }
 0x150   :  { %2044 = vmatmul.bf16.gmra.mxu3 %v1140_v18  ;;  %v7286_v18 = vunpack.c.l.b16 %v803_v39 }
 0x151   :  { %2222 = vmatmul.bf16.gmra.mxu1 %v1142_v52  ;;  %v7280_v21 = vadd.f32 %v2180_v29, %v2092_v10  ;;  %v9544_v29 = vunpack.c.l.b16 %v7284_v9  ;;  %v7289_v52 = vunpack.c.l.b16 %v861_v16  ;;  %v6230_v10 = vld [vmem:[#allocation5 + $0x208] sm:$0xff] }
 0x152   :  { %v1916_v36 = vpop.f32.mrf.mxu2  ;;  %9774 = vst [vmem:[#allocation12_spill] sm:$0xff] %v7286_v18  ;;  %v7295_v27 = vpack.c.b16 %v7286_v18, %v906_v0  ;;  %2437 = vmatpush.bf16.msra.mxu0 %v6230_v10 }
 0x153   :  { %v1917_v2 = vadd.f32 %v1916_v36, %v7115_v50  ;;  %v2005_v63 = vpop.f32.mrf.mxu3  ;;  %9775 = vst [vmem:[#allocation19_spill] sm:$0xff] %v7289_v52 }
 0x154   :  { %v2096_v8 = vpop.f32.mrf.mxu0 }
 0x155   :  { %v2006_v42 = vadd.f32 %v2005_v63, %v1917_v2  ;;  %v9777_v2 = vld [vmem:[#allocation32_spill] sm:$0xff] }
 0x156   :  { %v2185_v1 = vpop.f32.mrf.mxu1  ;;  %v1146_v63 = vpack.c.b16 %v7264_v40, %v9777_v2  ;;  %v9784_v2 = vld [vmem:[#allocation43_spill] sm:$0xff] }
 0x157   :  { %v2095_v30 = vadd.f32 %v2094_v35, %v2006_v42  ;;  %v1147_v35 = vpack.c.b16 %v9544_v29, %v9776_v46 }
 0x159   :  { %v7291_v7 = vadd.f32 %v2183_v37, %v2095_v30  ;;  %v1148_v37 = vpack.c.b16 %v7289_v52, %v7286_v18  ;;  %v9779_v30 = vld [vmem:[#allocation44_spill] sm:$0xff] }
 0x15a   :  { %v1918_v50 = vpop.f32.mrf.mxu2  ;;  %v804_v10 = vrot.slane %v9779_v30, 1 }
 0x15b   :  { %v1919_v36 = vadd.f32 %v1918_v50, %v7123_v28  ;;  %v2007_v15 = vpop.f32.mrf.mxu3  ;;  %v9780_v50 = vld [vmem:[#allocation46_spill] sm:$0xff] }
 0x15c   :  { %v2099_v49 = vpop.f32.mrf.mxu0  ;;  %v805_v29 = vrot.slane %v9780_v50, 1  ;;  %v9785_v50 = vld [vmem:[#allocation42_spill] sm:$0xff] }
 0x15d   :  { %v2008_v17 = vadd.f32 %v2007_v15, %v1919_v36  ;;  %v912_v15 = vunpack.c.l.b16 %v804_v10  ;;  %v1155_v40 = vpack.c.b16 %v9785_v50, %v9784_v2  ;;  %v9787_v2 = vld [vmem:[#allocation61_spill] sm:$0xff]  ;;  %v6229_v50 = vld [vmem:[#allocation5 + $0x200] sm:$0xff] }
 0x15e   :  { %v2188_v9 = vpop.f32.mrf.mxu1  ;;  %v914_v52 = vunpack.c.l.b16 %v805_v29  ;;  %v6213_v29 = vld [vmem:[#allocation5 + $0x180] sm:$0xff]  ;;  %2438 = vmatpush.bf16.msra.mxu0 %v6229_v50 }
 0x15f   :  { %1960 = vmatmul.bf16.gmra.mxu2 %v7295_v27  ;;  %2138 = vmatmul.bf16.gmra.mxu0 %v1147_v35  ;;  %v2097_v28 = vadd.f32 %v2096_v8, %v2008_v17  ;;  %v9781_v17 = vld [vmem:[#allocation54_spill] sm:$0xff] }
 0x160   :  { %2049 = vmatmul.bf16.gmra.mxu3 %v1146_v63  ;;  %2260 = vmatpush.bf16.msra.mxu2 %v6213_v29  ;;  %v9788_v29 = vld [vmem:[#allocation59_spill] sm:$0xff] }
 0x161   :  { %2227 = vmatmul.bf16.gmra.mxu1 %v1148_v37  ;;  %v7305_v0 = vadd.f32 %v2185_v1, %v2097_v28  ;;  %v1154_v37 = vpack.c.b16 %v914_v52, %v912_v15  ;;  %v9783_v28 = vld [vmem:[#allocation57_spill] sm:$0xff] }
 0x162   :  { %v1921_v39 = vpop.f32.mrf.mxu2 }
 0x163   :  { %9778 = vst [vmem:[#allocation23_spill] sm:$0xff] %v7305_v0  ;;  %v1922_v16 = vadd.f32 %v1921_v39, %v7142_v4  ;;  %v2010_v42 = vpop.f32.mrf.mxu3  ;;  %v9782_v4 = vunpack.c.l.b16 %v9781_v17  ;;  %v1157_v0 = vpack.c.b16 %v912_v15, %v914_v52 }
 0x164   :  { %v2101_v46 = vpop.f32.mrf.mxu0 }
 0x165   :  { %v2011_v18 = vadd.f32 %v2010_v42, %v1922_v16  ;;  %v1156_v39 = vpack.c.b16 %v9783_v28, %v9782_v4 }
 0x167   :  { %v2100_v36 = vadd.f32 %v2099_v49, %v2011_v18  ;;  %v2190_v18 = vpop.f32.mrf.mxu1  ;;  %v6221_v49 = vld [vmem:[#allocation5 + $0x1c0] sm:$0xff] }
 0x168   :  { %2349 = vmatpush.bf16.msra.mxu3 %v6221_v49  ;;  %v9789_v49 = vunpack.c.l.b16 %v9788_v29 }
 0x169   :  { %v7310_v35 = vadd.f32 %v2188_v9, %v2100_v36 }
 0x16a   :  { %v1923_v8 = vpop.f32.mrf.mxu2 }
 0x16b   :  { %v1924_v1 = vadd.f32 %v1923_v8, %v7149_v32  ;;  %v2012_v63 = vpop.f32.mrf.mxu3  ;;  %v9786_v8 = vld [vmem:[#allocation55_spill] sm:$0xff] }
 0x16c   :  { %v2104_v30 = vpop.f32.mrf.mxu0  ;;  %v806_v17 = vrot.slane %v9786_v8, 1 }
 0x16d   :  { %v2013_v16 = vadd.f32 %v2012_v63, %v1924_v1  ;;  %v807_v1 = vrot.slane %v9787_v2, 1 }
 0x16f   :  { %1965 = vmatmul.bf16.gmra.mxu2 %v1154_v37  ;;  %2143 = vmatmul.bf16.gmra.mxu0 %v1156_v39  ;;  %v2102_v9 = vadd.f32 %v2101_v46, %v2013_v16  ;;  %v93_v37 = vld [vmem:[#allocation2 + $0xf8] sm:$0xff] }
 0x170   :  { %2054 = vmatmul.bf16.gmra.mxu3 %v1155_v40  ;;  %v916_v40 = vunpack.c.l.b16 %v806_v17  ;;  %v157_v4 = vrot.slane %v93_v37, 1  ;;  %v221_v28 = vrot.slane %v93_v37, 7  ;;  %v285_v39 = vrot.slane %v93_v37, 5 }
 0x171   :  { %2232 = vmatmul.bf16.gmra.mxu1 %v1157_v0  ;;  %v7318_v32 = vadd.f32 %v2190_v18, %v2102_v9  ;;  %v918_v0 = vunpack.c.l.b16 %v807_v1 }
 0x172   :  { %v1926_v42 = vpop.f32.mrf.mxu2  ;;  %v7326_v9 = vpack.c.b16 %v916_v40, %v912_v15  ;;  %v350_v2 = vsel %vm318_vm0, %v157_v4, %v221_v28  ;;  %v382_v1 = vsel %vm318_vm0, %v221_v28, %v285_v39  ;;  %v809_v39 = vrot.slane %v6990_v43, 1 }
 0x173   :  { %v1927_v10 = vadd.f32 %v1926_v42, %v7158_v56  ;;  %v2015_v36 = vpop.f32.mrf.mxu3  ;;  %v9790_v42 = vunpack.c.l.b16 %v6970_v19  ;;  %v1163_v17 = vpack.c.b16 %v918_v0, %v916_v40  ;;  %v445_v15 = vpack.c.bf16 %v350_v2, %v350_v2 }
 0x174   :  { %v2106_v52 = vpop.f32.mrf.mxu0  ;;  %v446_v37 = vpack.c.bf16 %v382_v1, %v382_v1  ;;  %v9793_v2 = vunpack.c.l.b16 %v6972_v3  ;;  %v9794_v1 = vunpack.c.l.b16 %v7034_v24 }
 0x175   :  { %v2016_v63 = vadd.f32 %v2015_v36, %v1927_v10  ;;  %v1162_v10 = vpack.c.b16 %v9790_v42, %v9789_v49  ;;  %v9791_v36 = vld [vmem:[#allocation52_spill] sm:$0xff]  ;;  %v7341_v29 = vunpack.c.l.b16 %v445_v15  ;;  %v922_v42 = vunpack.c.l.b16 %v809_v39 }
 0x176   :  { %v1161_v8 = vpack.c.b16 %v6905_v62, %v9791_v36  ;;  %v9792_v62 = vld [vmem:[#allocation62_spill] sm:$0xff]  ;;  %v826_v4 = vunpack.c.l.b16 %v446_v37  ;;  %v1167_v15 = vpack.c.b16 %v6982_v53, %v6908_v11 }
 0x177   :  { %v7323_v46 = vadd.f32 %v2104_v30, %v2016_v63  ;;  %v808_v40 = vrot.slane %v9792_v62, 1  ;;  %v810_v62 = vrot.slane %v6994_v44, 1 }
 0x178   :  { %v830_v49 = vpack.c.b16 %v826_v4, %v7341_v29 }
 0x17a   :  { %v1928_v16 = vpop.f32.mrf.mxu2  ;;  %v855_v43 = vshll.u32 %v830_v49, 16  ;;  %v862_v53 = vrot.slane %v830_v49, 1 }
 0x17b   :  { %v1929_v56 = vadd.f32 %v1928_v16, %v7164_v22  ;;  %v2017_v18 = vpop.f32.mrf.mxu3 }
 0x17c   :  { %v2109_v30 = vpop.f32.mrf.mxu0 }
 0x17d   :  { %v2018_v63 = vadd.f32 %v2017_v18, %v1929_v56 }
 0x17f   :  { %1970 = vmatmul.bf16.gmra.mxu2 %v7326_v9  ;;  %2148 = vmatmul.bf16.gmra.mxu0 %v1162_v10  ;;  %v7337_v22 = vadd.f32 %v2106_v52, %v2018_v63  ;;  %v920_v52 = vunpack.c.l.b16 %v808_v40  ;;  %v6244_v10 = vld [vmem:[#allocation7 + $0x38] sm:$0xff]  ;;  %v1168_v63 = vpack.c.b16 %v9794_v1, %v9793_v2 }
 0x180   :  { %2059 = vmatmul.bf16.gmra.mxu3 %v1161_v8  ;;  %4440 = vmatpush.bf16.msra.mxu1 %v6244_v10 }
 0x181   :  { %2237 = vmatmul.bf16.gmra.mxu1 %v1163_v17  ;;  %v7348_v17 = vpack.c.b16 %v920_v52, %v918_v0  ;;  %v1169_v37 = vpack.c.b16 %v922_v42, %v920_v52  ;;  %v853_v0 = vshrl.u32 %v830_v49, 16  ;;  %v7368_v52 = vunpack.c.l.b16 %v862_v53 }
 0x182   :  { %v1931_v19 = vpop.f32.mrf.mxu2 }
 0x183   :  { %v1932_v50 = vadd.f32 %v1931_v19, %v7178_v55  ;;  %v2020_v16 = vpop.f32.mrf.mxu3 }
 0x184   :  { %v2111_v28 = vpop.f32.mrf.mxu0 }
 0x185   :  { %v2021_v56 = vadd.f32 %v2020_v16, %v1932_v50  ;;  %v857_v50 = vrot.slane %v855_v43, 1 }
 0x187   :  { %v7344_v18 = vadd.f32 %v2109_v30, %v2021_v56  ;;  %v7361_v40 = vor.u32 %v857_v50, %v853_v0  ;;  %v7365_v56 = vunpack.c.l.b16 %v810_v62  ;;  %v9795_v62 = vld [vmem:[#allocation25_spill] sm:$0xff] }
 0x189   :  { %v1175_v2 = vpack.c.b16 %v7368_v52, %v7365_v56 }
 0x18a   :  { %v1933_v36 = vpop.f32.mrf.mxu2 }
 0x18b   :  { %v1934_v55 = vadd.f32 %v1933_v36, %v7187_v61  ;;  %v2022_v8 = vpop.f32.mrf.mxu3 }
 0x18c   :  { %v2114_v30 = vpop.f32.mrf.mxu0 }
 0x18d   :  { %v2023_v19 = vadd.f32 %v2022_v8, %v1934_v55  ;;  %v7372_v55 = vpack.c.b16 %v7365_v56, %v922_v42  ;;  %v1173_v8 = vpack.c.b16 %v7341_v29, %v6984_v31 }
 0x18f   :  { %1975 = vmatmul.bf16.gmra.mxu2 %v7348_v17  ;;  %2153 = vmatmul.bf16.gmra.mxu0 %v1168_v63  ;;  %v7357_v61 = vadd.f32 %v2111_v28, %v2023_v19  ;;  %v9549_v28 = vunpack.c.l.b16 %v7361_v40  ;;  %v6243_v19 = vld [vmem:[#allocation7 + $0x30] sm:$0xff] }
 0x190   :  { %2064 = vmatmul.bf16.gmra.mxu3 %v1167_v15  ;;  %4441 = vmatpush.bf16.msra.mxu1 %v6243_v19 }
 0x191   :  { %2242 = vmatmul.bf16.gmra.mxu1 %v1169_v37  ;;  %v1174_v44 = vpack.c.b16 %v9549_v28, %v7039_v60 }
 0x192   :  { %v1936_v3 = vpop.f32.mrf.mxu2 }
 0x193   :  { %v1937_v24 = vadd.f32 %v1936_v3, %v7200_v58  ;;  %v2025_v16 = vpop.f32.mrf.mxu3 }
 0x194   :  { %v2116_v11 = vpop.f32.mrf.mxu0 }
 0x195   :  { %v2026_v4 = vadd.f32 %v2025_v16, %v1937_v24 }
 0x197   :  { %v7363_v39 = vadd.f32 %v2114_v30, %v2026_v4 }
 0x19a   :  { %v1938_v10 = vpop.f32.mrf.mxu2 }
 0x19b   :  { %v1939_v36 = vadd.f32 %v1938_v10, %v7208_v12  ;;  %v2027_v58 = vpop.f32.mrf.mxu3 }
 0x19c   :  { %v2119_v49 = vpop.f32.mrf.mxu0 }
 0x19d   :  { %v2028_v1 = vadd.f32 %v2027_v58, %v1939_v36 }
 0x19f   :  { %1980 = vmatmul.bf16.gmra.mxu2 %v7372_v55  ;;  %2158 = vmatmul.bf16.gmra.mxu0 %v1174_v44  ;;  %v7382_v12 = vadd.f32 %v2116_v11, %v2028_v1 }
 0x1a0   :  { %2069 = vmatmul.bf16.gmra.mxu3 %v1173_v8 }
 0x1a1   :  { %2247 = vmatmul.bf16.gmra.mxu1 %v1175_v2 }
 0x1a2   :  { %v1941_v42 = vpop.f32.mrf.mxu2 }
 0x1a3   :  { %v1942_v63 = vadd.f32 %v1941_v42, %v7227_v38  ;;  %v2030_v43 = vpop.f32.mrf.mxu3  ;;  %v9796_v38 = vld [vmem:[#allocation28_spill] sm:$0xff]  ;;  %v9797_v42 = vld [vmem:[#allocation35_spill] sm:$0xff] }
 0x1a4   :  { %v2121_v30 = vpop.f32.mrf.mxu0 }
 0x1a5   :  { %v2031_v15 = vadd.f32 %v2030_v43, %v1942_v63  ;;  %v9798_v63 = vld [vmem:[#allocation38_spill] sm:$0xff] }
 0x1a7   :  { %v7385_v37 = vadd.f32 %v2119_v49, %v2031_v15 }
 0x1aa   :  { %v1943_v0 = vpop.f32.mrf.mxu2 }
 0x1ab   :  { %v1944_v50 = vadd.f32 %v1943_v0, %v7234_v20  ;;  %v2032_v3 = vpop.f32.mrf.mxu3 }
 0x1ac   :  { %v2124_v24 = vpop.f32.mrf.mxu0 }
 0x1ad   :  { %v2033_v16 = vadd.f32 %v2032_v3, %v1944_v50 }
 0x1af   :  { %2261 = vmatmul.bf16.vlgmr.msra.gmra.mxu2 %v9795_v62  ;;  %2439 = vmatmul.bf16.vlgmr.msra.gmra.mxu0 %v7081_v26  ;;  %v7390_v11 = vadd.f32 %v2121_v30, %v2033_v16  ;;  %v9799_v62 = vld [vmem:[#allocation48_spill] sm:$0xff] }
 0x1b0   :  { %2350 = vmatmul.bf16.vlgmr.msra.gmra.mxu3 %v9796_v38 }
 0x1b2   :  { %v1946_v53 = vpop.f32.mrf.mxu2 }
 0x1b3   :  { %v1947_v4 = vadd.f32 %v1946_v53, %v7076_v59  ;;  %v2035_v10 = vpop.f32.mrf.mxu3 }
 0x1b4   :  { %v2126_v36 = vpop.f32.mrf.mxu0 }
 0x1b5   :  { %v2036_v58 = vadd.f32 %v2035_v10, %v1947_v4 }
 0x1b7   :  { %v7394_v44 = vadd.f32 %v2124_v24, %v2036_v58 }
 0x1ba   :  { %v1948_v20 = vpop.f32.mrf.mxu2 }
 0x1bb   :  { %v1949_v49 = vadd.f32 %v1948_v20, %v7089_v54  ;;  %v2037_v8 = vpop.f32.mrf.mxu3  ;;  %v6242_v54 = vld [vmem:[#allocation7 + $0x28] sm:$0xff] }
 0x1bc   :  { %v2129_v2 = vpop.f32.mrf.mxu0  ;;  %4442 = vmatpush.bf16.msra.mxu1 %v6242_v54 }
 0x1bd   :  { %v2038_v1 = vadd.f32 %v2037_v8, %v1949_v49 }
 0x1bf   :  { %2266 = vmatmul.bf16.gmra.mxu2 %v9797_v42  ;;  %2444 = vmatmul.bf16.gmra.mxu0 %v7105_v45  ;;  %v7399_v26 = vadd.f32 %v2126_v36, %v2038_v1  ;;  %v9802_v1 = vld [vmem:[#allocation78_spill] sm:$0xff] }
 0x1c0   :  { %2355 = vmatmul.bf16.gmra.mxu3 %v9798_v63 }
 0x1c2   :  { %v1951_v59 = vpop.f32.mrf.mxu2 }
 0x1c3   :  { %v1952_v43 = vadd.f32 %v1951_v59, %v7099_v51  ;;  %v2040_v30 = vpop.f32.mrf.mxu3  ;;  %v9800_v51 = vld [vmem:[#allocation51_spill] sm:$0xff]  ;;  %v9803_v59 = vld [vmem:[#allocation77_spill] sm:$0xff] }
 0x1c4   :  { %v2131_v15 = vpop.f32.mrf.mxu0 }
 0x1c5   :  { %v2041_v19 = vadd.f32 %v2040_v30, %v1952_v43  ;;  %v9804_v43 = vunpack.c.l.b16 %v9803_v59  ;;  %v9805_v30 = vld [vmem:[#allocation47_spill] sm:$0xff] }
 0x1c7   :  { %v7403_v0 = vadd.f32 %v2129_v2, %v2041_v19  ;;  %v1095_v2 = vpack.c.b16 %v6728_v6, %v7097_v34 }
 0x1ca   :  { %v1953_v50 = vpop.f32.mrf.mxu2 }
 0x1cb   :  { %v1954_v3 = vadd.f32 %v1953_v50, %v7111_v48  ;;  %v2042_v24 = vpop.f32.mrf.mxu3 }
 0x1cc   :  { %v2134_v16 = vpop.f32.mrf.mxu0 }
 0x1cd   :  { %v2043_v45 = vadd.f32 %v2042_v24, %v1954_v3 }
 0x1cf   :  { %2271 = vmatmul.bf16.gmra.mxu2 %v9799_v62  ;;  %2449 = vmatmul.bf16.gmra.mxu0 %v7131_v57  ;;  %v7408_v38 = vadd.f32 %v2131_v15, %v2043_v45  ;;  %v9801_v57 = vld [vmem:[#allocation79_spill] sm:$0xff]  ;;  %v9807_v62 = vld [vmem:[#allocation58_spill] sm:$0xff] }
 0x1d0   :  { %2360 = vmatmul.bf16.gmra.mxu3 %v9800_v51  ;;  %v1097_v42 = vpack.c.b16 %v9802_v1, %v9801_v57 }
 0x1d2   :  { %v1956_v53 = vpop.f32.mrf.mxu2 }
 0x1d3   :  { %v1957_v4 = vadd.f32 %v1956_v53, %v7121_v5  ;;  %v2045_v10 = vpop.f32.mrf.mxu3  ;;  %v1096_v5 = vpack.c.b16 %v9805_v30, %v9804_v43 }
 0x1d4   :  { %v2136_v36 = vpop.f32.mrf.mxu0 }
 0x1d5   :  { %v2046_v58 = vadd.f32 %v2045_v10, %v1957_v4 }
 0x1d7   :  { %v7412_v20 = vadd.f32 %v2134_v16, %v2046_v58  ;;  %v6241_v16 = vld [vmem:[#allocation7 + $0x20] sm:$0xff]  ;;  %v9808_v58 = vld [vmem:[#allocation63_spill] sm:$0xff] }
 0x1d8   :  { %4443 = vmatpush.bf16.msra.mxu1 %v6241_v16 }
 0x1da   :  { %v1958_v48 = vpop.f32.mrf.mxu2 }
 0x1db   :  { %v1959_v49 = vadd.f32 %v1958_v48, %v7136_v47  ;;  %v2047_v8 = vpop.f32.mrf.mxu3  ;;  %v9806_v47 = vld [vmem:[#allocation80_spill] sm:$0xff]  ;;  %v9809_v48 = vld [vmem:[#allocation66_spill] sm:$0xff] }
 0x1dc   :  { %v2139_v63 = vpop.f32.mrf.mxu0 }
 0x1dd   :  { %v2048_v15 = vadd.f32 %v2047_v8, %v1959_v49  ;;  %v9810_v8 = vld [vmem:[#allocation41_spill] sm:$0xff] }
 0x1df   :  { %2276 = vmatmul.bf16.gmra.mxu2 %v1095_v2  ;;  %2454 = vmatmul.bf16.gmra.mxu0 %v1097_v42  ;;  %v7422_v19 = vadd.f32 %v2136_v36, %v2048_v15 }
 0x1e0   :  { %2365 = vmatmul.bf16.gmra.mxu3 %v1096_v5 }
 0x1e2   :  { %v1961_v54 = vpop.f32.mrf.mxu2 }
 0x1e3   :  { %v1962_v50 = vadd.f32 %v1961_v54, %v9806_v47  ;;  %v2050_v3 = vpop.f32.mrf.mxu3  ;;  %v9811_v54 = vld [vmem:[#allocation68_spill] sm:$0xff] }
 0x1e4   :  { %v2141_v24 = vpop.f32.mrf.mxu0 }
 0x1e5   :  { %v2051_v6 = vadd.f32 %v2050_v3, %v1962_v50  ;;  %v9813_v50 = vld [vmem:[#allocation71_spill] sm:$0xff] }
 0x1e7   :  { %v7425_v34 = vadd.f32 %v2139_v63, %v2051_v6 }
 0x1ea   :  { %v1963_v45 = vpop.f32.mrf.mxu2 }
 0x1eb   :  { %v1964_v51 = vadd.f32 %v1963_v45, %v9807_v62  ;;  %v2052_v53 = vpop.f32.mrf.mxu3 }
 0x1ec   :  { %v2144_v4 = vpop.f32.mrf.mxu0 }
 0x1ed   :  { %v2053_v10 = vadd.f32 %v2052_v53, %v1964_v51 }
 0x1ef   :  { %2281 = vmatmul.bf16.gmra.mxu2 %v9808_v58  ;;  %2459 = vmatmul.bf16.gmra.mxu0 %v7166_v13  ;;  %v7430_v36 = vadd.f32 %v2141_v24, %v2053_v10  ;;  %v9812_v13 = vld [vmem:[#allocation53_spill] sm:$0xff]  ;;  %v9814_v24 = vld [vmem:[#allocation56_spill] sm:$0xff] }
 0x1f0   :  { %2370 = vmatmul.bf16.gmra.mxu3 %v9809_v48 }
 0x1f2   :  { %v1966_v49 = vpop.f32.mrf.mxu2 }
 0x1f3   :  { %v1967_v2 = vadd.f32 %v1966_v49, %v9810_v8  ;;  %v2055_v57 = vpop.f32.mrf.mxu3  ;;  %v9816_v8 = vld [vmem:[#allocation73_spill] sm:$0xff] }
 0x1f4   :  { %v2146_v1 = vpop.f32.mrf.mxu0 }
 0x1f5   :  { %v2056_v42 = vadd.f32 %v2055_v57, %v1967_v2  ;;  %v9817_v2 = vld [vmem:[#allocation85_spill] sm:$0xff] }
 0x1f7   :  { %v7434_v63 = vadd.f32 %v2144_v4, %v2056_v42  ;;  %v9815_v4 = vld [vmem:[#allocation60_spill] sm:$0xff] }
 0x1fa   :  { %v1968_v59 = vpop.f32.mrf.mxu2 }
 0x1fb   :  { %v1969_v43 = vadd.f32 %v1968_v59, %v7174_v33  ;;  %v2057_v30 = vpop.f32.mrf.mxu3  ;;  %v6240_v33 = vld [vmem:[#allocation7 + $0x18] sm:$0xff]  ;;  %v9820_v59 = vld [vmem:[#allocation82_spill] sm:$0xff] }
 0x1fc   :  { %v2149_v5 = vpop.f32.mrf.mxu0  ;;  %4444 = vmatpush.bf16.msra.mxu1 %v6240_v33  ;;  %v9825_v33 = vld [vmem:[#allocation84_spill] sm:$0xff] }
 0x1fd   :  { %v2058_v15 = vadd.f32 %v2057_v30, %v1969_v43 }
 0x1ff   :  { %2286 = vmatmul.bf16.gmra.mxu2 %v9811_v54  ;;  %2464 = vmatmul.bf16.gmra.mxu0 %v9812_v13  ;;  %v7439_v47 = vadd.f32 %v2146_v1, %v2058_v15  ;;  %v9819_v1 = vld [vmem:[#allocation76_spill] sm:$0xff] }
 0x200   :  { %2375 = vmatmul.bf16.gmra.mxu3 %v9813_v50  ;;  %v9822_v50 = vld [vmem:[#allocation86_spill] sm:$0xff] }
 0x202   :  { %v1971_v3 = vpop.f32.mrf.mxu2 }
 0x203   :  { %v1972_v6 = vadd.f32 %v1971_v3, %v9814_v24  ;;  %v2060_v16 = vpop.f32.mrf.mxu3 }
 0x204   :  { %v2151_v45 = vpop.f32.mrf.mxu0 }
 0x205   :  { %v2061_v62 = vadd.f32 %v2060_v16, %v1972_v6  ;;  %v9823_v6 = vld [vmem:[#allocation40_spill] sm:$0xff]  ;;  %v9824_v16 = vld [vmem:[#allocation67_spill] sm:$0xff] }
 0x207   :  { %v7443_v51 = vadd.f32 %v2149_v5, %v2061_v62  ;;  %v1122_v62 = vpack.c.b16 %v9824_v16, %v9823_v6  ;;  %v9833_v6 = vld [vmem:[#allocation15_spill] sm:$0xff] }
 0x20a   :  { %v1973_v53 = vpop.f32.mrf.mxu2 }
 0x20b   :  { %v1974_v10 = vadd.f32 %v1973_v53, %v9815_v4  ;;  %v2062_v58 = vpop.f32.mrf.mxu3 }
 0x20c   :  { %v2154_v48 = vpop.f32.mrf.mxu0 }
 0x20d   :  { %v2063_v49 = vadd.f32 %v2062_v58, %v1974_v10  ;;  %v9827_v10 = vld [vmem:[#allocation81_spill] sm:$0xff] }
 0x20e   :  { %v9828_v58 = vunpack.c.l.b16 %v9827_v10 }
 0x20f   :  { %2291 = vmatmul.bf16.gmra.mxu2 %v9816_v8  ;;  %2469 = vmatmul.bf16.gmra.mxu0 %v9817_v2  ;;  %v7448_v57 = vadd.f32 %v2151_v45, %v2063_v49  ;;  %v9826_v45 = vld [vmem:[#allocation83_spill] sm:$0xff]  ;;  %v9829_v49 = vld [vmem:[#allocation72_spill] sm:$0xff] }
 0x210   :  { %2380 = vmatmul.bf16.gmra.mxu3 %v9819_v1  ;;  %v1124_v53 = vpack.c.b16 %v9826_v45, %v9825_v33  ;;  %v1123_v8 = vpack.c.b16 %v9829_v49, %v9828_v58  ;;  %v6239_v45 = vld [vmem:[#allocation7 + $0x10] sm:$0xff]  ;;  %v9837_v49 = vld [vmem:[#allocation16_spill] sm:$0xff] }
 0x211   :  { %9818 = vst [vmem:[#allocation21_spill] sm:$0xff] %v7448_v57  ;;  %4445 = vmatpush.bf16.msra.mxu1 %v6239_v45  ;;  %v6265_v57 = vld [vmem:[#allocation7 + $0xe0] sm:$0xff] }
 0x212   :  { %v1976_v42 = vpop.f32.mrf.mxu2 }
 0x213   :  { %v1977_v43 = vadd.f32 %v1976_v42, %v9820_v59  ;;  %v2065_v30 = vpop.f32.mrf.mxu3  ;;  %v9831_v42 = vld [vmem:[#allocation14_spill] sm:$0xff] }
 0x214   :  { %v2156_v5 = vpop.f32.mrf.mxu0 }
 0x215   :  { %v2066_v15 = vadd.f32 %v2065_v30, %v1977_v43 }
 0x217   :  { %v7452_v54 = vadd.f32 %v2154_v48, %v2066_v15 }
 0x219   :  { %9821 = vst [vmem:[#allocation29_spill] sm:$0xff] %v7452_v54 }
 0x21a   :  { %v1978_v13 = vpop.f32.mrf.mxu2 }
 0x21b   :  { %v1979_v3 = vadd.f32 %v1978_v13, %v9822_v50  ;;  %v2067_v24 = vpop.f32.mrf.mxu3 }
 0x21c   :  { %v2159_v4 = vpop.f32.mrf.mxu0 }
 0x21d   :  { %v2068_v2 = vadd.f32 %v2067_v24, %v1979_v3  ;;  %v9834_v24 = vld [vmem:[#allocation26_spill] sm:$0xff] }
 0x21f   :  { %2296 = vmatmul.bf16.gmra.mxu2 %v1122_v62  ;;  %2474 = vmatmul.bf16.gmra.mxu0 %v1124_v53  ;;  %v7462_v48 = vadd.f32 %v2156_v5, %v2068_v2  ;;  %v9836_v62 = vld [vmem:[#allocation27_spill] sm:$0xff]  ;;  %v7474_v2 = vpop.f32.mrf.mxu1 }
 0x220   :  { %2385 = vmatmul.bf16.gmra.mxu3 %v1123_v8 }
 0x221   :  { %9830 = vst [vmem:[#allocation17_spill] sm:$0xff] %v7462_v48 }
 0x222   :  { %v1981_v1 = vpop.f32.mrf.mxu2 }
 0x223   :  { %v1982_v59 = vadd.f32 %v1981_v1, %v9831_v42  ;;  %v2070_v43 = vpop.f32.mrf.mxu3 }
 0x224   :  { %v2161_v30 = vpop.f32.mrf.mxu0 }
 0x225   :  { %v2071_v15 = vadd.f32 %v2070_v43, %v1982_v59 }
 0x227   :  { %v7465_v13 = vadd.f32 %v2159_v4, %v2071_v15 }
 0x229   :  { %9832 = vst [vmem:[#allocation20_spill] sm:$0xff] %v7465_v13 }
 0x22a   :  { %v1983_v50 = vpop.f32.mrf.mxu2 }
 0x22b   :  { %v1984_v16 = vadd.f32 %v1983_v50, %v9833_v6  ;;  %v2072_v33 = vpop.f32.mrf.mxu3  ;;  %v9838_v6 = vld [vmem:[#allocation36_spill] sm:$0xff] }
 0x22c   :  { %v2440_v10 = vpop.f32.mrf.mxu0 }
 0x22d   :  { %v2073_v3 = vadd.f32 %v2072_v33, %v1984_v16  ;;  %v7483_v16 = vpop.f32.mrf.mxu1  ;;  %v9839_v33 = vld [vmem:[#allocation37_spill] sm:$0xff] }
 0x22f   :  { %2301 = vmatmul.bf16.gmra.mxu2 %v9834_v24  ;;  %2479 = vmatmul.bf16.gmra.mxu0 %v7249_v41  ;;  %v7470_v5 = vadd.f32 %v2161_v30, %v2073_v3 }
 0x230   :  { %2390 = vmatmul.bf16.gmra.mxu3 %v9836_v62 }
 0x231   :  { %9835 = vst [vmem:[#allocation24_spill] sm:$0xff] %v7470_v5 }
 0x232   :  { %v2262_v53 = vpop.f32.mrf.mxu2 }
 0x233   :  { %v2351_v58 = vpop.f32.mrf.mxu3  ;;  %v2263_v8 = vadd.f32 %v2262_v53, %v9837_v49 }
 0x234   :  { %v2442_v4 = vpop.f32.mrf.mxu0 }
 0x235   :  { %v2352_v1 = vadd.f32 %v2351_v58, %v2263_v8 }
 0x237   :  { %v7477_v50 = vadd.f32 %v2440_v10, %v2352_v1  ;;  %v7498_v1 = vpop.f32.mrf.mxu1 }
 0x239   :  { %v2576_v45 = vmul.f32 %v7477_v50, %v7477_v50 }
 0x23a   :  { %v2264_v42 = vpop.f32.mrf.mxu2 }
 0x23b   :  { %v2265_v59 = vadd.f32 %v2264_v42, %v7260_v14  ;;  %v2353_v43 = vpop.f32.mrf.mxu3 }
 0x23c   :  { %v2445_v15 = vpop.f32.mrf.mxu0 }
 0x23d   :  { %v2354_v41 = vadd.f32 %v2353_v43, %v2265_v59 }
 0x23f   :  { %v7479_v30 = vadd.f32 %v2442_v4, %v2354_v41  ;;  %2306 = vmatmul.bf16.gmra.mxu2 %v9838_v6  ;;  %2484 = vmatmul.bf16.gmra.mxu0 %v7271_v23  ;;  %v6238_v6 = vld [vmem:[#allocation7 + $0x8] sm:$0xff] }
 0x240   :  { %2395 = vmatmul.bf16.gmra.mxu3 %v9839_v33  ;;  %4446 = vmatpush.bf16.msra.mxu1 %v6238_v6  ;;  %v9842_v6 = vld [vmem:[#allocation23_spill] sm:$0xff] }
 0x241   :  { %v2520_v14 = vadd.f32 %v7479_v30, %v7477_v50  ;;  %v2577_v10 = vmul.f32 %v7479_v30, %v7479_v30 }
 0x242   :  { %v2267_v3 = vpop.f32.mrf.mxu2 }
 0x243   :  { %v2608_v24 = vadd.f32 %v2577_v10, %v2576_v45  ;;  %v2268_v62 = vadd.f32 %v2267_v3, %v7268_v25  ;;  %v2356_v53 = vpop.f32.mrf.mxu3 }
 0x244   :  { %v2447_v58 = vpop.f32.mrf.mxu0 }
 0x245   :  { %v2357_v23 = vadd.f32 %v2356_v53, %v2268_v62 }
 0x247   :  { %v7493_v4 = vadd.f32 %v2445_v15, %v2357_v23  ;;  %v9840_v15 = vld [vmem:[#allocation49_spill] sm:$0xff]  ;;  %v7510_v23 = vpop.f32.mrf.mxu1 }
 0x249   :  { %v2521_v49 = vadd.f32 %v2520_v14, %v7493_v4  ;;  %v2578_v8 = vmul.f32 %v7493_v4, %v7493_v4  ;;  %v9841_v14 = vld [vmem:[#allocation50_spill] sm:$0xff] }
 0x24a   :  { %v2269_v42 = vpop.f32.mrf.mxu2 }
 0x24b   :  { %v2609_v59 = vadd.f32 %v2608_v24, %v2578_v8  ;;  %v2270_v43 = vadd.f32 %v2269_v42, %v7280_v21  ;;  %v2358_v41 = vpop.f32.mrf.mxu3 }
 0x24c   :  { %v2450_v33 = vpop.f32.mrf.mxu0 }
 0x24d   :  { %v2359_v25 = vadd.f32 %v2358_v41, %v2270_v43 }
 0x24f   :  { %v7501_v45 = vadd.f32 %v2447_v58, %v2359_v25  ;;  %2311 = vmatmul.bf16.gmra.mxu2 %v9840_v15  ;;  %2489 = vmatmul.bf16.gmra.mxu0 %v7295_v27  ;;  %v7525_v13 = vpop.f32.mrf.mxu1 }
 0x250   :  { %2400 = vmatmul.bf16.gmra.mxu3 %v9841_v14  ;;  %v9844_v14 = vld [vmem:[#allocation32_spill] sm:$0xff] }
 0x251   :  { %v2522_v10 = vadd.f32 %v2521_v49, %v7501_v45  ;;  %v2579_v3 = vmul.f32 %v7501_v45, %v7501_v45 }
 0x252   :  { %v2272_v24 = vpop.f32.mrf.mxu2 }
 0x253   :  { %v2610_v21 = vadd.f32 %v2609_v59, %v2579_v3  ;;  %v2273_v62 = vadd.f32 %v2272_v24, %v7291_v7  ;;  %v2361_v53 = vpop.f32.mrf.mxu3  ;;  %v9843_v59 = vld [vmem:[#allocation18_spill] sm:$0xff]  ;;  %v9845_v3 = vld [vmem:[#allocation19_spill] sm:$0xff]  ;;  %v9846_v24 = vld [vmem:[#allocation12_spill] sm:$0xff] }
 0x254   :  { %v2452_v58 = vpop.f32.mrf.mxu0  ;;  %v1149_v7 = vpack.c.b16 %v9844_v14, %v9843_v59  ;;  %v1151_v28 = vpack.c.b16 %v9846_v24, %v9845_v3 }
 0x255   :  { %v2362_v8 = vadd.f32 %v2361_v53, %v2273_v62  ;;  %v9847_v62 = vld [vmem:[#allocation13_spill] sm:$0xff] }
 0x256   :  { %v9849_v53 = vld [vmem:[#allocation45_spill] sm:$0xff] }
 0x257   :  { %v7512_v42 = vadd.f32 %v2450_v33, %v2362_v8  ;;  %v9848_v33 = vunpack.c.l.b16 %v9847_v62 }
 0x259   :  { %v2523_v27 = vadd.f32 %v2522_v10, %v7512_v42  ;;  %v2580_v43 = vmul.f32 %v7512_v42, %v7512_v42  ;;  %v1150_v8 = vpack.c.b16 %v9849_v53, %v9848_v33 }
 0x25a   :  { %v2274_v49 = vpop.f32.mrf.mxu2 }
 0x25b   :  { %v2611_v41 = vadd.f32 %v2610_v21, %v2580_v43  ;;  %v2275_v25 = vadd.f32 %v2274_v49, %v9842_v6  ;;  %v2363_v15 = vpop.f32.mrf.mxu3 }
 0x25c   :  { %v2455_v5 = vpop.f32.mrf.mxu0 }
 0x25d   :  { %v2364_v10 = vadd.f32 %v2363_v15, %v2275_v25  ;;  %v7535_v15 = vpop.f32.mrf.mxu1 }
 0x25f   :  { %v7527_v48 = vadd.f32 %v2452_v58, %v2364_v10  ;;  %2316 = vmatmul.bf16.gmra.mxu2 %v1149_v7  ;;  %2494 = vmatmul.bf16.gmra.mxu0 %v1151_v28  ;;  %v6268_v10 = vld [vmem:[#allocation7 + $0xf8] sm:$0xff] }
 0x260   :  { %2405 = vmatmul.bf16.gmra.mxu3 %v1150_v8  ;;  %v9850_v8 = vld [vmem:[#allocation64_spill] sm:$0xff]  ;;  %4707 = vmatpush.bf16.msrb.mxu0 %v6268_v10 }
 0x261   :  { %v2524_v21 = vadd.f32 %v2523_v27, %v7527_v48  ;;  %v2581_v43 = vmul.f32 %v7527_v48, %v7527_v48 }
 0x262   :  { %v2277_v49 = vpop.f32.mrf.mxu2 }
 0x263   :  { %v2612_v6 = vadd.f32 %v2611_v41, %v2581_v43  ;;  %v2278_v59 = vadd.f32 %v2277_v49, %v7310_v35  ;;  %v2366_v14 = vpop.f32.mrf.mxu3  ;;  %v9851_v43 = vld [vmem:[#allocation65_spill] sm:$0xff] }
 0x264   :  { %v2457_v3 = vpop.f32.mrf.mxu0 }
 0x265   :  { %v2367_v24 = vadd.f32 %v2366_v14, %v2278_v59  ;;  %v6252_v14 = vld [vmem:[#allocation7 + $0x78] sm:$0xff] }
 0x266   :  { %4529 = vmatpush.bf16.msrb.mxu2 %v6252_v14 }
 0x267   :  { %v7533_v25 = vadd.f32 %v2455_v5, %v2367_v24  ;;  %v6260_v5 = vld [vmem:[#allocation7 + $0xb8] sm:$0xff] }
 0x268   :  { %4618 = vmatpush.bf16.msrb.mxu3 %v6260_v5 }
 0x269   :  { %v2525_v58 = vadd.f32 %v2524_v21, %v7533_v25  ;;  %v2582_v28 = vmul.f32 %v7533_v25, %v7533_v25 }
 0x26a   :  { %v2279_v27 = vpop.f32.mrf.mxu2 }
 0x26b   :  { %v2613_v7 = vadd.f32 %v2612_v6, %v2582_v28  ;;  %v2280_v62 = vadd.f32 %v2279_v27, %v7318_v32  ;;  %v2368_v33 = vpop.f32.mrf.mxu3  ;;  %v2194_v32 = vadd.f32 %v7474_v2, %v7323_v46  ;;  %v7551_v6 = vpop.f32.mrf.mxu1  ;;  %v6259_v28 = vld [vmem:[#allocation7 + $0xb0] sm:$0xff]  ;;  %v6258_v46 = vld [vmem:[#allocation7 + $0xa8] sm:$0xff] }
 0x26c   :  { %v2460_v41 = vpop.f32.mrf.mxu0  ;;  %v6267_v27 = vld [vmem:[#allocation7 + $0xf0] sm:$0xff]  ;;  %4619 = vmatpush.bf16.msrb.mxu3 %v6259_v28  ;;  %v6266_v2 = vld [vmem:[#allocation7 + $0xe8] sm:$0xff] }
 0x26d   :  { %v2369_v53 = vadd.f32 %v2368_v33, %v2280_v62  ;;  %4708 = vmatpush.bf16.msrb.mxu0 %v6267_v27  ;;  %v6257_v27 = vld [vmem:[#allocation7 + $0xa0] sm:$0xff] }
 0x26f   :  { %v7541_v35 = vadd.f32 %v2457_v3, %v2369_v53  ;;  %2321 = vmatmul.bf16.gmra.mxu2 %v9850_v8  ;;  %2499 = vmatmul.bf16.gmra.mxu0 %v7326_v9  ;;  %v6251_v8 = vld [vmem:[#allocation7 + $0x70] sm:$0xff] }
 0x270   :  { %2410 = vmatmul.bf16.gmra.mxu3 %v9851_v43  ;;  %4530 = vmatpush.bf16.msrb.mxu2 %v6251_v8 }
 0x271   :  { %v2526_v21 = vadd.f32 %v2525_v58, %v7541_v35  ;;  %v2583_v49 = vmul.f32 %v7541_v35, %v7541_v35  ;;  %4620 = vmatpush.bf16.msrb.mxu3 %v6258_v46  ;;  %4709 = vmatpush.bf16.msrb.mxu0 %v6266_v2  ;;  %v6237_v46 = vld [vmem:[#allocation7] sm:$0xff]  ;;  %v6264_v2 = vld [vmem:[#allocation7 + $0xd8] sm:$0xff] }
 0x272   :  { %v2282_v59 = vpop.f32.mrf.mxu2  ;;  %4447 = vmatpush.bf16.msra.mxu1 %v6237_v46 }
 0x273   :  { %v2527_v3 = vrot.slane %v2526_v21, 4  ;;  %v2614_v9 = vadd.f32 %v2613_v7, %v2583_v49  ;;  %v2371_v24 = vpop.f32.mrf.mxu3  ;;  %v2283_v62 = vadd.f32 %v2282_v59, %v2194_v32  ;;  %v2196_v7 = vadd.f32 %v7483_v16, %v7337_v22  ;;  %v6250_v59 = vld [vmem:[#allocation7 + $0x68] sm:$0xff] }
 0x274   :  { %v2462_v33 = vpop.f32.mrf.mxu0  ;;  %4531 = vmatpush.bf16.msrb.mxu2 %v6250_v59  ;;  %v6248_v59 = vld [vmem:[#allocation7 + $0x58] sm:$0xff] }
 0x275   :  { %v2528_v58 = vadd.f32 %v2527_v3, %v2526_v21  ;;  %v2615_v53 = vrot.slane %v2614_v9, 4  ;;  %v2372_v43 = vadd.f32 %v2371_v24, %v2283_v62  ;;  %4621 = vmatpush.bf16.msrb.mxu3 %v6257_v27  ;;  %4710 = vmatpush.bf16.msrb.mxu0 %v6265_v57  ;;  %v9853_v57 = vld [vmem:[#allocation70_spill] sm:$0xff] }
 0x277   :  { %v2529_v5 = vrot.slane %v2528_v58, 2  ;;  %v2616_v10 = vadd.f32 %v2615_v53, %v2614_v9  ;;  %v7555_v9 = vpop.f32.mrf.mxu1  ;;  %v7557_v53 = vadd.f32 %v2460_v41, %v2372_v43  ;;  %v6256_v41 = vld [vmem:[#allocation7 + $0x98] sm:$0xff]  ;;  %v2199_v43 = vadd.f32 %v7498_v1, %v7344_v18 }
 0x279   :  { %v2530_v49 = vadd.f32 %v2529_v5, %v2528_v58  ;;  %v2617_v54 = vrot.slane %v2616_v10, 2  ;;  %v6249_v58 = vld [vmem:[#allocation7 + $0x60] sm:$0xff]  ;;  %4622 = vmatpush.bf16.msrb.mxu3 %v6256_v41  ;;  %4711 = vmatpush.bf16.msrb.mxu0 %v6264_v2  ;;  %v6246_v2 = vld [vmem:[#allocation7 + $0x48] sm:$0xff] }
 0x27a   :  { %v2284_v32 = vpop.f32.mrf.mxu2  ;;  %4532 = vmatpush.bf16.msrb.mxu2 %v6249_v58  ;;  %v6254_v58 = vld [vmem:[#allocation7 + $0x88] sm:$0xff] }
 0x27b   :  { %v2531_v21 = vrot.slane %v2530_v49, 1  ;;  %v2618_v14 = vadd.f32 %v2617_v54, %v2616_v10  ;;  %v2285_v3 = vadd.f32 %v2284_v32, %v2196_v7  ;;  %v2373_v28 = vpop.f32.mrf.mxu3  ;;  %v9852_v10 = vld [vmem:[#allocation69_spill] sm:$0xff]  ;;  %v2584_v7 = vmul.f32 %v7557_v53, %v7557_v53 }
 0x27c   :  { %v2465_v24 = vpop.f32.mrf.mxu0 }
 0x27d   :  { %v2532_v62 = vadd.f32 %v2531_v21, %v2530_v49  ;;  %v2619_v22 = vrot.slane %v2618_v14, 1  ;;  %v2374_v16 = vadd.f32 %v2373_v28, %v2285_v3  ;;  %v6262_v3 = vld [vmem:[#allocation7 + $0xc8] sm:$0xff] }
 0x27e   :  { %4533 = vmatpush.bf16.msrb.mxu2 %v6248_v59 }
 0x27f   :  { %v7559_v8 = vmul.f32 0.015625, %v2532_v62  ;;  %v2620_v5 = vadd.f32 %v2619_v22, %v2618_v14  ;;  %v7561_v54 = vadd.f32 %v2462_v33, %v2374_v16  ;;  %2326 = vmatmul.bf16.gmra.mxu2 %v9852_v10  ;;  %2504 = vmatmul.bf16.gmra.mxu0 %v7348_v17  ;;  %v6255_v22 = vld [vmem:[#allocation7 + $0x90] sm:$0xff] }
 0x280   :  { %2415 = vmatmul.bf16.gmra.mxu3 %v9853_v57  ;;  %v6263_v16 = vld [vmem:[#allocation7 + $0xd0] sm:$0xff] }
 0x281   :  { %v2660_v49 = vmul.f32 0.015625, %v2620_v5  ;;  %v2664_v33 = vmul.f32 %v7559_v8, %v7559_v8  ;;  %v2683_v32 = vsub.f32 %v7541_v35, %v7559_v8  ;;  %v2533_v17 = vadd.f32 %v7561_v54, %v7557_v53  ;;  %4623 = vmatpush.bf16.msrb.mxu3 %v6255_v22  ;;  %4712 = vmatpush.bf16.msrb.mxu0 %v6263_v16  ;;  %v6253_v22 = vld [vmem:[#allocation7 + $0x80] sm:$0xff] }
 0x282   :  { %v2585_v18 = vmul.f32 %v7561_v54, %v7561_v54  ;;  %v2287_v1 = vpop.f32.mrf.mxu2  ;;  %v2676_v21 = vsub.f32 %v7477_v50, %v7559_v8  ;;  %v6261_v16 = vld [vmem:[#allocation7 + $0xc0] sm:$0xff]  ;;  %v9859_v35 = vsub.f32 %v7501_v45, %v7559_v8  ;;  %v9860_v50 = vsub.f32 %v7512_v42, %v7559_v8 }
 0x283   :  { %v2668_v28 = vsub.f32 %v2660_v49, %v2664_v33  ;;  %v2288_v27 = vadd.f32 %v2287_v1, %v2199_v43  ;;  %v2376_v62 = vpop.f32.mrf.mxu3  ;;  %v2213_v49 = vpop.f32.mrf.mxu1  ;;  %v6247_v33 = vld [vmem:[#allocation7 + $0x50] sm:$0xff] }
 0x284   :  { %v2621_v10 = vadd.f32 %v2585_v18, %v2584_v7  ;;  %v2467_v46 = vpop.f32.mrf.mxu0  ;;  %4534 = vmatpush.bf16.msrb.mxu2 %v6247_v33  ;;  %v2201_v7 = vadd.f32 %v7510_v23, %v7357_v61  ;;  %v6245_v61 = vld [vmem:[#allocation7 + $0x40] sm:$0xff] }
 0x285   :  { %v2672_v57 = vmax.f32 %v2668_v28, 0.0  ;;  %v2377_v43 = vadd.f32 %v2376_v62, %v2288_v27  ;;  %4624 = vmatpush.bf16.msrb.mxu3 %v6254_v58  ;;  %4713 = vmatpush.bf16.msrb.mxu0 %v6262_v3  ;;  %v6276_v62 = vld [vmem:[#allocation7 + $0x138] sm:$0xff]  ;;  %v9854_v58 = vld [vmem:[#allocation74_spill] sm:$0xff] }
 0x286   :  { %4796 = vmatpush.bf16.msrb.mxu1 %v6276_v62 }
 0x287   :  { %v2708_v1 = vadd.f32 1e-05, %v2672_v57  ;;  %v7594_v18 = vadd.f32 %v2465_v24, %v2377_v43 }
 0x288   :  { %4535 = vmatpush.bf16.msrb.mxu2 %v6246_v2  ;;  %v9855_v2 = vld [vmem:[#allocation75_spill] sm:$0xff] }
 0x289   :  { %6333 = vrsqrt.f32 %v2708_v1  ;;  %v2586_v57 = vmul.f32 %v7594_v18, %v7594_v18  ;;  %4625 = vmatpush.bf16.msrb.mxu3 %v6253_v22  ;;  %4714 = vmatpush.bf16.msrb.mxu0 %v6261_v16  ;;  %v2534_v24 = vadd.f32 %v2533_v17, %v7594_v18  ;;  %vm2718_vm2 = vweird.f32 %v2708_v1 }
 0x28a   :  { %v2289_v59 = vpop.f32.mrf.mxu2 }
 0x28b   :  { %v2290_v28 = vadd.f32 %v2289_v59, %v2201_v7  ;;  %v2378_v27 = vpop.f32.mrf.mxu3  ;;  %v2215_v43 = vpop.f32.mrf.mxu1  ;;  %v2204_v59 = vadd.f32 %v7525_v13, %v7363_v39  ;;  %v2209_v13 = vadd.f32 %v7551_v6, %v7385_v37 }
 0x28c   :  { %v2470_v41 = vpop.f32.mrf.mxu0  ;;  %4536 = vmatpush.bf16.msrb.mxu2 %v6245_v61  ;;  %v2206_v61 = vadd.f32 %v7535_v15, %v7382_v12 }
 0x28d   :  { %v2379_v33 = vadd.f32 %v2378_v27, %v2290_v28  ;;  %v2622_v28 = vadd.f32 %v2621_v10, %v2586_v57  ;;  %v7617_v10 = vadd.f32 %v7555_v9, %v7390_v11  ;;  %v1176_v11 = vpack.c.b16 %v6984_v31, %v7341_v29 }
 0x28e   :  { %v9856_v9 = vunpack.c.l.b16 %v7361_v40 }
 0x28f   :  { %v6334_v23 = vpop.eup %6333  ;;  %v7599_v3 = vadd.f32 %v2467_v46, %v2379_v33  ;;  %2331 = vmatmul.bf16.gmra.mxu2 %v9854_v58  ;;  %2509 = vmatmul.bf16.gmra.mxu0 %v7372_v55 }
 0x290   :  { %v2713_v7 = vmul.f32 %v6334_v23, %v2708_v1  ;;  %2420 = vmatmul.bf16.gmra.mxu3 %v9855_v2  ;;  %vm2719_vm1 = vweird.f32 %v6334_v23 }
 0x291   :  { %v2535_v27 = vadd.f32 %v2534_v24, %v7599_v3  ;;  %v2587_v17 = vmul.f32 %v7599_v3, %v7599_v3  ;;  %v7620_v24 = vadd.f32 %v2213_v49, %v7394_v44  ;;  %vm2720_vm3 = vmor %vm2718_vm2, %vm2719_vm1  ;;  %v1177_v44 = vpack.c.b16 %v7039_v60, %v9856_v9 }
 0x292   :  { %v2714_v46 = vmul.f32 %v6334_v23, %v2713_v7  ;;  %v2292_v62 = vpop.f32.mrf.mxu2  ;;  %v7623_v7 = vadd.f32 %v2215_v43, %v7399_v26  ;;  %v1178_v26 = vpack.c.b16 %v7365_v56, %v7368_v52  ;;  %v9857_v60 = vsub.f32 %v7479_v30, %v7559_v8 }
 0x293   :  { %v2623_v22 = vadd.f32 %v2622_v28, %v2587_v17  ;;  %v2293_v16 = vadd.f32 %v2292_v62, %v2204_v59  ;;  %v2381_v33 = vpop.f32.mrf.mxu3  ;;  %v9858_v56 = vsub.f32 %v7493_v4, %v7559_v8  ;;  %v9861_v4 = vsub.f32 %v7527_v48, %v7559_v8 }
 0x294   :  { %v2715_v55 = vmul.f32 0.5, %v2714_v46  ;;  %v2472_v58 = vpop.f32.mrf.mxu0 }
 0x295   :  { %v2382_v5 = vadd.f32 %v2381_v33, %v2293_v16 }
 0x296   :  { %v2716_v14 = vsub.f32 1.5, %v2715_v55 }
 0x297   :  { %v7611_v39 = vadd.f32 %v2470_v41, %v2382_v5  ;;  %v2218_v5 = vpop.f32.mrf.mxu1 }
 0x298   :  { %v2717_v57 = vmul.f32 %v6334_v23, %v2716_v14 }
 0x299   :  { %v2536_v12 = vadd.f32 %v2535_v27, %v7611_v39  ;;  %v2588_v15 = vmul.f32 %v7611_v39, %v7611_v39 }
 0x29a   :  { %v7628_v37 = vsel %vm2720_vm3, %v6334_v23, %v2717_v57  ;;  %v2294_v6 = vpop.f32.mrf.mxu2  ;;  %v7662_v23 = vadd.f32 %v2218_v5, %v7403_v0 }
 0x29b   :  { %v2759_v14 = vmul.f32 %v7628_v37, %v2683_v32  ;;  %v2624_v41 = vadd.f32 %v2623_v22, %v2588_v15  ;;  %v2295_v49 = vadd.f32 %v2294_v6, %v2206_v61  ;;  %v2383_v1 = vpop.f32.mrf.mxu3  ;;  %v2752_v31 = vmul.f32 %v7628_v37, %v2676_v21 }
 0x29c   :  { %v2475_v29 = vpop.f32.mrf.mxu0  ;;  %v2753_v40 = vmul.f32 %v7628_v37, %v9857_v60  ;;  %v2754_v52 = vmul.f32 %v7628_v37, %v9858_v56  ;;  %v2755_v32 = vmul.f32 %v7628_v37, %v9859_v35  ;;  %v2756_v21 = vmul.f32 %v7628_v37, %v9860_v50 }
 0x29d   :  { %v2384_v30 = vadd.f32 %v2383_v1, %v2295_v49  ;;  %v2784_v43 = vmax.f32 %v2752_v31, 0.0  ;;  %v7668_v2 = vmul.f32 %v7628_v37, %v9861_v4  ;;  %v7670_v59 = vmax.f32 %v2759_v14, 0.0 }
 0x29e   :  { %v2785_v45 = vmax.f32 %v2753_v40, 0.0  ;;  %v2786_v28 = vmax.f32 %v2754_v52, 0.0  ;;  %v7672_v27 = vmax.f32 %v2755_v32, 0.0  ;;  %v7676_v46 = vmax.f32 %v2756_v21, 0.0 }
 0x29f   :  { %v7674_v42 = vadd.f32 %v2472_v58, %v2384_v30  ;;  %2336 = vmatmul.bf16.gmra.mxu2 %v1176_v11  ;;  %2514 = vmatmul.bf16.gmra.mxu0 %v1178_v26  ;;  %v2849_v0 = vrot.slane %v2784_v43, 1  ;;  %v2913_v17 = vrot.slane %v2784_v43, 7  ;;  %v2977_v16 = vrot.slane %v2784_v43, 5 }
 0x2a0   :  { %2425 = vmatmul.bf16.gmra.mxu3 %v1177_v44  ;;  %v2848_v62 = vrot.slane %v2785_v45, 1  ;;  %v2912_v48 = vrot.slane %v2785_v45, 7  ;;  %v2976_v22 = vrot.slane %v2785_v45, 5  ;;  %v2850_v58 = vrot.slane %v2786_v28, 1 }
 0x2a1   :  { %v2537_v33 = vadd.f32 %v2536_v12, %v7674_v42  ;;  %v2589_v55 = vmul.f32 %v7674_v42, %v7674_v42  ;;  %v3041_v61 = vsel %vm318_vm0, %v2849_v0, %v2913_v17  ;;  %v3073_v11 = vsel %vm318_vm0, %v2913_v17, %v2977_v16 }
 0x2a2   :  { %v2297_v57 = vpop.f32.mrf.mxu2  ;;  %v3040_v15 = vsel %vm318_vm0, %v2848_v62, %v2912_v48  ;;  %v3106_v5 = vpack.c.bf16 %v3041_v61, %v3041_v61  ;;  %v3072_v6 = vsel %vm318_vm0, %v2912_v48, %v2976_v22  ;;  %v3107_v31 = vpack.c.bf16 %v3073_v11, %v3073_v11 }
 0x2a3   :  { %v2625_v9 = vadd.f32 %v2624_v41, %v2589_v55  ;;  %v2298_v44 = vadd.f32 %v2297_v57, %v2209_v13  ;;  %v2386_v26 = vpop.f32.mrf.mxu3  ;;  %v3104_v14 = vpack.c.bf16 %v3040_v15, %v3040_v15  ;;  %v3105_v49 = vpack.c.bf16 %v3072_v6, %v3072_v6 }
 0x2a4   :  { %v2477_v12 = vpop.f32.mrf.mxu0  ;;  %v3226_v1 = vunpack.c.l.b16 %v3106_v5  ;;  %v2914_v60 = vrot.slane %v2786_v28, 7  ;;  %v2978_v40 = vrot.slane %v2786_v28, 5  ;;  %v2851_v32 = vrot.slane %v7672_v27, 1 }
 0x2a5   :  { %v2387_v56 = vadd.f32 %v2386_v26, %v2298_v44  ;;  %v3224_v52 = vunpack.c.l.b16 %v3104_v14  ;;  %v3225_v35 = vunpack.c.l.b16 %v3105_v49  ;;  %v3227_v50 = vunpack.c.l.b16 %v3107_v31 }
 0x2a6   :  { %v3042_v21 = vsel %vm318_vm0, %v2850_v58, %v2914_v60  ;;  %v3074_v30 = vsel %vm318_vm0, %v2914_v60, %v2978_v40  ;;  %v2915_v13 = vrot.slane %v7672_v27, 7 }
 0x2a7   :  { %v7689_v41 = vadd.f32 %v2475_v29, %v2387_v56  ;;  %v3792_v43 = vpack.c.b16 %v3226_v1, %v3224_v52  ;;  %v3280_v4 = vpack.c.b16 %v3225_v35, %v3224_v52  ;;  %v3795_v45 = vpack.c.b16 %v3224_v52, %v3226_v1  ;;  %v7708_v35 = vpop.f32.mrf.mxu1 }
 0x2a8   :  { %v3281_v0 = vpack.c.b16 %v3227_v50, %v3226_v1  ;;  %v3108_v17 = vpack.c.bf16 %v3042_v21, %v3042_v21  ;;  %v3109_v28 = vpack.c.bf16 %v3074_v30, %v3074_v30  ;;  %v3043_v62 = vsel %vm318_vm0, %v2851_v32, %v2915_v13 }
 0x2a9   :  { %v2538_v48 = vadd.f32 %v2537_v33, %v7689_v41  ;;  %v2590_v22 = vmul.f32 %v7689_v41, %v7689_v41  ;;  %4448 = vmatmul.bf16.vlgmr.msra.gmra.mxu1 %v3792_v43  ;;  %v3504_v16 = vrot.slane %v3280_v4, 1  ;;  %v3309_v55 = vshrl.u32 %v3280_v4, 16 }
 0x2aa   :  { %v2299_v29 = vpop.f32.mrf.mxu2  ;;  %v3505_v61 = vrot.slane %v3281_v0, 1  ;;  %v3311_v58 = vshll.u32 %v3280_v4, 16  ;;  %v3316_v57 = vshrl.u32 %v3281_v0, 16  ;;  %v3318_v15 = vshll.u32 %v3281_v0, 16 }
 0x2ab   :  { %v2626_v5 = vadd.f32 %v2625_v9, %v2590_v22  ;;  %v2300_v6 = vadd.f32 %v2299_v29, %v7617_v10  ;;  %v2388_v11 = vpop.f32.mrf.mxu3  ;;  %v7698_v44 = vunpack.c.l.b16 %v3504_v16  ;;  %v7700_v26 = vunpack.c.l.b16 %v3108_v17 }
 0x2ac   :  { %v2480_v33 = vpop.f32.mrf.mxu0  ;;  %v7702_v14 = vunpack.c.l.b16 %v3505_v61  ;;  %v3313_v49 = vrot.slane %v3311_v58, 1  ;;  %v3320_v1 = vrot.slane %v3318_v15, 1  ;;  %v3229_v31 = vunpack.c.l.b16 %v3109_v28 }
 0x2ad   :  { %v2389_v60 = vadd.f32 %v2388_v11, %v2300_v6  ;;  %v7705_v40 = vpack.c.b16 %v7700_v26, %v3224_v52  ;;  %v3110_v56 = vpack.c.bf16 %v3043_v62, %v3043_v62  ;;  %v2852_v9 = vrot.slane %v7676_v46, 1 }
 0x2ae   :  { %v3794_v10 = vpack.c.b16 %v7702_v14, %v7698_v44  ;;  %v3314_v32 = vor.u32 %v3313_v49, %v3309_v55  ;;  %v7712_v50 = vor.u32 %v3320_v1, %v3316_v57  ;;  %v3282_v21 = vpack.c.b16 %v3229_v31, %v7700_v26 }
 0x2af   :  { %9862 = vst [vmem:[#allocation33_spill] sm:$0xff] %v7705_v40  ;;  %v7715_v30 = vadd.f32 %v2477_v12, %v2389_v60  ;;  %4715 = vmatmul.bf16.vlgmr.msrb.gmra.mxu0 %v3795_v45  ;;  %v7717_v43 = vunpack.c.l.b16 %v3110_v56  ;;  %v2916_v52 = vrot.slane %v7676_v46, 7  ;;  %v2979_v4 = vrot.slane %v7672_v27, 5 }
 0x2b0   :  { %4626 = vmatmul.bf16.vlgmr.msrb.gmra.mxu3 %v3794_v10  ;;  %v7721_v0 = vunpack.c.l.b16 %v3314_v32  ;;  %v9551_v17 = vunpack.c.l.b16 %v7712_v50  ;;  %v3506_v28 = vrot.slane %v3282_v21, 1  ;;  %v3323_v62 = vshrl.u32 %v3282_v21, 16 }
 0x2b1   :  { %v2539_v22 = vadd.f32 %v2538_v48, %v7715_v30  ;;  %v2591_v12 = vmul.f32 %v7715_v30, %v7715_v30  ;;  %v3325_v16 = vshll.u32 %v3282_v21, 16  ;;  %v3044_v58 = vsel %vm318_vm0, %v2852_v9, %v2916_v52 }
 0x2b2   :  { %v2302_v55 = vpop.f32.mrf.mxu2  ;;  %v3793_v29 = vpack.c.b16 %v9551_v17, %v7721_v0  ;;  %v7732_v61 = vunpack.c.l.b16 %v3506_v28  ;;  %v2980_v57 = vrot.slane %v7676_v46, 5  ;;  %v3112_v60 = vpack.c.bf16 %v3044_v58, %v3044_v58 }
 0x2b3   :  { %v2540_v15 = vrot.slane %v2539_v22, 4  ;;  %v2627_v48 = vadd.f32 %v2626_v5, %v2591_v12  ;;  %v2303_v6 = vadd.f32 %v2302_v55, %v7620_v24  ;;  %v2391_v11 = vpop.f32.mrf.mxu3  ;;  %v3327_v49 = vrot.slane %v3325_v16, 1 }
 0x2b4   :  { %4537 = vmatmul.bf16.vlgmr.msrb.gmra.mxu2 %v3793_v29  ;;  %v2482_v1 = vpop.f32.mrf.mxu0  ;;  %v7739_v31 = vpack.c.b16 %v7732_v61, %v7698_v44  ;;  %v3075_v56 = vsel %vm318_vm0, %v2915_v13, %v2979_v4  ;;  %v3076_v9 = vsel %vm318_vm0, %v2916_v52, %v2980_v57  ;;  %v7747_v24 = vunpack.c.l.b16 %v3112_v60  ;;  %v7755_v13 = vpop.f32.mrf.mxu1 }
 0x2b5   :  { %v2541_v46 = vadd.f32 %v2540_v15, %v2539_v22  ;;  %v2628_v10 = vrot.slane %v2627_v48, 4  ;;  %v2392_v5 = vadd.f32 %v2391_v11, %v2303_v6  ;;  %v7745_v32 = vor.u32 %v3327_v49, %v3323_v62 }
 0x2b6   :  { %9863 = vst [vmem:[#allocation30_spill] sm:$0xff] %v7739_v31  ;;  %v3111_v21 = vpack.c.bf16 %v3075_v56, %v3075_v56  ;;  %v3113_v28 = vpack.c.bf16 %v3076_v9, %v3076_v9  ;;  %v7750_v12 = vmax.f32 %v7668_v2, 0.0  ;;  %v7759_v52 = vpack.c.b16 %v7747_v24, %v7717_v43 }
 0x2b7   :  { %v2542_v16 = vrot.slane %v2541_v46, 2  ;;  %v2629_v55 = vadd.f32 %v2628_v10, %v2627_v48  ;;  %v7752_v29 = vadd.f32 %v2480_v33, %v2392_v5  ;;  %v9550_v27 = vunpack.c.l.b16 %v7745_v32 }
 0x2b8   :  { %v3231_v4 = vunpack.c.l.b16 %v3111_v21  ;;  %v3233_v62 = vunpack.c.l.b16 %v3113_v28  ;;  %v2853_v22 = vrot.slane %v7750_v12, 1  ;;  %v2917_v11 = vrot.slane %v7750_v12, 7 }
 0x2b9   :  { %v2543_v58 = vadd.f32 %v2542_v16, %v2541_v46  ;;  %v2630_v57 = vrot.slane %v2629_v55, 2  ;;  %v2592_v2 = vmul.f32 %v7752_v29, %v7752_v29  ;;  %4453 = vmatmul.bf16.gmra.mxu1 %v7705_v40  ;;  %v7768_v33 = vpack.c.b16 %v9550_v27, %v7721_v0 }
 0x2ba   :  { %v2304_v15 = vpop.f32.mrf.mxu2  ;;  %v3283_v48 = vpack.c.b16 %v3231_v4, %v7717_v43  ;;  %v3284_v6 = vpack.c.b16 %v3233_v62, %v7747_v24  ;;  %v9864_v49 = vsub.f32 %v7533_v25, %v7559_v8  ;;  %v2981_v5 = vrot.slane %v7750_v12, 5 }
 0x2bb   :  { %v2544_v56 = vrot.slane %v2543_v58, 1  ;;  %v2631_v9 = vadd.f32 %v2630_v57, %v2629_v55  ;;  %v2305_v46 = vadd.f32 %v2304_v15, %v7623_v7  ;;  %v2393_v10 = vpop.f32.mrf.mxu3  ;;  %v3045_v4 = vsel %vm318_vm0, %v2853_v22, %v2917_v11  ;;  %v6275_v22 = vld [vmem:[#allocation7 + $0x130] sm:$0xff] }
 0x2bc   :  { %v2758_v60 = vmul.f32 %v7628_v37, %v9864_v49  ;;  %v2485_v21 = vpop.f32.mrf.mxu0  ;;  %v3507_v28 = vrot.slane %v3283_v48, 1  ;;  %v3508_v16 = vrot.slane %v3284_v6, 1  ;;  %v3330_v62 = vshrl.u32 %v3283_v48, 16  ;;  %4797 = vmatpush.bf16.msrb.mxu1 %v6275_v22 }
 0x2bd   :  { %v2545_v27 = vadd.f32 %v2544_v56, %v2543_v58  ;;  %v2632_v17 = vrot.slane %v2631_v9, 1  ;;  %v2394_v45 = vadd.f32 %v2393_v10, %v2305_v46  ;;  %v3114_v40 = vpack.c.bf16 %v3045_v4, %v3045_v4 }
 0x2be   :  { %v7780_v25 = vunpack.c.l.b16 %v3507_v28  ;;  %v7782_v8 = vunpack.c.l.b16 %v3508_v16  ;;  %v3332_v37 = vshll.u32 %v3283_v48, 16  ;;  %v3337_v55 = vshrl.u32 %v3284_v6, 16 }
 0x2bf   :  { %v7784_v7 = vmul.f32 0.015625, %v2545_v27  ;;  %v2633_v57 = vadd.f32 %v2632_v17, %v2631_v9  ;;  %v7786_v12 = vadd.f32 %v2482_v1, %v2394_v45  ;;  %v9867_v15 = vpack.c.b16 %v7717_v43, %v7700_v26  ;;  %v7806_v43 = vpop.f32.mrf.mxu1 }
 0x2c0   :  { %9865 = vst [vmem:[#allocation39_spill] sm:$0xff] %v7782_v8  ;;  %v7791_v58 = vunpack.c.l.b16 %v3114_v40  ;;  %4631 = vmatmul.bf16.gmra.mxu3 %v7739_v31  ;;  %v7796_v49 = vpack.c.b16 %v7782_v8, %v7780_v25  ;;  %v3334_v48 = vrot.slane %v3332_v37, 1  ;;  %v3339_v56 = vshll.u32 %v3284_v6, 16 }
 0x2c1   :  { %9866 = vst [vmem:[#allocation22_spill] sm:$0xff] %v7786_v12  ;;  %4720 = vmatmul.bf16.gmra.mxu0 %v9867_v15  ;;  %v2790_v27 = vmax.f32 %v2758_v60, 0.0  ;;  %v2661_v46 = vmul.f32 0.015625, %v2633_v57  ;;  %v2665_v17 = vmul.f32 %v7784_v7, %v7784_v7  ;;  %v7804_v40 = vadd.f32 %v7786_v12, %v7752_v29 }
 0x2c2   :  { %9868 = vst [vmem:[#allocation31_spill] sm:$0xff] %v7796_v49  ;;  %v2593_v45 = vmul.f32 %v7786_v12, %v7786_v12  ;;  %v2307_v1 = vpop.f32.mrf.mxu2  ;;  %v3807_v6 = vpack.c.b16 %v7791_v58, %v7747_v24  ;;  %v7812_v60 = vor.u32 %v3334_v48, %v3330_v62  ;;  %v3341_v9 = vrot.slane %v3339_v56, 1 }
 0x2c3   :  { %v2669_v10 = vsub.f32 %v2661_v46, %v2665_v17  ;;  %v2308_v28 = vadd.f32 %v2307_v1, %v7662_v23  ;;  %v2396_v16 = vpop.f32.mrf.mxu3  ;;  %v2854_v4 = vrot.slane %v2790_v27, 1  ;;  %v2918_v37 = vrot.slane %v2790_v27, 7 }
 0x2c4   :  { %v2634_v57 = vadd.f32 %v2593_v45, %v2592_v2  ;;  %4542 = vmatmul.bf16.gmra.mxu2 %v7768_v33  ;;  %v2487_v15 = vpop.f32.mrf.mxu0  ;;  %v7816_v22 = vor.u32 %v3341_v9, %v3337_v55  ;;  %v3590_v26 = vunpack.c.l.b16 %v7812_v60  ;;  %v2982_v31 = vrot.slane %v2790_v27, 5 }
 0x2c5   :  { %v2673_v12 = vmax.f32 %v2669_v10, 0.0  ;;  %v2397_v24 = vadd.f32 %v2396_v16, %v2308_v28  ;;  %v3046_v62 = vsel %vm318_vm0, %v2854_v4, %v2918_v37  ;;  %v3077_v48 = vsel %vm318_vm0, %v2917_v11, %v2981_v5 }
 0x2c6   :  { %v9556_v23 = vunpack.c.l.b16 %v7816_v22  ;;  %v3116_v56 = vpack.c.bf16 %v3046_v62, %v3046_v62  ;;  %v3078_v46 = vsel %vm318_vm0, %v2918_v37, %v2982_v31  ;;  %v3115_v2 = vpack.c.bf16 %v3077_v48, %v3077_v48 }
 0x2c7   :  { %v7823_v17 = vadd.f32 1e-05, %v2673_v12  ;;  %v7825_v45 = vadd.f32 %v2485_v21, %v2397_v24  ;;  %v3117_v55 = vpack.c.bf16 %v3078_v46, %v3078_v46  ;;  %v2855_v1 = vrot.slane %v7670_v59, 1  ;;  %v7851_v62 = vpop.f32.mrf.mxu1 }
 0x2c8   :  { %v7832_v27 = vpack.c.b16 %v9556_v23, %v3590_v26  ;;  %v7834_v11 = vunpack.c.l.b16 %v3116_v56  ;;  %v3235_v5 = vunpack.c.l.b16 %v3115_v2  ;;  %v9555_v9 = vrot.slane %v7670_v59, 7 }
 0x2c9   :  { %v2221_v31 = vadd.f32 %v7708_v35, %v7408_v38  ;;  %6335 = vrsqrt.f32 %v7823_v17  ;;  %4458 = vmatmul.bf16.gmra.mxu1 %v7759_v52  ;;  %v3237_v10 = vunpack.c.l.b16 %v3117_v55  ;;  %v6274_v35 = vld [vmem:[#allocation7 + $0x128] sm:$0xff]  ;;  %v2594_v48 = vmul.f32 %v7825_v45, %v7825_v45 }
 0x2ca   :  { %9869 = vst [vmem:[#allocation34_spill] sm:$0xff] %v7834_v11  ;;  %v2309_v21 = vpop.f32.mrf.mxu2  ;;  %v7843_v12 = vpack.c.b16 %v7834_v11, %v7791_v58  ;;  %v3285_v28 = vpack.c.b16 %v3235_v5, %v7791_v58  ;;  %v3047_v16 = vsel %vm318_vm0, %v2855_v1, %v9555_v9  ;;  %v2224_v46 = vadd.f32 %v7755_v13, %v7412_v20 }
 0x2cb   :  { %v2310_v4 = vadd.f32 %v2309_v21, %v2221_v31  ;;  %v2398_v37 = vpop.f32.mrf.mxu3  ;;  %v3118_v24 = vpack.c.bf16 %v3047_v16, %v3047_v16  ;;  %v7856_v56 = vpack.c.b16 %v3237_v10, %v7834_v11  ;;  %4798 = vmatpush.bf16.msrb.mxu1 %v6274_v35  ;;  %v2983_v31 = vrot.slane %v7670_v59, 5 }
 0x2cc   :  { %v3346_v58 = vshll.u32 %v3285_v28, 16  ;;  %v2490_v55 = vpop.f32.mrf.mxu0  ;;  %v3509_v21 = vrot.slane %v3285_v28, 1  ;;  %v3344_v16 = vshrl.u32 %v3285_v28, 16  ;;  %v2635_v35 = vadd.f32 %v2634_v57, %v2594_v48 }
 0x2cd   :  { %v2399_v2 = vadd.f32 %v2398_v37, %v2310_v4  ;;  %v7860_v1 = vunpack.c.l.b16 %v3118_v24  ;;  %v3353_v13 = vshll.u32 %v7856_v56, 16  ;;  %v2547_v24 = vadd.f32 %v7804_v40, %v7825_v45 }
 0x2ce   :  { %v3348_v38 = vrot.slane %v3346_v58, 1  ;;  %v7880_v4 = vunpack.c.l.b16 %v3509_v21  ;;  %v9872_v40 = vunpack.c.l.b16 %v7745_v32  ;;  %vm2728_vm5 = vweird.f32 %v7823_v17 }
 0x2cf   :  { %9870 = vst [vmem:[#allocation44_spill] sm:$0xff] %v7860_v1  ;;  %v6336_v9 = vpop.eup %6335  ;;  %v7865_v10 = vadd.f32 %v2487_v15, %v2399_v2  ;;  %v3510_v15 = vrot.slane %v7856_v56, 1  ;;  %v3355_v58 = vrot.slane %v3353_v13, 1 }
 0x2d0   :  { %v2723_v37 = vmul.f32 %v6336_v9, %v7823_v17  ;;  %4636 = vmatmul.bf16.gmra.mxu3 %v7796_v49  ;;  %v3349_v28 = vor.u32 %v3348_v38, %v3344_v16  ;;  %vm2729_vm4 = vweird.f32 %v6336_v9 }
 0x2d1   :  { %4725 = vmatmul.bf16.gmra.mxu0 %v3807_v6  ;;  %v3351_v6 = vshrl.u32 %v7856_v56, 16  ;;  %v2595_v57 = vmul.f32 %v7865_v10, %v7865_v10  ;;  %vm2730_vm6 = vmor %vm2728_vm5, %vm2729_vm4 }
 0x2d2   :  { %v2724_v20 = vmul.f32 %v6336_v9, %v2723_v37  ;;  %v2312_v5 = vpop.f32.mrf.mxu2  ;;  %v3594_v23 = vunpack.c.l.b16 %v3349_v28  ;;  %v9871_v37 = vunpack.c.l.b16 %v7712_v50  ;;  %v9873_v50 = vunpack.c.l.b16 %v7816_v22 }
 0x2d3   :  { %v2313_v38 = vadd.f32 %v2312_v5, %v2224_v46  ;;  %v2401_v48 = vpop.f32.mrf.mxu3  ;;  %v3356_v16 = vor.u32 %v3355_v58, %v3351_v6  ;;  %v7900_v46 = vpack.c.b16 %v3590_v26, %v9872_v40  ;;  %v9874_v26 = vrot.slane %v7670_v59, 7 }
 0x2d4   :  { %v2725_v13 = vmul.f32 0.5, %v2724_v20  ;;  %4547 = vmatmul.bf16.gmra.mxu2 %v7832_v27  ;;  %v7892_v21 = vpack.c.b16 %v7721_v0, %v9871_v37  ;;  %v7908_v58 = vpack.c.b16 %v3594_v23, %v9873_v50  ;;  %v7910_v0 = vpop.f32.mrf.mxu1  ;;  %v2548_v40 = vadd.f32 %v2547_v24, %v7865_v10 }
 0x2d5   :  { %v2402_v5 = vadd.f32 %v2401_v48, %v2313_v38  ;;  %v7902_v6 = vunpack.c.l.b16 %v3356_v16  ;;  %v3079_v60 = vsel %vm318_vm0, %v9874_v26, %v2983_v31  ;;  %v2492_v48 = vpop.f32.mrf.mxu0  ;;  %v2636_v32 = vadd.f32 %v2635_v35, %v2595_v57 }
 0x2d6   :  { %v2726_v37 = vsub.f32 1.5, %v2725_v13  ;;  %v3119_v16 = vpack.c.bf16 %v3079_v60, %v3079_v60  ;;  %v2226_v13 = vadd.f32 %v7806_v43, %v7422_v19  ;;  %v9876_v19 = vsub.f32 %v7715_v30, %v7784_v7 }
 0x2d7   :  { %v7918_v38 = vadd.f32 %v2490_v55, %v2402_v5  ;;  %v7921_v22 = vpack.c.b16 %v7902_v6, %v3594_v23  ;;  %v7930_v5 = vunpack.c.l.b16 %v3510_v15  ;;  %v9877_v57 = vsub.f32 %v7557_v53, %v7784_v7 }
 0x2d8   :  { %v2727_v50 = vmul.f32 %v6336_v9, %v2726_v37  ;;  %v3541_v55 = vunpack.c.l.b16 %v3119_v16  ;;  %v9878_v60 = vsub.f32 %v7561_v54, %v7784_v7  ;;  %v9880_v53 = vpack.c.b16 %v7860_v1, %v7834_v11 }
 0x2d9   :  { %v2549_v59 = vadd.f32 %v2548_v40, %v7918_v38  ;;  %v2596_v31 = vmul.f32 %v7918_v38, %v7918_v38  ;;  %4463 = vmatmul.bf16.gmra.mxu1 %v7843_v12  ;;  %9875 = vst [vmem:[#allocation46_spill] sm:$0xff] %v7930_v5  ;;  %v7948_v30 = vpack.c.b16 %v7930_v5, %v7880_v4 }
 0x2da   :  { %v2731_v24 = vsel %vm2730_vm6, %v6336_v9, %v2727_v50  ;;  %v2314_v23 = vpop.f32.mrf.mxu2  ;;  %v7944_v9 = vpack.c.b16 %v3541_v55, %v7860_v1 }
 0x2db   :  { %v7935_v43 = vmul.f32 %v2731_v24, %v9876_v19  ;;  %v2637_v17 = vadd.f32 %v2636_v32, %v2596_v31  ;;  %v2315_v37 = vadd.f32 %v2314_v23, %v2226_v13  ;;  %v2403_v35 = vpop.f32.mrf.mxu3  ;;  %v2760_v26 = vmul.f32 %v2731_v24, %v9877_v57  ;;  %9879 = vst [vmem:[#allocation54_spill] sm:$0xff] %v7948_v30 }
 0x2dc   :  { %v2761_v40 = vmul.f32 %v2731_v24, %v9878_v60  ;;  %v7955_v54 = vpop.f32.mrf.mxu1  ;;  %v2229_v19 = vadd.f32 %v7851_v62, %v7425_v34 }
 0x2dd   :  { %v2404_v15 = vadd.f32 %v2403_v35, %v2315_v37  ;;  %v2792_v16 = vmax.f32 %v2760_v26, 0.0  ;;  %v2495_v35 = vpop.f32.mrf.mxu0 }
 0x2de   :  { %v2793_v32 = vmax.f32 %v2761_v40, 0.0 }
 0x2df   :  { %v7950_v13 = vadd.f32 %v2492_v48, %v2404_v15  ;;  %v2857_v50 = vrot.slane %v2792_v16, 1  ;;  %v2921_v31 = vrot.slane %v2792_v16, 7  ;;  %v2686_v15 = vsub.f32 %v7594_v18, %v7784_v7 }
 0x2e0   :  { %4641 = vmatmul.bf16.gmra.mxu3 %v7948_v30  ;;  %v2856_v55 = vrot.slane %v2793_v32, 1  ;;  %v2920_v23 = vrot.slane %v2793_v32, 7 }
 0x2e1   :  { %4730 = vmatmul.bf16.gmra.mxu0 %v9880_v53  ;;  %v2550_v37 = vadd.f32 %v2549_v59, %v7950_v13  ;;  %v2597_v48 = vmul.f32 %v7950_v13, %v7950_v13  ;;  %v3049_v57 = vsel %vm318_vm0, %v2857_v50, %v2921_v31  ;;  %v2762_v56 = vmul.f32 %v2731_v24, %v2686_v15 }
 0x2e2   :  { %v2317_v26 = vpop.f32.mrf.mxu2  ;;  %v3048_v60 = vsel %vm318_vm0, %v2856_v55, %v2920_v23  ;;  %v3122_v40 = vpack.c.bf16 %v3049_v57, %v3049_v57  ;;  %v9881_v50 = vsub.f32 %v7599_v3, %v7784_v7  ;;  %v9882_v55 = vsub.f32 %v7611_v39, %v7784_v7 }
 0x2e3   :  { %v2638_v20 = vadd.f32 %v2637_v17, %v2597_v48  ;;  %v2318_v34 = vadd.f32 %v2317_v26, %v2229_v19  ;;  %v2406_v62 = vpop.f32.mrf.mxu3  ;;  %v3120_v59 = vpack.c.bf16 %v3048_v60, %v3048_v60  ;;  %v9883_v17 = vsub.f32 %v7674_v42, %v7784_v7 }
 0x2e4   :  { %4552 = vmatmul.bf16.gmra.mxu2 %v7921_v22  ;;  %v3240_v28 = vunpack.c.l.b16 %v3122_v40  ;;  %v2763_v2 = vmul.f32 %v2731_v24, %v9881_v50  ;;  %v2764_v57 = vmul.f32 %v2731_v24, %v9882_v55  ;;  %v9884_v48 = vsub.f32 %v7689_v41, %v7784_v7 }
 0x2e5   :  { %v2407_v18 = vadd.f32 %v2406_v62, %v2318_v34  ;;  %v3238_v30 = vunpack.c.l.b16 %v3120_v59  ;;  %v7979_v19 = vmul.f32 %v2731_v24, %v9883_v17  ;;  %v2794_v60 = vmax.f32 %v2762_v56, 0.0  ;;  %v7998_v56 = vpop.f32.mrf.mxu1 }
 0x2e6   :  { %v7984_v26 = vmul.f32 %v2731_v24, %v9884_v48  ;;  %v7986_v40 = vmax.f32 %v2763_v2, 0.0  ;;  %v2231_v3 = vadd.f32 %v7910_v0, %v7430_v36  ;;  %v7992_v34 = vmax.f32 %v2764_v57, 0.0 }
 0x2e7   :  { %v7990_v39 = vadd.f32 %v2495_v35, %v2407_v18  ;;  %v3819_v15 = vpack.c.b16 %v3240_v28, %v3238_v30  ;;  %v2984_v62 = vrot.slane %v2793_v32, 5  ;;  %v2985_v42 = vrot.slane %v2792_v16, 5 }
 0x2e8   :  { %v2858_v59 = vrot.slane %v2794_v60, 1  ;;  %v2922_v50 = vrot.slane %v2794_v60, 7  ;;  %v2986_v7 = vrot.slane %v2794_v60, 5  ;;  %v2859_v2 = vrot.slane %v7986_v40, 1 }
 0x2e9   :  { %v2551_v55 = vadd.f32 %v2550_v37, %v7990_v39  ;;  %v2598_v41 = vmul.f32 %v7990_v39, %v7990_v39  ;;  %4468 = vmatmul.bf16.gmra.mxu1 %v3819_v15  ;;  %v3080_v0 = vsel %vm318_vm0, %v2920_v23, %v2984_v62  ;;  %v3081_v24 = vsel %vm318_vm0, %v2921_v31, %v2985_v42  ;;  %v2497_v37 = vpop.f32.mrf.mxu0 }
 0x2ea   :  { %v2319_v36 = vpop.f32.mrf.mxu2  ;;  %v3050_v16 = vsel %vm318_vm0, %v2858_v59, %v2922_v50  ;;  %v9559_v32 = vrot.slane %v7986_v40, 7  ;;  %v3121_v18 = vpack.c.bf16 %v3080_v0, %v3080_v0  ;;  %v3123_v17 = vpack.c.bf16 %v3081_v24, %v3081_v24 }
 0x2eb   :  { %v2639_v35 = vadd.f32 %v2638_v20, %v2598_v41  ;;  %v2320_v57 = vadd.f32 %v2319_v36, %v2231_v3  ;;  %v2408_v48 = vpop.f32.mrf.mxu3  ;;  %v3124_v60 = vpack.c.bf16 %v3050_v16, %v3050_v16  ;;  %v3082_v15 = vsel %vm318_vm0, %v2922_v50, %v2986_v7 }
 0x2ec   :  { %v3051_v53 = vsel %vm318_vm0, %v2859_v2, %v9559_v32  ;;  %v2860_v23 = vrot.slane %v7992_v34, 1  ;;  %v3239_v62 = vunpack.c.l.b16 %v3121_v18  ;;  %v3241_v42 = vunpack.c.l.b16 %v3123_v17 }
 0x2ed   :  { %v2409_v31 = vadd.f32 %v2408_v48, %v2320_v57  ;;  %v3125_v59 = vpack.c.bf16 %v3082_v15, %v3082_v15  ;;  %v8009_v49 = vunpack.c.l.b16 %v3124_v60  ;;  %v3126_v20 = vpack.c.bf16 %v3051_v53, %v3051_v53 }
 0x2ee   :  { %v2924_v3 = vrot.slane %v7992_v34, 7  ;;  %v3287_v36 = vpack.c.b16 %v3239_v62, %v3238_v30  ;;  %v3288_v0 = vpack.c.b16 %v3241_v42, %v3240_v28  ;;  %v3822_v50 = vpack.c.b16 %v3238_v30, %v3240_v28  ;;  %v8027_v42 = vpop.f32.mrf.mxu1 }
 0x2ef   :  { %v8012_v41 = vadd.f32 %v2497_v37, %v2409_v31  ;;  %v8015_v7 = vpack.c.b16 %v8009_v49, %v3238_v30  ;;  %v3243_v2 = vunpack.c.l.b16 %v3125_v59  ;;  %v8017_v24 = vunpack.c.l.b16 %v3126_v20 }
 0x2f0   :  { %v3052_v16 = vsel %vm318_vm0, %v2860_v23, %v2924_v3  ;;  %v3511_v18 = vrot.slane %v3287_v36, 1  ;;  %v3512_v17 = vrot.slane %v3288_v0, 1  ;;  %v3358_v37 = vshrl.u32 %v3287_v36, 16 }
 0x2f1   :  { %9885 = vst [vmem:[#allocation57_spill] sm:$0xff] %v8015_v7  ;;  %v2552_v57 = vadd.f32 %v2551_v55, %v8012_v41  ;;  %v2599_v53 = vmul.f32 %v8012_v41, %v8012_v41  ;;  %4735 = vmatmul.bf16.gmra.mxu0 %v3822_v50  ;;  %v3360_v48 = vshll.u32 %v3287_v36, 16  ;;  %v3365_v60 = vshrl.u32 %v3288_v0, 16  ;;  %v8032_v36 = vpop.f32.mrf.mxu0 }
 0x2f2   :  { %v3367_v28 = vshll.u32 %v3288_v0, 16  ;;  %v8023_v31 = vunpack.c.l.b16 %v3511_v18  ;;  %v8025_v62 = vunpack.c.l.b16 %v3512_v17  ;;  %v3289_v59 = vpack.c.b16 %v3243_v2, %v8009_v49 }
 0x2f3   :  { %v2553_v15 = vrot.slane %v2552_v57, 4  ;;  %v2640_v30 = vadd.f32 %v2639_v35, %v2599_v53  ;;  %v3362_v23 = vrot.slane %v3360_v48, 1  ;;  %v3828_v20 = vpack.c.b16 %v8017_v24, %v8009_v49 }
 0x2f4   :  { %9886 = vst [vmem:[#allocation43_spill] sm:$0xff] %v8023_v31  ;;  %v3369_v55 = vrot.slane %v3367_v28, 1  ;;  %v3821_v35 = vpack.c.b16 %v8025_v62, %v8023_v31  ;;  %v3128_v0 = vpack.c.bf16 %v3052_v16, %v3052_v16  ;;  %v2987_v17 = vrot.slane %v7986_v40, 5 }
 0x2f5   :  { %9887 = vst [vmem:[#allocation42_spill] sm:$0xff] %v8025_v62  ;;  %v2554_v50 = vadd.f32 %v2553_v15, %v2552_v57  ;;  %v2641_v32 = vrot.slane %v2640_v30, 4  ;;  %v3363_v53 = vor.u32 %v3362_v23, %v3358_v37  ;;  %v8042_v49 = vmax.f32 %v7979_v19, 0.0 }
 0x2f6   :  { %v8036_v18 = vor.u32 %v3369_v55, %v3365_v60  ;;  %4646 = vmatmul.bf16.gmra.mxu3 %v3821_v35  ;;  %v8039_v2 = vunpack.c.l.b16 %v3128_v0  ;;  %v3374_v5 = vshll.u32 %v3289_v59, 16  ;;  %v2988_v16 = vrot.slane %v7992_v34, 5  ;;  %v2322_v35 = vpop.f32.mrf.mxu2  ;;  %v2411_v0 = vpop.f32.mrf.mxu3 }
 0x2f7   :  { %v2555_v48 = vrot.slane %v2554_v50, 2  ;;  %v2642_v28 = vadd.f32 %v2641_v32, %v2640_v30  ;;  %v8044_v57 = vunpack.c.l.b16 %v3363_v53  ;;  %v2234_v37 = vadd.f32 %v7955_v54, %v7434_v63 }
 0x2f8   :  { %9888 = vst [vmem:[#allocation55_spill] sm:$0xff] %v8036_v18  ;;  %v9565_v15 = vunpack.c.l.b16 %v8036_v18  ;;  %v8053_v32 = vpack.c.b16 %v8039_v2, %v8017_v24  ;;  %v9890_v30 = vrot.slane %v7986_v40, 7  ;;  %v3084_v34 = vsel %vm318_vm0, %v2924_v3, %v2988_v16  ;;  %v8065_v3 = vpop.f32.mrf.mxu1 }
 0x2f9   :  { %v2556_v60 = vadd.f32 %v2555_v48, %v2554_v50  ;;  %v2643_v23 = vrot.slane %v2642_v28, 2  ;;  %4473 = vmatmul.bf16.gmra.mxu1 %v8015_v7  ;;  %v3555_v63 = vshll.u32 %v7944_v9, 16  ;;  %v3513_v53 = vrot.slane %v3289_v59, 1 }
 0x2fa   :  { %9889 = vst [vmem:[#allocation61_spill] sm:$0xff] %v8053_v32  ;;  %v3820_v19 = vpack.c.b16 %v9565_v15, %v8044_v57  ;;  %v3083_v55 = vsel %vm318_vm0, %v9890_v30, %v2987_v17  ;;  %v3376_v62 = vrot.slane %v3374_v5, 1  ;;  %v3129_v7 = vpack.c.bf16 %v3084_v34, %v3084_v34  ;;  %v2502_v30 = vpop.f32.mrf.mxu0  ;;  %v6273_v34 = vld [vmem:[#allocation7 + $0x120] sm:$0xff] }
 0x2fb   :  { %v2557_v54 = vrot.slane %v2556_v60, 1  ;;  %v2644_v50 = vadd.f32 %v2643_v23, %v2642_v28  ;;  %v3127_v48 = vpack.c.bf16 %v3083_v55, %v3083_v55  ;;  %v2861_v18 = vrot.slane %v8042_v49, 1  ;;  %4799 = vmatpush.bf16.msrb.mxu1 %v6273_v34 }
 0x2fc   :  { %4557 = vmatmul.bf16.gmra.mxu2 %v3820_v19  ;;  %v2925_v15 = vrot.slane %v8042_v49, 7  ;;  %v2323_v17 = vadd.f32 %v2322_v35, %v2234_v37  ;;  %v3372_v16 = vshrl.u32 %v3289_v59, 16  ;;  %v3553_v23 = vshrl.u32 %v7944_v9, 16 }
 0x2fd   :  { %v2558_v40 = vadd.f32 %v2557_v54, %v2556_v60  ;;  %v2645_v1 = vrot.slane %v2644_v50, 1  ;;  %v3557_v19 = vrot.slane %v3555_v63, 1  ;;  %v3245_v11 = vunpack.c.l.b16 %v3127_v48 }
 0x2fe   :  { %v3053_v28 = vsel %vm318_vm0, %v2861_v18, %v2925_v15  ;;  %v3247_v8 = vunpack.c.l.b16 %v3129_v7  ;;  %v8073_v60 = vunpack.c.l.b16 %v3513_v53  ;;  %v8075_v37 = vor.u32 %v3376_v62, %v3372_v16  ;;  %v2413_v53 = vpop.f32.mrf.mxu3 }
 0x2ff   :  { %v8071_v5 = vmul.f32 0.015625, %v2558_v40  ;;  %v2646_v55 = vadd.f32 %v2645_v1, %v2644_v50  ;;  %v3130_v54 = vpack.c.bf16 %v3053_v28, %v3053_v28  ;;  %v2798_v59 = vmax.f32 %v7984_v26, 0.0  ;;  %v2324_v50 = vpop.f32.mrf.mxu2 }
 0x300   :  { %9891 = vst [vmem:[#allocation59_spill] sm:$0xff] %v8073_v60  ;;  %v2412_v40 = vadd.f32 %v2411_v0, %v2323_v17  ;;  %v2236_v1 = vadd.f32 %v7998_v56, %v7439_v47  ;;  %v3290_v26 = vpack.c.b16 %v3245_v11, %v8017_v24  ;;  %v3291_v48 = vpack.c.b16 %v3247_v8, %v8039_v2 }
 0x301   :  { %9892 = vst [vmem:[#allocation52_spill] sm:$0xff] %v8075_v37  ;;  %v2662_v35 = vmul.f32 0.015625, %v2646_v55  ;;  %v2666_v18 = vmul.f32 %v8071_v5, %v8071_v5  ;;  %4740 = vmatmul.bf16.gmra.mxu0 %v3828_v20  ;;  %v8084_v7 = vunpack.c.l.b16 %v3130_v54  ;;  %v8088_v16 = vor.u32 %v3557_v19, %v3553_v23 }
 0x302   :  { %v2325_v28 = vadd.f32 %v2324_v50, %v2236_v1  ;;  %v8092_v0 = vpack.c.b16 %v8073_v60, %v8023_v31  ;;  %v9569_v20 = vunpack.c.l.b16 %v8075_v37  ;;  %v8098_v17 = vadd.f32 %v8032_v36, %v2412_v40  ;;  %v2505_v55 = vpop.f32.mrf.mxu0 }
 0x303   :  { %v2670_v62 = vsub.f32 %v2662_v35, %v2666_v18  ;;  %v3834_v47 = vpack.c.b16 %v8084_v7, %v8039_v2  ;;  %v2862_v11 = vrot.slane %v2798_v59, 1  ;;  %v2926_v24 = vrot.slane %v2798_v59, 7  ;;  %v8106_v18 = vpop.f32.mrf.mxu1 }
 0x304   :  { %9893 = vst [vmem:[#allocation62_spill] sm:$0xff] %v8092_v0  ;;  %v2239_v8 = vadd.f32 %v8027_v42, %v7443_v51  ;;  %v2414_v23 = vadd.f32 %v2413_v53, %v2325_v28  ;;  %v2989_v19 = vrot.slane %v8042_v49, 5  ;;  %v3381_v54 = vshll.u32 %v3290_v26, 16 }
 0x305   :  { %v2674_v56 = vmax.f32 %v2670_v62, 0.0  ;;  %v3388_v35 = vshll.u32 %v3291_v48, 16  ;;  %v2990_v2 = vrot.slane %v2798_v59, 5  ;;  %v8113_v40 = vpack.c.b16 %v9569_v20, %v8044_v57 }
 0x306   :  { %4651 = vmatmul.bf16.gmra.mxu3 %v8092_v0  ;;  %v8108_v36 = vadd.f32 %v2502_v30, %v2414_v23  ;;  %v3514_v51 = vrot.slane %v3290_v26, 1  ;;  %v2600_v1 = vmul.f32 %v8098_v17, %v8098_v17  ;;  %v3515_v59 = vrot.slane %v3291_v48, 1  ;;  %v2416_v20 = vpop.f32.mrf.mxu3 }
 0x307   :  { %v8103_v34 = vadd.f32 1e-05, %v2674_v56  ;;  %v3054_v62 = vsel %vm318_vm0, %v2862_v11, %v2926_v24  ;;  %v3085_v53 = vsel %vm318_vm0, %v2925_v15, %v2989_v19  ;;  %v3086_v28 = vsel %vm318_vm0, %v2926_v24, %v2990_v2  ;;  %v2327_v23 = vpop.f32.mrf.mxu2 }
 0x308   :  { %v2559_v30 = vadd.f32 %v8108_v36, %v8098_v17  ;;  %v2601_v50 = vmul.f32 %v8108_v36, %v8108_v36  ;;  %v8130_v56 = vmax.f32 %v7935_v43, 0.0  ;;  %v3379_v63 = vshrl.u32 %v3290_v26, 16 }
 0x309   :  { %6337 = vrsqrt.f32 %v8103_v34  ;;  %4478 = vmatmul.bf16.gmra.mxu1 %v8053_v32  ;;  %v3383_v42 = vrot.slane %v3381_v54, 1  ;;  %v3390_v11 = vrot.slane %v3388_v35, 1  ;;  %v2328_v60 = vadd.f32 %v2327_v23, %v2239_v8  ;;  %v9898_v8 = vld [vmem:[#allocation22_spill] sm:$0xff] }
 0x30a   :  { %9894 = vst [vmem:[#allocation25_spill] sm:$0xff] %v8130_v56  ;;  %v2647_v0 = vadd.f32 %v2601_v50, %v2600_v1  ;;  %v3386_v32 = vshrl.u32 %v3291_v48, 16  ;;  %v9895_v49 = vunpack.c.l.b16 %v8088_v16  ;;  %v2507_v15 = vpop.f32.mrf.mxu0  ;;  %v3132_v24 = vpack.c.bf16 %v3054_v62, %v3054_v62 }
 0x30b   :  { %v3131_v19 = vpack.c.bf16 %v3085_v53, %v3085_v53  ;;  %v3133_v43 = vpack.c.bf16 %v3086_v28, %v3086_v28  ;;  %v2692_v2 = vsub.f32 %v7752_v29, %v8071_v5  ;;  %v2417_v26 = vadd.f32 %v2416_v20, %v2328_v60 }
 0x30c   :  { %4562 = vmatmul.bf16.gmra.mxu2 %v8113_v40  ;;  %v8136_v37 = vpack.c.b16 %v9895_v49, %v7902_v6  ;;  %v8140_v54 = vunpack.c.l.b16 %v3514_v51  ;;  %v8142_v35 = vunpack.c.l.b16 %v3515_v59  ;;  %v2693_v48 = vsub.f32 %v9898_v8, %v8071_v5  ;;  %v9901_v59 = vld [vmem:[#allocation21_spill] sm:$0xff] }
 0x30d   :  { %v8146_v50 = vor.u32 %v3383_v42, %v3379_v63  ;;  %v8148_v23 = vor.u32 %v3390_v11, %v3386_v32  ;;  %v2863_v62 = vrot.slane %v8130_v56, 1  ;;  %v8153_v29 = vadd.f32 %v2505_v55, %v2417_v26  ;;  %v8159_v63 = vpop.f32.mrf.mxu1 }
 0x30e   :  { %9896 = vst [vmem:[#allocation28_spill] sm:$0xff] %v8140_v54  ;;  %v8155_v60 = vunpack.c.l.b16 %v3132_v24  ;;  %v3249_v20 = vunpack.c.l.b16 %v3131_v19  ;;  %v3251_v51 = vunpack.c.l.b16 %v3133_v43  ;;  %v2241_v49 = vadd.f32 %v8065_v3, %v9901_v59  ;;  %v2418_v53 = vpop.f32.mrf.mxu3 }
 0x30f   :  { %9897 = vst [vmem:[#allocation35_spill] sm:$0xff] %v8142_v35  ;;  %v6338_v1 = vpop.eup %6337  ;;  %v2560_v42 = vadd.f32 %v2559_v30, %v8153_v29  ;;  %v2602_v11 = vmul.f32 %v8153_v29, %v8153_v29  ;;  %v2329_v8 = vpop.f32.mrf.mxu2  ;;  %v9903_v3 = vrot.slane %v8130_v56, 7  ;;  %vm2738_vm8 = vweird.f32 %v8103_v34 }
 0x310   :  { %9899 = vst [vmem:[#allocation38_spill] sm:$0xff] %v8148_v23  ;;  %v2733_v28 = vmul.f32 %v6338_v1, %v8103_v34  ;;  %v2330_v30 = vadd.f32 %v2329_v8, %v2241_v49  ;;  %vm2739_vm7 = vweird.f32 %v6338_v1  ;;  %v9907_v34 = vunpack.c.l.b16 %v8146_v50 }
 0x311   :  { %4745 = vmatmul.bf16.gmra.mxu0 %v3834_v47  ;;  %9900 = vst [vmem:[#allocation48_spill] sm:$0xff] %v8155_v60  ;;  %v8166_v47 = vpack.c.b16 %v8142_v35, %v8140_v54  ;;  %v3055_v19 = vsel %vm318_vm0, %v2863_v62, %v9903_v3  ;;  %v2648_v26 = vadd.f32 %v2647_v0, %v2602_v11  ;;  %v9904_v62 = vunpack.c.l.b16 %v8088_v16  ;;  %v9906_v11 = vld [vmem:[#allocation29_spill] sm:$0xff]  ;;  %vm2740_vm9 = vmor %vm2738_vm8, %vm2739_vm7 }
 0x312   :  { %v2734_v32 = vmul.f32 %v6338_v1, %v2733_v28  ;;  %v6272_v28 = vld [vmem:[#allocation7 + $0x118] sm:$0xff]  ;;  %v2510_v31 = vpop.f32.mrf.mxu0  ;;  %v3292_v35 = vpack.c.b16 %v3249_v20, %v8084_v7  ;;  %v3293_v54 = vpack.c.b16 %v3251_v51, %v8155_v60  ;;  %v2419_v56 = vadd.f32 %v2418_v53, %v2330_v30 }
 0x313   :  { %9902 = vst [vmem:[#allocation51_spill] sm:$0xff] %v8166_v47  ;;  %4800 = vmatpush.bf16.msrb.mxu1 %v6272_v28  ;;  %v8184_v49 = vpack.c.b16 %v7902_v6, %v9904_v62  ;;  %v8189_v20 = vpack.c.b16 %v8155_v60, %v8084_v7  ;;  %v3134_v51 = vpack.c.bf16 %v3055_v19, %v3055_v19 }
 0x314   :  { %v2735_v43 = vmul.f32 0.5, %v2734_v32  ;;  %v8192_v53 = vadd.f32 %v2507_v15, %v2419_v56  ;;  %v2244_v8 = vadd.f32 %v8106_v18, %v9906_v11  ;;  %v3395_v6 = vshll.u32 %v3292_v35, 16 }
 0x315   :  { %9905 = vst [vmem:[#allocation79_spill] sm:$0xff] %v8189_v20  ;;  %v3402_v16 = vshll.u32 %v3293_v54, 16  ;;  %v9908_v56 = vunpack.c.l.b16 %v8148_v23  ;;  %v9909_v18 = vsub.f32 %v8012_v41, %v8071_v5  ;;  %v8215_v30 = vunpack.c.l.b16 %v3134_v51 }
 0x316   :  { %v2736_v55 = vsub.f32 1.5, %v2735_v43  ;;  %4656 = vmatmul.bf16.gmra.mxu3 %v8166_v47  ;;  %v2561_v7 = vadd.f32 %v2560_v42, %v8192_v53  ;;  %v3516_v11 = vrot.slane %v3292_v35, 1  ;;  %v3397_v41 = vrot.slane %v3395_v6, 1 }
 0x317   :  { %v8207_v15 = vpack.c.b16 %v9908_v56, %v9907_v34  ;;  %v2332_v43 = vpop.f32.mrf.mxu2  ;;  %9910 = vst [vmem:[#allocation78_spill] sm:$0xff] %v8215_v30  ;;  %v3517_v34 = vrot.slane %v3293_v54, 1  ;;  %v2248_v56 = vpop.f32.mrf.mxu1  ;;  %v3404_v24 = vrot.slane %v3402_v16, 1  ;;  %v3393_v47 = vshrl.u32 %v3292_v35, 16 }
 0x318   :  { %v2737_v32 = vmul.f32 %v6338_v1, %v2736_v55  ;;  %v2603_v55 = vmul.f32 %v8192_v53, %v8192_v53 }
 0x319   :  { %4483 = vmatmul.bf16.gmra.mxu1 %v8189_v20  ;;  %v3400_v20 = vshrl.u32 %v3293_v54, 16  ;;  %v8236_v35 = vunpack.c.l.b16 %v3517_v34  ;;  %v8238_v54 = vor.u32 %v3397_v41, %v3393_v47  ;;  %v2695_v41 = vsub.f32 %v7865_v10, %v8071_v5 }
 0x31a   :  { %v8198_v3 = vsel %vm2740_vm9, %v6338_v1, %v2737_v32  ;;  %v2421_v1 = vpop.f32.mrf.mxu3  ;;  %v2649_v62 = vadd.f32 %v2648_v26, %v2603_v55  ;;  %v2333_v32 = vadd.f32 %v2332_v43, %v2244_v8  ;;  %v2512_v0 = vpop.f32.mrf.mxu0  ;;  %v9911_v55 = vld [vmem:[#allocation17_spill] sm:$0xff]  ;;  %v8233_v43 = vunpack.c.l.b16 %v3516_v11 }
 0x31b   :  { %v8213_v19 = vmul.f32 %v8198_v3, %v9909_v18  ;;  %v2768_v42 = vmul.f32 %v8198_v3, %v2692_v2  ;;  %v2769_v28 = vmul.f32 %v8198_v3, %v2693_v48  ;;  %v3840_v2 = vpack.c.b16 %v8215_v30, %v8155_v60  ;;  %9913 = vst [vmem:[#allocation47_spill] sm:$0xff] %v8236_v35 }
 0x31c   :  { %4567 = vmatmul.bf16.gmra.mxu2 %v8207_v15  ;;  %v2422_v51 = vadd.f32 %v2421_v1, %v2333_v32  ;;  %v2246_v6 = vadd.f32 %v8159_v63, %v9911_v55  ;;  %9912 = vst [vmem:[#allocation77_spill] sm:$0xff] %v8233_v43 }
 0x31d   :  { %v8220_v18 = vmax.f32 %v2768_v42, 0.0  ;;  %v8222_v59 = vmax.f32 %v2769_v28, 0.0  ;;  %9914 = vst [vmem:[#allocation80_spill] sm:$0xff] %v8238_v54  ;;  %v3405_v42 = vor.u32 %v3404_v24, %v3400_v20  ;;  %v8249_v24 = vpack.c.b16 %v8236_v35, %v8233_v43 }
 0x31e   :  { %v8231_v16 = vadd.f32 %v2510_v31, %v2422_v51 }
 0x31f   :  { %v2864_v48 = vrot.slane %v8222_v59, 1  ;;  %v2865_v26 = vrot.slane %v8220_v18, 1  ;;  %v2928_v8 = vrot.slane %v8222_v59, 7  ;;  %v2929_v1 = vrot.slane %v8220_v18, 7  ;;  %v2334_v11 = vpop.f32.mrf.mxu2  ;;  %9915 = vst [vmem:[#allocation58_spill] sm:$0xff] %v8249_v24 }
 0x320   :  { %v2562_v32 = vadd.f32 %v2561_v7, %v8231_v16  ;;  %v2604_v60 = vmul.f32 %v8231_v16, %v8231_v16  ;;  %v2335_v34 = vadd.f32 %v2334_v11, %v2246_v6  ;;  %v2694_v7 = vsub.f32 %v7825_v45, %v8071_v5 }
 0x321   :  { %4750 = vmatmul.bf16.gmra.mxu0 %v3840_v2  ;;  %v3056_v28 = vsel %vm318_vm0, %v2864_v48, %v2928_v8  ;;  %v3057_v31 = vsel %vm318_vm0, %v2865_v26, %v2929_v1  ;;  %v9585_v48 = vunpack.c.l.b16 %v8238_v54  ;;  %v9917_v45 = vsub.f32 %v7918_v38, %v8071_v5 }
 0x322   :  { %v3136_v63 = vpack.c.bf16 %v3056_v28, %v3056_v28  ;;  %v2423_v51 = vpop.f32.mrf.mxu3  ;;  %v3138_v55 = vpack.c.bf16 %v3057_v31, %v3057_v31  ;;  %v2650_v23 = vadd.f32 %v2649_v62, %v2604_v60  ;;  %v2515_v47 = vpop.f32.mrf.mxu0  ;;  %v8258_v60 = vunpack.c.l.b16 %v3405_v42 }
 0x323   :  { %v2424_v2 = vadd.f32 %v2423_v51, %v2335_v34  ;;  %v2250_v62 = vpop.f32.mrf.mxu1  ;;  %v2770_v6 = vmul.f32 %v8198_v3, %v2694_v7  ;;  %v2771_v28 = vmul.f32 %v8198_v3, %v2695_v41  ;;  %v2772_v10 = vmul.f32 %v8198_v3, %v9917_v45 }
 0x324   :  { %v8245_v30 = vunpack.c.l.b16 %v3136_v63  ;;  %v8251_v20 = vunpack.c.l.b16 %v3138_v55  ;;  %9916 = vst [vmem:[#allocation63_spill] sm:$0xff] %v8258_v60  ;;  %v9918_v42 = vsub.f32 %v7950_v13, %v8071_v5  ;;  %v9919_v11 = vsub.f32 %v7990_v39, %v8071_v5  ;;  %v9920_v55 = vld [vmem:[#allocation20_spill] sm:$0xff] }
 0x325   :  { %v8269_v31 = vadd.f32 %v2512_v0, %v2424_v2  ;;  %v2249_v34 = vadd.f32 %v2248_v56, %v9920_v55  ;;  %v2802_v38 = vmax.f32 %v2770_v6, 0.0  ;;  %v8284_v7 = vmax.f32 %v2771_v28, 0.0 }
 0x326   :  { %4661 = vmatmul.bf16.gmra.mxu3 %v8249_v24  ;;  %v3846_v26 = vpack.c.b16 %v8251_v20, %v8245_v30  ;;  %v8275_v63 = vmul.f32 %v8198_v3, %v9918_v42  ;;  %v8281_v51 = vmul.f32 %v8198_v3, %v9919_v11  ;;  %v8292_v41 = vpack.c.b16 %v8258_v60, %v9585_v48 }
 0x327   :  { %v2563_v0 = vadd.f32 %v2562_v32, %v8269_v31  ;;  %v2605_v13 = vmul.f32 %v8269_v31, %v8269_v31  ;;  %v8294_v39 = vmax.f32 %v2772_v10, 0.0  ;;  %v2337_v5 = vpop.f32.mrf.mxu2  ;;  %v2992_v56 = vrot.slane %v8222_v59, 5 }
 0x328   :  { %9921 = vst [vmem:[#allocation66_spill] sm:$0xff] %v8292_v41  ;;  %v2993_v2 = vrot.slane %v8220_v18, 5  ;;  %v2930_v6 = vrot.slane %v2802_v38, 7  ;;  %v2338_v32 = vadd.f32 %v2337_v5, %v2249_v34  ;;  %v2994_v45 = vrot.slane %v2802_v38, 5 }
 0x329   :  { %4488 = vmatmul.bf16.gmra.mxu1 %v3846_v26  ;;  %v2866_v26 = vrot.slane %v2802_v38, 1  ;;  %v2651_v28 = vadd.f32 %v2650_v23, %v2605_v13  ;;  %v2867_v42 = vrot.slane %v8284_v7, 1  ;;  %v3088_v11 = vsel %vm318_vm0, %v2928_v8, %v2992_v56 }
 0x32a   :  { %v2426_v3 = vpop.f32.mrf.mxu3  ;;  %v3089_v10 = vsel %vm318_vm0, %v2929_v1, %v2993_v2  ;;  %v9591_v48 = vrot.slane %v8284_v7, 7  ;;  %v2517_v24 = vpop.f32.mrf.mxu0  ;;  %v3137_v18 = vpack.c.bf16 %v3088_v11, %v3088_v11  ;;  %v3090_v34 = vsel %vm318_vm0, %v2930_v6, %v2994_v45  ;;  %v9922_v2 = vld [vmem:[#allocation24_spill] sm:$0xff] }
 0x32b   :  { %v3058_v55 = vsel %vm318_vm0, %v2866_v26, %v2930_v6  ;;  %v2427_v59 = vadd.f32 %v2426_v3, %v2338_v32  ;;  %v3139_v35 = vpack.c.bf16 %v3089_v10, %v3089_v10  ;;  %v8304_v23 = vpop.f32.mrf.mxu1  ;;  %v2868_v8 = vrot.slane %v8294_v39, 1 }
 0x32c   :  { %4572 = vmatmul.bf16.gmra.mxu2 %v8292_v41  ;;  %v3140_v60 = vpack.c.bf16 %v3058_v55, %v3058_v55  ;;  %v3059_v38 = vsel %vm318_vm0, %v2867_v42, %v9591_v48  ;;  %v2932_v1 = vrot.slane %v8294_v39, 7  ;;  %v3253_v5 = vunpack.c.l.b16 %v3137_v18 }
 0x32d   :  { %v8312_v13 = vadd.f32 %v2515_v47, %v2427_v59  ;;  %v3255_v3 = vunpack.c.l.b16 %v3139_v35  ;;  %v2251_v26 = vadd.f32 %v2250_v62, %v9922_v2  ;;  %v3141_v32 = vpack.c.bf16 %v3090_v34, %v3090_v34 }
 0x32e   :  { %v8314_v56 = vunpack.c.l.b16 %v3140_v60  ;;  %v3142_v11 = vpack.c.bf16 %v3059_v38, %v3059_v38  ;;  %v3060_v6 = vsel %vm318_vm0, %v2868_v8, %v2932_v1  ;;  %v3294_v10 = vpack.c.b16 %v3253_v5, %v8245_v30 }
 0x32f   :  { %v2564_v45 = vadd.f32 %v2563_v0, %v8312_v13  ;;  %v2606_v42 = vmul.f32 %v8312_v13, %v8312_v13  ;;  %v3295_v47 = vpack.c.b16 %v3255_v3, %v8251_v20  ;;  %v2339_v55 = vpop.f32.mrf.mxu2  ;;  %v3849_v35 = vpack.c.b16 %v8245_v30, %v8251_v20 }
 0x330   :  { %v8327_v60 = vpack.c.b16 %v8314_v56, %v8245_v30  ;;  %v3257_v62 = vunpack.c.l.b16 %v3141_v32  ;;  %v8329_v59 = vunpack.c.l.b16 %v3142_v11  ;;  %v2340_v0 = vadd.f32 %v2339_v55, %v2251_v26 }
 0x331   :  { %v2652_v18 = vadd.f32 %v2651_v28, %v2606_v42  ;;  %v3518_v38 = vrot.slane %v3294_v10, 1  ;;  %v3519_v8 = vrot.slane %v3295_v47, 1  ;;  %4755 = vmatmul.bf16.gmra.mxu0 %v3849_v35  ;;  %v3407_v5 = vshrl.u32 %v3294_v10, 16 }
 0x332   :  { %9923 = vst [vmem:[#allocation41_spill] sm:$0xff] %v8327_v60  ;;  %v2428_v34 = vpop.f32.mrf.mxu3  ;;  %v3409_v2 = vshll.u32 %v3294_v10, 16  ;;  %v3414_v3 = vshrl.u32 %v3295_v47, 16  ;;  %v3416_v48 = vshll.u32 %v3295_v47, 16  ;;  %v3296_v30 = vpack.c.b16 %v3257_v62, %v8314_v56  ;;  %v8340_v55 = vpop.f32.mrf.mxu0 }
 0x333   :  { %v2429_v43 = vadd.f32 %v2428_v34, %v2340_v0  ;;  %v8331_v41 = vunpack.c.l.b16 %v3518_v38  ;;  %v8333_v20 = vunpack.c.l.b16 %v3519_v8  ;;  %v3855_v28 = vpack.c.b16 %v8329_v59, %v8314_v56  ;;  %9926 = vst [vmem:[#allocation71_spill] sm:$0xff] %v8340_v55  ;;  %v8345_v35 = vpop.f32.mrf.mxu1 }
 0x334   :  { %v3411_v32 = vrot.slane %v3409_v2, 1  ;;  %v3418_v11 = vrot.slane %v3416_v48, 1  ;;  %v3144_v26 = vpack.c.bf16 %v3060_v6, %v3060_v6  ;;  %v2995_v47 = vrot.slane %v8284_v7, 5 }
 0x335   :  { %9924 = vst [vmem:[#allocation68_spill] sm:$0xff] %v8331_v41  ;;  %v8338_v42 = vadd.f32 %v2517_v24, %v2429_v43  ;;  %v3848_v10 = vpack.c.b16 %v8333_v20, %v8331_v41  ;;  %v3423_v48 = vshll.u32 %v3296_v30, 16  ;;  %v2996_v56 = vrot.slane %v8294_v39, 5 }
 0x336   :  { %9925 = vst [vmem:[#allocation53_spill] sm:$0xff] %v8333_v20  ;;  %v3412_v0 = vor.u32 %v3411_v32, %v3407_v5  ;;  %v8347_v34 = vor.u32 %v3418_v11, %v3414_v3  ;;  %v8350_v62 = vunpack.c.l.b16 %v3144_v26  ;;  %v8357_v6 = vmax.f32 %v8275_v63, 0.0 }
 0x337   :  { %v2565_v43 = vadd.f32 %v2564_v45, %v8338_v42  ;;  %v2607_v24 = vmul.f32 %v8338_v42, %v8338_v42  ;;  %4666 = vmatmul.bf16.gmra.mxu3 %v3848_v10  ;;  %v3520_v45 = vrot.slane %v3296_v30, 1  ;;  %v9930_v32 = vrot.slane %v8284_v7, 7 }
 0x338   :  { %9927 = vst [vmem:[#allocation56_spill] sm:$0xff] %v8347_v34  ;;  %v8359_v38 = vunpack.c.l.b16 %v3412_v0  ;;  %v9598_v8 = vunpack.c.l.b16 %v8347_v34  ;;  %v8364_v5 = vpack.c.b16 %v8350_v62, %v8329_v59  ;;  %v3425_v39 = vrot.slane %v3423_v48, 1 }
 0x339   :  { %4493 = vmatmul.bf16.gmra.mxu1 %v8327_v60  ;;  %v2566_v2 = vrot.slane %v2565_v43, 4  ;;  %v2653_v3 = vadd.f32 %v2652_v18, %v2607_v24  ;;  %v3091_v11 = vsel %vm318_vm0, %v9930_v32, %v2995_v47  ;;  %v3092_v26 = vsel %vm318_vm0, %v2932_v1, %v2996_v56  ;;  %v4538_v56 = vpop.f32.mrf.mxu2 }
 0x33a   :  { %9928 = vst [vmem:[#allocation60_spill] sm:$0xff] %v8359_v38  ;;  %v3847_v63 = vpack.c.b16 %v9598_v8, %v8359_v38  ;;  %v3143_v10 = vpack.c.bf16 %v3091_v11, %v3091_v11  ;;  %v4627_v60 = vpop.f32.mrf.mxu3  ;;  %v3145_v55 = vpack.c.bf16 %v3092_v26, %v3092_v26  ;;  %v2869_v54 = vrot.slane %v8357_v6, 1  ;;  %v8376_v8 = vpop.f32.mrf.mxu0 }
 0x33b   :  { %9929 = vst [vmem:[#allocation73_spill] sm:$0xff] %v8364_v5  ;;  %v2567_v0 = vadd.f32 %v2566_v2, %v2565_v43  ;;  %v2654_v20 = vrot.slane %v2653_v3, 4  ;;  %v3421_v18 = vshrl.u32 %v3296_v30, 16  ;;  %v2933_v7 = vrot.slane %v8357_v6, 7  ;;  %v8380_v43 = vpop.f32.mrf.mxu1 }
 0x33c   :  { %4577 = vmatmul.bf16.gmra.mxu2 %v3847_v63  ;;  %v3259_v24 = vunpack.c.l.b16 %v3143_v10  ;;  %v2806_v47 = vmax.f32 %v8281_v51, 0.0  ;;  %9931 = vst [vmem:[#allocation85_spill] sm:$0xff] %v8376_v8  ;;  %v8378_v48 = vunpack.c.l.b16 %v3520_v45  ;;  %v3261_v1 = vunpack.c.l.b16 %v3145_v55 }
 0x33d   :  { %v2568_v32 = vrot.slane %v2567_v0, 2  ;;  %v2655_v34 = vadd.f32 %v2654_v20, %v2653_v3  ;;  %v8382_v2 = vor.u32 %v3425_v39, %v3421_v18  ;;  %v3061_v30 = vsel %vm318_vm0, %v2869_v54, %v2933_v7 }
 0x33e   :  { %9932 = vst [vmem:[#allocation76_spill] sm:$0xff] %v8378_v48  ;;  %v8385_v11 = vpack.c.b16 %v3259_v24, %v8329_v59  ;;  %v4539_v51 = vadd.f32 %v4538_v56, %v8304_v23  ;;  %v8390_v20 = vpack.c.b16 %v3261_v1, %v8350_v62  ;;  %v3146_v3 = vpack.c.bf16 %v3061_v30, %v3061_v30 }
 0x33f   :  { %9933 = vst [vmem:[#allocation82_spill] sm:$0xff] %v8382_v2  ;;  %v2569_v63 = vadd.f32 %v2568_v32, %v2567_v0  ;;  %v2656_v26 = vrot.slane %v2655_v34, 2  ;;  %v2870_v45 = vrot.slane %v2806_v47, 1  ;;  %v2934_v10 = vrot.slane %v2806_v47, 7 }
 0x340   :  { %v3430_v55 = vshll.u32 %v8385_v11, 16  ;;  %v8393_v18 = vadd.f32 %v4627_v60, %v4539_v51  ;;  %v8397_v59 = vpack.c.b16 %v8378_v48, %v8331_v41  ;;  %v8399_v54 = vunpack.c.l.b16 %v3146_v3 }
 0x341   :  { %v2570_v8 = vrot.slane %v2569_v63, 1  ;;  %v2657_v39 = vadd.f32 %v2656_v26, %v2655_v34  ;;  %4760 = vmatmul.bf16.gmra.mxu0 %v3855_v28  ;;  %v3428_v23 = vshrl.u32 %v8385_v11, 16  ;;  %v2997_v24 = vrot.slane %v8357_v6, 5  ;;  %v6271_v6 = vld [vmem:[#allocation7 + $0x110] sm:$0xff]  ;;  %v4540_v41 = vpop.f32.mrf.mxu2 }
 0x342   :  { %9934 = vst [vmem:[#allocation86_spill] sm:$0xff] %v8397_v59  ;;  %v3432_v0 = vrot.slane %v3430_v55, 1  ;;  %v4629_v56 = vpop.f32.mrf.mxu3  ;;  %v3437_v60 = vshll.u32 %v8390_v20, 16  ;;  %v3062_v28 = vsel %vm318_vm0, %v2870_v45, %v2934_v10  ;;  %v2998_v51 = vrot.slane %v2806_v47, 5  ;;  %v8412_v48 = vpop.f32.mrf.mxu0  ;;  %4801 = vmatpush.bf16.msrb.mxu1 %v6271_v6 }
 0x343   :  { %v2571_v32 = vadd.f32 %v2570_v8, %v2569_v63  ;;  %v2658_v1 = vrot.slane %v2657_v39, 1  ;;  %9936 = vst [vmem:[#allocation67_spill] sm:$0xff] %v8412_v48  ;;  %v3435_v8 = vshrl.u32 %v8390_v20, 16  ;;  %v8415_v30 = vpop.f32.mrf.mxu1  ;;  %v3093_v45 = vsel %vm318_vm0, %v2933_v7, %v2997_v24 }
 0x344   :  { %v8407_v26 = vor.u32 %v3432_v0, %v3428_v23  ;;  %v3439_v63 = vrot.slane %v3437_v60, 1  ;;  %v3148_v0 = vpack.c.bf16 %v3062_v28, %v3062_v28  ;;  %v3094_v47 = vsel %vm318_vm0, %v2934_v10, %v2998_v51 }
 0x345   :  { %v8410_v3 = vmul.f32 0.015625, %v2571_v32  ;;  %v2659_v55 = vadd.f32 %v2658_v1, %v2657_v39  ;;  %v4541_v60 = vadd.f32 %v4540_v41, %v8345_v35  ;;  %v3147_v28 = vpack.c.bf16 %v3093_v45, %v3093_v45 }
 0x346   :  { %9935 = vst [vmem:[#allocation40_spill] sm:$0xff] %v8407_v26  ;;  %v8427_v34 = vor.u32 %v3439_v63, %v3435_v8  ;;  %v8429_v23 = vunpack.c.l.b16 %v3148_v0  ;;  %v3149_v7 = vpack.c.bf16 %v3094_v47, %v3094_v47  ;;  %v8432_v10 = vmax.f32 %v8213_v19, 0.0 }
 0x347   :  { %v2663_v32 = vmul.f32 0.015625, %v2659_v55  ;;  %v2667_v39 = vmul.f32 %v8410_v3, %v8410_v3  ;;  %4671 = vmatmul.bf16.gmra.mxu3 %v8397_v59  ;;  %v8434_v51 = vadd.f32 %v4629_v56, %v4541_v60  ;;  %v9939_v55 = vunpack.c.l.b16 %v8382_v2 }
 0x348   :  { %9937 = vst [vmem:[#allocation84_spill] sm:$0xff] %v8429_v23  ;;  %v9601_v41 = vunpack.c.l.b16 %v8427_v34  ;;  %v3263_v35 = vunpack.c.l.b16 %v3147_v28  ;;  %v3265_v6 = vunpack.c.l.b16 %v3149_v7  ;;  %v3521_v0 = vrot.slane %v8385_v11, 1 }
 0x349   :  { %4498 = vmatmul.bf16.gmra.mxu1 %v8364_v5  ;;  %v2671_v24 = vsub.f32 %v2663_v32, %v2667_v39  ;;  %9938 = vst [vmem:[#allocation83_spill] sm:$0xff] %v8434_v51  ;;  %v8439_v1 = vpack.c.b16 %v9939_v55, %v8359_v38  ;;  %v3522_v45 = vrot.slane %v8390_v20, 1  ;;  %v9941_v47 = vunpack.c.l.b16 %v8407_v26  ;;  %v6270_v5 = vld [vmem:[#allocation7 + $0x108] sm:$0xff] }
 0x34a   :  { %v4632_v63 = vpop.f32.mrf.mxu3  ;;  %v8456_v39 = vpack.c.b16 %v3263_v35, %v8399_v54  ;;  %v8459_v11 = vpack.c.b16 %v3265_v6, %v8429_v23  ;;  %v8461_v28 = vpop.f32.mrf.mxu0  ;;  %v2871_v56 = vrot.slane %v8432_v10, 1  ;;  %4802 = vmatpush.bf16.msrb.mxu1 %v6270_v5 }
 0x34b   :  { %9940 = vst [vmem:[#allocation81_spill] sm:$0xff] %v8439_v1  ;;  %v2675_v8 = vmax.f32 %v2671_v24, 0.0  ;;  %v8453_v32 = vpack.c.b16 %v9601_v41, %v9941_v47  ;;  %v4459_v55 = vpop.f32.mrf.mxu1  ;;  %v4543_v47 = vpop.f32.mrf.mxu2  ;;  %v8470_v41 = vunpack.c.l.b16 %v3521_v0  ;;  %v9947_v0 = vpack.c.b16 %v8399_v54, %v8350_v62 }
 0x34c   :  { %4582 = vmatmul.bf16.gmra.mxu2 %v8439_v1  ;;  %9943 = vst [vmem:[#allocation14_spill] sm:$0xff] %v8461_v28  ;;  %v4544_v35 = vadd.f32 %v4543_v47, %v8380_v43  ;;  %v3444_v6 = vshll.u32 %v8456_v39, 16  ;;  %v3442_v20 = vshrl.u32 %v8456_v39, 16  ;;  %v3451_v59 = vshll.u32 %v8459_v11, 16 }
 0x34d   :  { %9942 = vst [vmem:[#allocation72_spill] sm:$0xff] %v8453_v32  ;;  %v2711_v60 = vadd.f32 1e-05, %v2675_v8  ;;  %v8473_v8 = vunpack.c.l.b16 %v3522_v45 }
 0x34e   :  { %9944 = vst [vmem:[#allocation15_spill] sm:$0xff] %v8470_v41  ;;  %v8478_v19 = vadd.f32 %v4632_v63, %v4544_v35  ;;  %v3446_v24 = vrot.slane %v3444_v6, 1  ;;  %v3449_v63 = vshrl.u32 %v8459_v11, 16  ;;  %v3453_v35 = vrot.slane %v3451_v59, 1 }
 0x34f   :  { %6339 = vrsqrt.f32 %v2711_v60  ;;  %9945 = vst [vmem:[#allocation26_spill] sm:$0xff] %v8473_v8  ;;  %v8493_v6 = vpack.c.b16 %v8429_v23, %v8399_v54  ;;  %v8499_v62 = vpack.c.b16 %v8473_v8, %v8470_v41  ;;  %vm2748_vm11 = vweird.f32 %v2711_v60 }
 0x350   :  { %9946 = vst [vmem:[#allocation27_spill] sm:$0xff] %v8478_v19  ;;  %v8488_v7 = vor.u32 %v3446_v24, %v3442_v20  ;;  %v3454_v24 = vor.u32 %v3453_v35, %v3449_v63 }
 0x351   :  { %4765 = vmatmul.bf16.gmra.mxu0 %v9947_v0  ;;  %9948 = vst [vmem:[#allocation16_spill] sm:$0xff] %v8493_v6  ;;  %v9951_v0 = vrot.slane %v8432_v10, 7 }
 0x352   :  { %v4634_v47 = vpop.f32.mrf.mxu3  ;;  %v8495_v43 = vpop.f32.mrf.mxu0  ;;  %9950 = vst [vmem:[#allocation37_spill] sm:$0xff] %v8499_v62  ;;  %v9609_v45 = vunpack.c.l.b16 %v8488_v7 }
 0x353   :  { %9949 = vst [vmem:[#allocation36_spill] sm:$0xff] %v8495_v43  ;;  %v3063_v20 = vsel %vm318_vm0, %v2871_v56, %v9951_v0  ;;  %v4461_v5 = vpop.f32.mrf.mxu1  ;;  %v4545_v26 = vpop.f32.mrf.mxu2  ;;  %v8508_v43 = vunpack.c.l.b16 %v3454_v24  ;;  %v3523_v0 = vrot.slane %v8456_v39, 1 }
 0x354   :  { %v4546_v54 = vadd.f32 %v4545_v26, %v8415_v30  ;;  %v3150_v41 = vpack.c.bf16 %v3063_v20, %v3063_v20  ;;  %v3524_v30 = vrot.slane %v8459_v11, 1 }
 0x355   :  { %v6340_v28 = vpop.eup %6339  ;;  %v8515_v56 = vpack.c.b16 %v8508_v43, %v9609_v45  ;;  %v8528_v39 = vunpack.c.l.b16 %v3523_v0  ;;  %v9960_v0 = vsub.f32 %v8108_v36, %v8410_v3 }
 0x356   :  { %v2743_v59 = vmul.f32 %v6340_v28, %v2711_v60  ;;  %v8510_v2 = vadd.f32 %v4634_v47, %v4546_v54  ;;  %vm2749_vm10 = vweird.f32 %v6340_v28  ;;  %v8520_v26 = vunpack.c.l.b16 %v3150_v41 }
 0x357   :  { %4676 = vmatmul.bf16.gmra.mxu3 %v8499_v62  ;;  %9953 = vst [vmem:[#allocation50_spill] sm:$0xff] %v8515_v56  ;;  %vm2750_vm12 = vmor %vm2748_vm11, %vm2749_vm10  ;;  %v9957_v41 = vsub.f32 %v8338_v42, %v8410_v3 }
 0x358   :  { %v2744_v8 = vmul.f32 %v6340_v28, %v2743_v59  ;;  %9952 = vst [vmem:[#allocation49_spill] sm:$0xff] %v8510_v2  ;;  %v3867_v11 = vpack.c.b16 %v8520_v26, %v8429_v23 }
 0x359   :  { %4503 = vmatmul.bf16.gmra.mxu1 %v8493_v6  ;;  %9955 = vst [vmem:[#allocation18_spill] sm:$0xff] %v8528_v39 }
 0x35a   :  { %v2745_v63 = vmul.f32 0.5, %v2744_v8  ;;  %v4637_v35 = vpop.f32.mrf.mxu3  ;;  %v8522_v20 = vpop.f32.mrf.mxu0 }
 0x35b   :  { %9954 = vst [vmem:[#allocation23_spill] sm:$0xff] %v8522_v20  ;;  %v8524_v24 = vpop.f32.mrf.mxu1  ;;  %v4548_v59 = vpop.f32.mrf.mxu2 }
 0x35c   :  { %v2746_v6 = vsub.f32 1.5, %v2745_v63  ;;  %4587 = vmatmul.bf16.gmra.mxu2 %v8453_v32  ;;  %v4549_v8 = vadd.f32 %v4548_v59, %v4459_v55  ;;  %v8530_v63 = vunpack.c.l.b16 %v3524_v30  ;;  %v9959_v55 = vsub.f32 %v8098_v17, %v8410_v3 }
 0x35e   :  { %v2747_v47 = vmul.f32 %v6340_v28, %v2746_v6  ;;  %9956 = vst [vmem:[#allocation32_spill] sm:$0xff] %v8530_v63  ;;  %v8540_v60 = vadd.f32 %v4637_v35, %v4549_v8 }
 0x360   :  { %v8526_v54 = vsel %vm2750_vm12, %v6340_v28, %v2747_v47  ;;  %9958 = vst [vmem:[#allocation19_spill] sm:$0xff] %v8540_v60  ;;  %v9961_v47 = vsub.f32 %v8153_v29, %v8410_v3 }
 0x361   :  { %v8538_v6 = vmul.f32 %v8526_v54, %v9957_v41  ;;  %v2776_v28 = vmul.f32 %v8526_v54, %v9959_v55  ;;  %v2777_v30 = vmul.f32 %v8526_v54, %v9960_v0  ;;  %4770 = vmatmul.bf16.gmra.mxu0 %v3867_v11  ;;  %v8559_v55 = vpack.c.b16 %v8530_v63, %v8528_v39 }
 0x362   :  { %v2778_v42 = vmul.f32 %v8526_v54, %v9961_v47  ;;  %v4639_v59 = vpop.f32.mrf.mxu3  ;;  %v8555_v17 = vpop.f32.mrf.mxu0  ;;  %v9964_v63 = vsub.f32 %v8192_v53, %v8410_v3 }
 0x363   :  { %v2808_v41 = vmax.f32 %v2776_v28, 0.0  ;;  %v2809_v35 = vmax.f32 %v2777_v30, 0.0  ;;  %9962 = vst [vmem:[#allocation12_spill] sm:$0xff] %v8555_v17  ;;  %v8561_v62 = vpop.f32.mrf.mxu1  ;;  %v4550_v29 = vpop.f32.mrf.mxu2 }
 0x364   :  { %v2810_v45 = vmax.f32 %v2778_v42, 0.0  ;;  %9963 = vst [vmem:[#allocation13_spill] sm:$0xff] %v8559_v55  ;;  %v4551_v30 = vadd.f32 %v4550_v29, %v4461_v5  ;;  %v2779_v17 = vmul.f32 %v8526_v54, %v9964_v63 }
 0x365   :  { %v2872_v36 = vrot.slane %v2809_v35, 1  ;;  %v2873_v0 = vrot.slane %v2808_v41, 1  ;;  %v2936_v11 = vrot.slane %v2809_v35, 7  ;;  %v2937_v23 = vrot.slane %v2808_v41, 7 }
 0x366   :  { %v3000_v47 = vrot.slane %v2809_v35, 5  ;;  %v3001_v20 = vrot.slane %v2808_v41, 5  ;;  %v2874_v28 = vrot.slane %v2810_v45, 1  ;;  %v2938_v8 = vrot.slane %v2810_v45, 7 }
 0x367   :  { %4681 = vmatmul.bf16.gmra.mxu3 %v8559_v55  ;;  %v3064_v42 = vsel %vm318_vm0, %v2872_v36, %v2936_v11  ;;  %v3065_v39 = vsel %vm318_vm0, %v2873_v0, %v2937_v23  ;;  %v8572_v41 = vadd.f32 %v4639_v59, %v4551_v30  ;;  %v3002_v48 = vrot.slane %v2810_v45, 5 }
 0x368   :  { %v3152_v60 = vpack.c.bf16 %v3064_v42, %v3064_v42  ;;  %v3096_v2 = vsel %vm318_vm0, %v2936_v11, %v3000_v47  ;;  %v3097_v35 = vsel %vm318_vm0, %v2937_v23, %v3001_v20  ;;  %v3154_v5 = vpack.c.bf16 %v3065_v39, %v3065_v39 }
 0x369   :  { %9965 = vst [vmem:[#allocation45_spill] sm:$0xff] %v8572_v41  ;;  %v3153_v29 = vpack.c.bf16 %v3096_v2, %v3096_v2  ;;  %v3155_v55 = vpack.c.bf16 %v3097_v35, %v3097_v35  ;;  %v3066_v36 = vsel %vm318_vm0, %v2874_v28, %v2938_v8  ;;  %v8575_v19 = vmax.f32 %v2779_v17, 0.0 }
 0x36a   :  { %v3266_v32 = vunpack.c.l.b16 %v3152_v60  ;;  %v4642_v53 = vpop.f32.mrf.mxu3  ;;  %v3268_v63 = vunpack.c.l.b16 %v3154_v5  ;;  %v3156_v42 = vpack.c.bf16 %v3066_v36, %v3066_v36  ;;  %v3098_v23 = vsel %vm318_vm0, %v2938_v8, %v3002_v48  ;;  %v8585_v60 = vpop.f32.mrf.mxu0 }
 0x36b   :  { %v3267_v51 = vunpack.c.l.b16 %v3153_v29  ;;  %v3269_v0 = vunpack.c.l.b16 %v3155_v55  ;;  %v2875_v20 = vrot.slane %v8575_v19, 1  ;;  %v2939_v2 = vrot.slane %v8575_v19, 7  ;;  %9967 = vst [vmem:[#allocation64_spill] sm:$0xff] %v8585_v60  ;;  %v8587_v47 = vpop.f32.mrf.mxu1  ;;  %v4553_v28 = vpop.f32.mrf.mxu2 }
 0x36c   :  { %4592 = vmatmul.bf16.gmra.mxu2 %v8515_v56  ;;  %v9966_v39 = vsub.f32 %v8231_v16, %v8410_v3  ;;  %v3873_v59 = vpack.c.b16 %v3268_v63, %v3266_v32  ;;  %v3876_v55 = vpack.c.b16 %v3266_v32, %v3268_v63  ;;  %v8589_v30 = vunpack.c.l.b16 %v3156_v42 }
 0x36d   :  { %v3301_v17 = vpack.c.b16 %v3267_v51, %v3266_v32  ;;  %v3302_v11 = vpack.c.b16 %v3269_v0, %v3268_v63  ;;  %v3157_v48 = vpack.c.bf16 %v3098_v23, %v3098_v23  ;;  %v3067_v8 = vsel %vm318_vm0, %v2875_v20, %v2939_v2 }
 0x36e   :  { %v2780_v45 = vmul.f32 %v8526_v54, %v9966_v39  ;;  %v4554_v5 = vadd.f32 %v4553_v28, %v8524_v24  ;;  %4508 = vmatmul.bf16.gmra.mxu1 %v3873_v59  ;;  %v8594_v63 = vpack.c.b16 %v8589_v30, %v3266_v32  ;;  %v3158_v28 = vpack.c.bf16 %v3067_v8, %v3067_v8 }
 0x36f   :  { %v3525_v16 = vrot.slane %v3301_v17, 1  ;;  %v3526_v29 = vrot.slane %v3302_v11, 1  ;;  %v3456_v36 = vshrl.u32 %v3301_v17, 16  ;;  %v3458_v39 = vshll.u32 %v3301_v17, 16 }
 0x370   :  { %v2812_v35 = vmax.f32 %v2780_v45, 0.0  ;;  %v3463_v60 = vshrl.u32 %v3302_v11, 16  ;;  %v3465_v51 = vshll.u32 %v3302_v11, 16  ;;  %9968 = vst [vmem:[#allocation65_spill] sm:$0xff] %v8594_v63  ;;  %v8596_v0 = vadd.f32 %v4642_v53, %v4554_v5  ;;  %v6269_v45 = vld [vmem:[#allocation7 + $0x100] sm:$0xff] }
 0x371   :  { %v8598_v42 = vunpack.c.l.b16 %v3525_v16  ;;  %v8600_v23 = vunpack.c.l.b16 %v3526_v29  ;;  %v3271_v20 = vunpack.c.l.b16 %v3157_v48  ;;  %4775 = vmatmul.bf16.gmra.mxu0 %v3876_v55  ;;  %v3460_v24 = vrot.slane %v3458_v39, 1  ;;  %4803 = vmatpush.bf16.msrb.mxu1 %v6269_v45 }
 0x372   :  { %9969 = vst [vmem:[#allocation69_spill] sm:$0xff] %v8596_v0  ;;  %v3467_v59 = vrot.slane %v3465_v51, 1  ;;  %v2876_v41 = vrot.slane %v2812_v35, 1  ;;  %v4644_v56 = vpop.f32.mrf.mxu3  ;;  %v2940_v11 = vrot.slane %v2812_v35, 7  ;;  %v3003_v53 = vrot.slane %v8575_v19, 5  ;;  %v8613_v8 = vpop.f32.mrf.mxu0 }
 0x373   :  { %9970 = vst [vmem:[#allocation70_spill] sm:$0xff] %v8598_v42  ;;  %v3875_v17 = vpack.c.b16 %v8600_v23, %v8598_v42  ;;  %v3303_v32 = vpack.c.b16 %v3271_v20, %v8589_v30  ;;  %v3461_v5 = vor.u32 %v3460_v24, %v3456_v36  ;;  %v8608_v48 = vunpack.c.l.b16 %v3158_v28  ;;  %v8616_v20 = vpop.f32.mrf.mxu1  ;;  %v4555_v45 = vpop.f32.mrf.mxu2 }
 0x374   :  { %9971 = vst [vmem:[#allocation74_spill] sm:$0xff] %v8600_v23  ;;  %v8606_v16 = vor.u32 %v3467_v59, %v3463_v60  ;;  %v3004_v55 = vrot.slane %v2812_v35, 5  ;;  %v8611_v29 = vmax.f32 %v8538_v6, 0.0  ;;  %v3068_v23 = vsel %vm318_vm0, %v2876_v41, %v2940_v11 }
 0x375   :  { %9973 = vst [vmem:[#allocation22_spill] sm:$0xff] %v8613_v8  ;;  %v3527_v39 = vrot.slane %v3303_v32, 1  ;;  %v3472_v51 = vshll.u32 %v3303_v32, 16  ;;  %v8618_v0 = vunpack.c.l.b16 %v3461_v5  ;;  %v3160_v35 = vpack.c.bf16 %v3068_v23, %v3068_v23 }
 0x376   :  { %9972 = vst [vmem:[#allocation75_spill] sm:$0xff] %v8606_v16  ;;  %v9620_v19 = vunpack.c.l.b16 %v8606_v16  ;;  %v4556_v6 = vadd.f32 %v4555_v45, %v8561_v62  ;;  %v3470_v36 = vshrl.u32 %v3303_v32, 16  ;;  %v3099_v59 = vsel %vm318_vm0, %v2939_v2, %v3003_v53  ;;  %v6300_v32 = vld [vmem:[#allocation7 + $0x1f8] sm:$0xff] }
 0x377   :  { %4686 = vmatmul.bf16.gmra.mxu3 %v3875_v17  ;;  %v3474_v24 = vrot.slane %v3472_v51, 1  ;;  %v8628_v28 = vunpack.c.l.b16 %v3160_v35  ;;  %v3100_v5 = vsel %vm318_vm0, %v2940_v11, %v3004_v55  ;;  %v3159_v8 = vpack.c.bf16 %v3099_v59, %v3099_v59  ;;  %v6292_v17 = vld [vmem:[#allocation7 + $0x1b8] sm:$0xff]  ;;  %5063 = vmatpush.bf16.msra.mxu0 %v6300_v32  ;;  %v6299_v32 = vld [vmem:[#allocation7 + $0x1f0] sm:$0xff] }
 0x378   :  { %v3874_v41 = vpack.c.b16 %v9620_v19, %v8618_v0  ;;  %v8631_v1 = vadd.f32 %v4644_v56, %v4556_v6  ;;  %v8633_v60 = vunpack.c.l.b16 %v3527_v39  ;;  %v3161_v62 = vpack.c.bf16 %v3100_v5, %v3100_v5  ;;  %4974 = vmatpush.bf16.msra.mxu3 %v6292_v17  ;;  %v6291_v17 = vld [vmem:[#allocation7 + $0x1b0] sm:$0xff] }
 0x379   :  { %v8635_v23 = vor.u32 %v3474_v24, %v3470_v36  ;;  %v8639_v2 = vpack.c.b16 %v8628_v28, %v8608_v48  ;;  %v3273_v53 = vunpack.c.l.b16 %v3159_v8  ;;  %v9978_v51 = vsub.f32 %v8269_v31, %v8410_v3  ;;  %v6284_v31 = vld [vmem:[#allocation7 + $0x178] sm:$0xff] }
 0x37a   :  { %9974 = vst [vmem:[#allocation21_spill] sm:$0xff] %v8631_v1  ;;  %v9979_v56 = vsub.f32 %v8312_v13, %v8410_v3  ;;  %v4647_v39 = vpop.f32.mrf.mxu3  ;;  %v3275_v45 = vunpack.c.l.b16 %v3161_v62  ;;  %v2879_v35 = vrot.slane %v8611_v29, 1  ;;  %v9622_v6 = vrot.slane %v8611_v29, 7  ;;  %4885 = vmatpush.bf16.msra.mxu2 %v6284_v31 }
 0x37b   :  { %9975 = vst [vmem:[#allocation29_spill] sm:$0xff] %v8633_v60  ;;  %v2781_v11 = vmul.f32 %v8526_v54, %v9978_v51  ;;  %v3304_v8 = vpack.c.b16 %v3273_v53, %v8608_v48  ;;  %v9980_v59 = vrot.slane %v8432_v10, 5  ;;  %v9981_v13 = vrot.slane %v8432_v10, 7  ;;  %v8670_v10 = vpop.f32.mrf.mxu1  ;;  %5064 = vmatpush.bf16.msra.mxu0 %v6299_v32 }
 0x37c   :  { %9976 = vst [vmem:[#allocation17_spill] sm:$0xff] %v8635_v23  ;;  %v2782_v55 = vmul.f32 %v8526_v54, %v9979_v56  ;;  %4597 = vmatmul.bf16.gmra.mxu2 %v3874_v41  ;;  %v8659_v54 = vpop.f32.mrf.mxu0  ;;  %v8663_v5 = vpack.c.b16 %v8633_v60, %v8598_v42  ;;  %v3305_v62 = vpack.c.b16 %v3275_v45, %v8628_v28 }
 0x37d   :  { %9977 = vst [vmem:[#allocation20_spill] sm:$0xff] %v8639_v2  ;;  %v2813_v36 = vmax.f32 %v2781_v11, 0.0  ;;  %v8657_v3 = vsel %vm318_vm0, %v9981_v13, %v9980_v59  ;;  %v3071_v53 = vsel %vm318_vm0, %v2879_v35, %v9622_v6  ;;  %v3528_v11 = vrot.slane %v3304_v8, 1  ;;  %4975 = vmatpush.bf16.msra.mxu3 %v6291_v17 }
 0x37e   :  { %v2814_v24 = vmax.f32 %v2782_v55, 0.0  ;;  %9982 = vst [vmem:[#allocation24_spill] sm:$0xff] %v8659_v54  ;;  %v3477_v59 = vshrl.u32 %v3304_v8, 16  ;;  %4513 = vmatmul.bf16.gmra.mxu1 %v8594_v63  ;;  %v3529_v19 = vrot.slane %v3305_v62, 1  ;;  %v3479_v45 = vshll.u32 %v3304_v8, 16  ;;  %v6298_v63 = vld [vmem:[#allocation7 + $0x1e8] sm:$0xff] }
 0x37f   :  { %9983 = vst [vmem:[#allocation87_spill] sm:$0xff] %v8663_v5  ;;  %v4558_v51 = vpop.f32.mrf.mxu2  ;;  %v2877_v56 = vrot.slane %v2813_v36, 1  ;;  %v2941_v55 = vrot.slane %v2813_v36, 7  ;;  %v3484_v41 = vshrl.u32 %v3305_v62, 16  ;;  %v8674_v60 = vunpack.c.l.b16 %v3528_v11  ;;  %5065 = vmatpush.bf16.msra.mxu0 %v6298_v63 }
 0x380   :  { %v4559_v13 = vadd.f32 %v4558_v51, %v8587_v47  ;;  %v3486_v6 = vshll.u32 %v3305_v62, 16  ;;  %v2878_v42 = vrot.slane %v2814_v24, 1  ;;  %v8679_v16 = vunpack.c.l.b16 %v3529_v19  ;;  %v6283_v47 = vld [vmem:[#allocation7 + $0x170] sm:$0xff]  ;;  %v6290_v51 = vld [vmem:[#allocation7 + $0x1a8] sm:$0xff] }
 0x381   :  { %9984 = vst [vmem:[#allocation88_spill] sm:$0xff] %v8674_v60  ;;  %v3069_v35 = vsel %vm318_vm0, %v2877_v56, %v2941_v55  ;;  %v3481_v1 = vrot.slane %v3479_v45, 1  ;;  %v9985_v8 = vpack.c.b16 %v8608_v48, %v8589_v30  ;;  %v2942_v11 = vrot.slane %v2814_v24, 7  ;;  %4886 = vmatpush.bf16.msra.mxu2 %v6283_v47  ;;  %4976 = vmatpush.bf16.msra.mxu3 %v6290_v51  ;;  %v6297_v47 = vld [vmem:[#allocation7 + $0x1e0] sm:$0xff] }
 0x382   :  { %v8677_v54 = vadd.f32 %v4647_v39, %v4559_v13  ;;  %v3162_v31 = vpack.c.bf16 %v3069_v35, %v3069_v35  ;;  %v3488_v17 = vrot.slane %v3486_v6, 1  ;;  %v3005_v38 = vrot.slane %v2813_v36, 5  ;;  %v4649_v62 = vpop.f32.mrf.mxu3  ;;  %v6282_v13 = vld [vmem:[#allocation7 + $0x168] sm:$0xff] }
 0x383   :  { %4780 = vmatmul.bf16.gmra.mxu0 %v9985_v8  ;;  %v3006_v56 = vrot.slane %v2814_v24, 5  ;;  %v8686_v39 = vpack.c.b16 %v8679_v16, %v8674_v60  ;;  %v8690_v32 = vor.u32 %v3481_v1, %v3477_v59  ;;  %v3166_v45 = vpack.c.bf16 %v3071_v53, %v3071_v53 }
 0x384   :  { %v8688_v19 = vunpack.c.l.b16 %v3162_v31  ;;  %v8692_v35 = vor.u32 %v3488_v17, %v3484_v41  ;;  %v3070_v30 = vsel %vm318_vm0, %v2878_v42, %v2942_v11  ;;  %v3101_v48 = vsel %vm318_vm0, %v2941_v55, %v3005_v38  ;;  %v8697_v36 = vpop.f32.mrf.mxu0  ;;  %v6289_v31 = vld [vmem:[#allocation7 + $0x1a0] sm:$0xff]  ;;  %v8702_v41 = vpop.f32.mrf.mxu1  ;;  %5066 = vmatpush.bf16.msra.mxu0 %v6297_v47 }
 0x385   :  { %9986 = vst [vmem:[#allocation89_spill] sm:$0xff] %v8686_v39  ;;  %v3102_v6 = vsel %vm318_vm0, %v2942_v11, %v3006_v56  ;;  %v9627_v1 = vunpack.c.l.b16 %v8690_v32  ;;  %v3164_v59 = vpack.c.bf16 %v3070_v30, %v3070_v30  ;;  %v3163_v53 = vpack.c.bf16 %v3101_v48, %v3101_v48  ;;  %4887 = vmatpush.bf16.msra.mxu2 %v6282_v13  ;;  %v6281_v48 = vld [vmem:[#allocation7 + $0x160] sm:$0xff] }
 0x386   :  { %9987 = vst [vmem:[#allocation90_spill] sm:$0xff] %v8690_v32  ;;  %v9628_v63 = vunpack.c.l.b16 %v8692_v35  ;;  %v3165_v42 = vpack.c.bf16 %v3102_v6, %v3102_v6  ;;  %v8705_v38 = vunpack.c.l.b16 %v3166_v45  ;;  %v3151_v55 = vpack.c.bf16 %v8657_v3, %v8657_v3  ;;  %4977 = vmatpush.bf16.msra.mxu3 %v6289_v31  ;;  %v6288_v6 = vld [vmem:[#allocation7 + $0x198] sm:$0xff] }
 0x387   :  { %9988 = vst [vmem:[#allocation91_spill] sm:$0xff] %v8697_v36  ;;  %v4560_v51 = vpop.f32.mrf.mxu2  ;;  %4691 = vmatmul.bf16.gmra.mxu3 %v8663_v5  ;;  %v8711_v17 = vunpack.c.l.b16 %v3164_v59  ;;  %v3277_v11 = vunpack.c.l.b16 %v3163_v53  ;;  %v6296_v59 = vld [vmem:[#allocation7 + $0x1d8] sm:$0xff]  ;;  %v9990_v53 = vunpack.c.l.b16 %v8635_v23  ;;  %v9991_v47 = vunpack.c.l.b16 %v8427_v34 }
 0x388   :  { %v4561_v8 = vadd.f32 %v4560_v51, %v8616_v20  ;;  %v8717_v56 = vpack.c.b16 %v9628_v63, %v9627_v1  ;;  %v3279_v45 = vunpack.c.l.b16 %v3165_v42  ;;  %v9992_v51 = vunpack.c.l.b16 %v8488_v7  ;;  %5067 = vmatpush.bf16.msra.mxu0 %v6296_v59 }
 0x389   :  { %v8723_v20 = vpack.c.b16 %v8711_v17, %v8688_v19  ;;  %v3306_v3 = vpack.c.b16 %v3277_v11, %v8688_v19  ;;  %v8731_v31 = vpack.c.b16 %v9990_v53, %v8618_v0  ;;  %4888 = vmatpush.bf16.msra.mxu2 %v6281_v48  ;;  %v6280_v53 = vld [vmem:[#allocation7 + $0x158] sm:$0xff] }
 0x38a   :  { %v8719_v30 = vadd.f32 %v4649_v62, %v4561_v8  ;;  %v3307_v62 = vpack.c.b16 %v3279_v45, %v8711_v17  ;;  %v8738_v42 = vpack.c.b16 %v9992_v51, %v9991_v47  ;;  %v3545_v8 = vunpack.c.l.b16 %v3151_v55  ;;  %v4652_v11 = vpop.f32.mrf.mxu3  ;;  %4978 = vmatpush.bf16.msra.mxu3 %v6288_v6  ;;  %v6287_v47 = vld [vmem:[#allocation7 + $0x190] sm:$0xff] }
 0x38b   :  { %9989 = vst [vmem:[#allocation92_spill] sm:$0xff] %v8723_v20  ;;  %v3530_v1 = vrot.slane %v3306_v3, 1  ;;  %v3493_v63 = vshll.u32 %v3306_v3, 16  ;;  %v3491_v7 = vshrl.u32 %v3306_v3, 16  ;;  %v6295_v51 = vld [vmem:[#allocation7 + $0x1d0] sm:$0xff] }
 0x38c   :  { %4602 = vmatmul.bf16.gmra.mxu2 %v8731_v31  ;;  %v3531_v13 = vrot.slane %v3307_v62, 1  ;;  %v3500_v24 = vshll.u32 %v3307_v62, 16  ;;  %v8742_v5 = vpack.c.b16 %v3545_v8, %v8520_v26  ;;  %v8744_v45 = vpop.f32.mrf.mxu0  ;;  %v4479_v48 = vpop.f32.mrf.mxu1  ;;  %v3498_v23 = vshrl.u32 %v3307_v62, 16  ;;  %5068 = vmatpush.bf16.msra.mxu0 %v6295_v51 }
 0x38d   :  { %v8746_v34 = vunpack.c.l.b16 %v3530_v1  ;;  %v3495_v55 = vrot.slane %v3493_v63, 1  ;;  %4889 = vmatpush.bf16.msra.mxu2 %v6280_v53  ;;  %v9994_v53 = vpack.c.b16 %v8688_v19, %v8628_v28  ;;  %v6293_v28 = vld [vmem:[#allocation7 + $0x1c0] sm:$0xff] }
 0x38e   :  { %v8748_v32 = vunpack.c.l.b16 %v3531_v13  ;;  %v3502_v6 = vrot.slane %v3500_v24, 1  ;;  %4518 = vmatmul.bf16.gmra.mxu1 %v8639_v2  ;;  %v3569_v1 = vshll.u32 %v8742_v5, 16  ;;  %4979 = vmatpush.bf16.msra.mxu3 %v6287_v47  ;;  %v6279_v24 = vld [vmem:[#allocation7 + $0x150] sm:$0xff]  ;;  %v3567_v62 = vshrl.u32 %v8742_v5, 16  ;;  %v6308_v2 = vld [vmem:[#allocation7 + $0x238] sm:$0xff] }
 0x38f   :  { %v4563_v60 = vpop.f32.mrf.mxu2  ;;  %v8752_v8 = vor.u32 %v3495_v55, %v3491_v7  ;;  %5152 = vmatpush.bf16.msra.mxu1 %v6308_v2 }
 0x390   :  { %v4564_v36 = vadd.f32 %v4563_v60, %v8670_v10  ;;  %v8757_v63 = vpack.c.b16 %v8748_v32, %v8746_v34  ;;  %v3503_v3 = vor.u32 %v3502_v6, %v3498_v23  ;;  %v6286_v60 = vld [vmem:[#allocation7 + $0x188] sm:$0xff]  ;;  %v3571_v7 = vrot.slane %v3569_v1, 1  ;;  %v6285_v6 = vld [vmem:[#allocation7 + $0x180] sm:$0xff] }
 0x391   :  { %v9634_v13 = vunpack.c.l.b16 %v8752_v8  ;;  %v6294_v10 = vld [vmem:[#allocation7 + $0x1c8] sm:$0xff]  ;;  %4890 = vmatpush.bf16.msra.mxu2 %v6279_v24 }
 0x392   :  { %9993 = vst [vmem:[#allocation93_spill] sm:$0xff] %v8757_v63  ;;  %v8759_v59 = vadd.f32 %v4652_v11, %v4564_v36  ;;  %v8766_v55 = vunpack.c.l.b16 %v3503_v3  ;;  %v4654_v23 = vpop.f32.mrf.mxu3  ;;  %v6278_v36 = vld [vmem:[#allocation7 + $0x148] sm:$0xff]  ;;  %v3572_v11 = vor.u32 %v3571_v7, %v3567_v62  ;;  %4980 = vmatpush.bf16.msra.mxu3 %v6286_v60  ;;  %5069 = vmatpush.bf16.msra.mxu0 %v6294_v10  ;;  %v6277_v60 = vld [vmem:[#allocation7 + $0x140] sm:$0xff] }
 0x393   :  { %4785 = vmatmul.bf16.gmra.mxu0 %v9994_v53 }
 0x394   :  { %v8771_v47 = vpack.c.b16 %v8766_v55, %v9634_v13  ;;  %v8773_v51 = vpop.f32.mrf.mxu0  ;;  %v3630_v19 = vunpack.c.l.b16 %v3572_v11  ;;  %v4481_v1 = vpop.f32.mrf.mxu1 }
 0x395   :  { %4891 = vmatpush.bf16.msra.mxu2 %v6278_v36 }
 0x396   :  { %v8778_v24 = vpack.c.b16 %v3630_v19, %v8508_v43  ;;  %v8781_v62 = vpack.c.b16 %v8508_v43, %v3630_v19  ;;  %4981 = vmatpush.bf16.msra.mxu3 %v6285_v6  ;;  %5070 = vmatpush.bf16.msra.mxu0 %v6293_v28  ;;  %v9995_v43 = vpack.c.b16 %v8705_v38, %v8711_v17 }
 0x397   :  { %v4565_v3 = vpop.f32.mrf.mxu2  ;;  %4696 = vmatmul.bf16.gmra.mxu3 %v8686_v39 }
 0x398   :  { %v4566_v53 = vadd.f32 %v4565_v3, %v8702_v41 }
 0x399   :  { %4892 = vmatpush.bf16.msra.mxu2 %v6277_v60 }
 0x39a   :  { %v8783_v2 = vadd.f32 %v4654_v23, %v4566_v53  ;;  %v4657_v10 = vpop.f32.mrf.mxu3 }
 0x39c   :  { %4607 = vmatmul.bf16.gmra.mxu2 %v8717_v56  ;;  %v8786_v7 = vpop.f32.mrf.mxu0  ;;  %v4484_v41 = vpop.f32.mrf.mxu1 }
 0x39e   :  { %4523 = vmatmul.bf16.gmra.mxu1 %v8723_v20 }
 0x39f   :  { %v4568_v11 = vpop.f32.mrf.mxu2 }
 0x3a0   :  { %v4569_v36 = vadd.f32 %v4568_v11, %v4479_v48 }
 0x3a2   :  { %v8789_v3 = vadd.f32 %v4657_v10, %v4569_v36  ;;  %v4659_v23 = vpop.f32.mrf.mxu3  ;;  %v3007_v36 = vrot.slane %v8611_v29, 5 }
 0x3a3   :  { %4790 = vmatmul.bf16.gmra.mxu0 %v9995_v43 }
 0x3a4   :  { %v4486_v6 = vpop.f32.mrf.mxu1  ;;  %v8795_v53 = vpop.f32.mrf.mxu0 }
 0x3a5   :  { %9996 = vst [vmem:[#allocation94_spill] sm:$0xff] %v8795_v53 }
 0x3a7   :  { %v4570_v28 = vpop.f32.mrf.mxu2  ;;  %4701 = vmatmul.bf16.gmra.mxu3 %v8757_v63 }
 0x3a8   :  { %v4571_v19 = vadd.f32 %v4570_v28, %v4481_v1  ;;  %v6307_v1 = vld [vmem:[#allocation7 + $0x230] sm:$0xff] }
 0x3a9   :  { %5153 = vmatpush.bf16.msra.mxu1 %v6307_v1 }
 0x3aa   :  { %v8797_v60 = vadd.f32 %v4659_v23, %v4571_v19  ;;  %v4662_v13 = vpop.f32.mrf.mxu3  ;;  %v9998_v23 = vrot.slane %v8611_v29, 7  ;;  %v10000_v29 = vpack.c.b16 %v7698_v44, %v7702_v14 }
 0x3ac   :  { %4612 = vmatmul.bf16.gmra.mxu2 %v8771_v47  ;;  %v4489_v48 = vpop.f32.mrf.mxu1  ;;  %v8804_v39 = vpop.f32.mrf.mxu0  ;;  %v3103_v19 = vsel %vm318_vm0, %v9998_v23, %v3007_v36 }
 0x3ad   :  { %9997 = vst [vmem:[#allocation95_spill] sm:$0xff] %v8804_v39 }
 0x3ae   :  { %4804 = vmatmul.bf16.vlgmr.msrb.gmra.mxu1 %v7892_v21  ;;  %v9999_v21 = vld [vmem:[#allocation33_spill] sm:$0xff] }
 0x3af   :  { %v4573_v10 = vpop.f32.mrf.mxu2 }
 0x3b0   :  { %v4574_v11 = vadd.f32 %v4573_v10, %v4484_v41  ;;  %v3167_v41 = vpack.c.bf16 %v3103_v19, %v3103_v19 }
 0x3b2   :  { %v8802_v43 = vadd.f32 %v4662_v13, %v4574_v11  ;;  %v4664_v28 = vpop.f32.mrf.mxu3  ;;  %v3547_v20 = vunpack.c.l.b16 %v3167_v41 }
 0x3b3   :  { %5071 = vmatmul.bf16.vlgmr.msra.gmra.mxu0 %v7768_v33 }
 0x3b4   :  { %v4491_v63 = vpop.f32.mrf.mxu1  ;;  %v3551_v11 = vpack.c.b16 %v3547_v20, %v8705_v38  ;;  %v8816_v1 = vpop.f32.mrf.mxu0 }
 0x3b6   :  { %v3576_v36 = vshll.u32 %v3551_v11, 16  ;;  %v3583_v23 = vrot.slane %v3551_v11, 1  ;;  %v3574_v20 = vshrl.u32 %v3551_v11, 16 }
 0x3b7   :  { %v4575_v53 = vpop.f32.mrf.mxu2  ;;  %4982 = vmatmul.bf16.vlgmr.msra.gmra.mxu3 %v9999_v21 }
 0x3b8   :  { %v4576_v10 = vadd.f32 %v4575_v53, %v4486_v6  ;;  %v3578_v53 = vrot.slane %v3576_v36, 1  ;;  %v8821_v19 = vunpack.c.l.b16 %v3583_v23 }
 0x3ba   :  { %v8811_v13 = vadd.f32 %v4664_v28, %v4576_v10  ;;  %v4667_v39 = vpop.f32.mrf.mxu3  ;;  %v3579_v21 = vor.u32 %v3578_v53, %v3574_v20 }
 0x3bc   :  { %4893 = vmatmul.bf16.vlgmr.msra.gmra.mxu2 %v10000_v29  ;;  %v4494_v6 = vpop.f32.mrf.mxu1  ;;  %v3646_v36 = vunpack.c.l.b16 %v3579_v21 }
 0x3be   :  { %4809 = vmatmul.bf16.gmra.mxu1 %v7900_v46  ;;  %v10001_v46 = vunpack.c.l.b16 %v8692_v35  ;;  %v8840_v23 = vpack.c.b16 %v3646_v36, %v8766_v55  ;;  %v8843_v53 = vpack.c.b16 %v8766_v55, %v3646_v36 }
 0x3bf   :  { %v4578_v28 = vpop.f32.mrf.mxu2 }
 0x3c0   :  { %v4579_v41 = vadd.f32 %v4578_v28, %v4489_v48  ;;  %v10002_v48 = vunpack.c.l.b16 %v8752_v8  ;;  %v8845_v28 = vpop.f32.mrf.mxu0  ;;  %v10003_v8 = vpack.c.b16 %v7780_v25, %v7732_v61 }
 0x3c2   :  { %v8830_v14 = vadd.f32 %v4667_v39, %v4579_v41  ;;  %v4669_v29 = vpop.f32.mrf.mxu3  ;;  %v8837_v11 = vpack.c.b16 %v10002_v48, %v10001_v46 }
 0x3c3   :  { %5076 = vmatmul.bf16.gmra.mxu0 %v7832_v27 }
 0x3c4   :  { %v4496_v39 = vpop.f32.mrf.mxu1 }
 0x3c7   :  { %v4580_v20 = vpop.f32.mrf.mxu2  ;;  %4987 = vmatmul.bf16.gmra.mxu3 %v7759_v52  ;;  %v6306_v52 = vld [vmem:[#allocation7 + $0x228] sm:$0xff] }
 0x3c8   :  { %v4581_v27 = vadd.f32 %v4580_v20, %v4491_v63  ;;  %v8854_v55 = vpop.f32.mrf.mxu0  ;;  %5154 = vmatpush.bf16.msra.mxu1 %v6306_v52 }
 0x3ca   :  { %v8848_v41 = vadd.f32 %v4669_v29, %v4581_v27  ;;  %v4672_v35 = vpop.f32.mrf.mxu3 }
 0x3cc   :  { %4898 = vmatmul.bf16.gmra.mxu2 %v10003_v8  ;;  %v4499_v21 = vpop.f32.mrf.mxu1  ;;  %v10004_v8 = vld [vmem:[#allocation39_spill] sm:$0xff] }
 0x3ce   :  { %4814 = vmatmul.bf16.gmra.mxu1 %v7908_v58 }
 0x3cf   :  { %v4583_v46 = vpop.f32.mrf.mxu2 }
 0x3d0   :  { %v4584_v36 = vadd.f32 %v4583_v46, %v4494_v6  ;;  %v8860_v25 = vpop.f32.mrf.mxu0  ;;  %v10005_v6 = vpack.c.b16 %v7880_v4, %v10004_v8  ;;  %v10008_v4 = vld [vmem:[#allocation34_spill] sm:$0xff]  ;;  %v10009_v8 = vld [vmem:[#allocation44_spill] sm:$0xff] }
 0x3d2   :  { %v8856_v48 = vadd.f32 %v4672_v35, %v4584_v36  ;;  %v4674_v63 = vpop.f32.mrf.mxu3 }
 0x3d3   :  { %5081 = vmatmul.bf16.gmra.mxu0 %v7921_v22 }
 0x3d4   :  { %v4501_v29 = vpop.f32.mrf.mxu1 }
 0x3d7   :  { %v4585_v20 = vpop.f32.mrf.mxu2  ;;  %4992 = vmatmul.bf16.gmra.mxu3 %v7843_v12  ;;  %v3580_v12 = vrot.slane %v7944_v9, 1  ;;  %v10012_v9 = vld [vmem:[#allocation55_spill] sm:$0xff] }
 0x3d8   :  { %v4586_v61 = vadd.f32 %v4585_v20, %v4496_v39  ;;  %v8872_v52 = vpop.f32.mrf.mxu0 }
 0x3d9   :  { %10006 = vst [vmem:[#allocation33_spill] sm:$0xff] %v8872_v52  ;;  %v8874_v20 = vunpack.c.l.b16 %v3580_v12 }
 0x3da   :  { %v8862_v27 = vadd.f32 %v4674_v63, %v4586_v61  ;;  %v4677_v58 = vpop.f32.mrf.mxu3 }
 0x3db   :  { %10007 = vst [vmem:[#allocation39_spill] sm:$0xff] %v8874_v20 }
 0x3dc   :  { %4903 = vmatmul.bf16.gmra.mxu2 %v10005_v6  ;;  %v4504_v35 = vpop.f32.mrf.mxu1  ;;  %v10010_v6 = vpack.c.b16 %v10008_v4, %v10009_v8  ;;  %v10015_v8 = vld [vmem:[#allocation57_spill] sm:$0xff] }
 0x3de   :  { %4819 = vmatmul.bf16.gmra.mxu1 %v8136_v37 }
 0x3df   :  { %v4588_v46 = vpop.f32.mrf.mxu2 }
 0x3e0   :  { %v4589_v22 = vadd.f32 %v4588_v46, %v4499_v21  ;;  %v10011_v21 = vld [vmem:[#allocation46_spill] sm:$0xff]  ;;  %v10013_v46 = vunpack.c.l.b16 %v10012_v9  ;;  %v8886_v33 = vpop.f32.mrf.mxu0 }
 0x3e2   :  { %v8868_v36 = vadd.f32 %v4677_v58, %v4589_v22  ;;  %v4679_v39 = vpop.f32.mrf.mxu3  ;;  %v3815_v58 = vpack.c.b16 %v8874_v20, %v10011_v21  ;;  %v3823_v22 = vpack.c.b16 %v8044_v57, %v10013_v46 }
 0x3e3   :  { %5086 = vmatmul.bf16.gmra.mxu0 %v8184_v49 }
 0x3e4   :  { %v4506_v63 = vpop.f32.mrf.mxu1 }
 0x3e7   :  { %v4590_v61 = vpop.f32.mrf.mxu2  ;;  %4997 = vmatmul.bf16.gmra.mxu3 %v10010_v6 }
 0x3e8   :  { %v4591_v44 = vadd.f32 %v4590_v61, %v4501_v29  ;;  %v8892_v6 = vpop.f32.mrf.mxu0 }
 0x3e9   :  { %10016 = vst [vmem:[#allocation44_spill] sm:$0xff] %v8892_v6 }
 0x3ea   :  { %v8879_v37 = vadd.f32 %v4679_v39, %v4591_v44  ;;  %v4682_v49 = vpop.f32.mrf.mxu3  ;;  %v6305_v44 = vld [vmem:[#allocation7 + $0x220] sm:$0xff] }
 0x3eb   :  { %5155 = vmatpush.bf16.msra.mxu1 %v6305_v44  ;;  %v10023_v44 = vunpack.c.l.b16 %v8146_v50 }
 0x3ec   :  { %4908 = vmatmul.bf16.gmra.mxu2 %v3815_v58  ;;  %v4509_v12 = vpop.f32.mrf.mxu1  ;;  %v10017_v58 = vld [vmem:[#allocation25_spill] sm:$0xff] }
 0x3ed   :  { %v2991_v9 = vrot.slane %v10017_v58, 5 }
 0x3ee   :  { %4824 = vmatmul.bf16.gmra.mxu1 %v3823_v22  ;;  %v10019_v22 = vld [vmem:[#allocation42_spill] sm:$0xff] }
 0x3ef   :  { %v4593_v10 = vpop.f32.mrf.mxu2 }
 0x3f0   :  { %v4594_v52 = vadd.f32 %v4593_v10, %v4504_v35  ;;  %v10020_v10 = vld [vmem:[#allocation43_spill] sm:$0xff] }
 0x3f1   :  { %v3824_v35 = vpack.c.b16 %v10020_v10, %v10019_v22 }
 0x3f2   :  { %v8888_v4 = vadd.f32 %v4682_v49, %v4594_v52  ;;  %v4684_v29 = vpop.f32.mrf.mxu3 }
 0x3f3   :  { %5091 = vmatmul.bf16.gmra.mxu0 %v8113_v40  ;;  %v10021_v40 = vld [vmem:[#allocation52_spill] sm:$0xff] }
 0x3f4   :  { %10014 = vst [vmem:[#allocation34_spill] sm:$0xff] %v8888_v4  ;;  %v4511_v39 = vpop.f32.mrf.mxu1  ;;  %v10022_v49 = vunpack.c.l.b16 %v10021_v40  ;;  %v10027_v40 = vld [vmem:[#allocation61_spill] sm:$0xff] }
 0x3f6   :  { %v3829_v21 = vpack.c.b16 %v10023_v44, %v10022_v49 }
 0x3f7   :  { %v4595_v61 = vpop.f32.mrf.mxu2  ;;  %5002 = vmatmul.bf16.gmra.mxu3 %v10015_v8  ;;  %v10024_v8 = vrot.slane %v10017_v58, 7  ;;  %v10028_v58 = vld [vmem:[#allocation78_spill] sm:$0xff] }
 0x3f8   :  { %v4596_v57 = vadd.f32 %v4595_v61, %v4506_v63 }
 0x3f9   :  { %v3087_v6 = vsel %vm318_vm0, %v10024_v8, %v2991_v9 }
 0x3fa   :  { %v8895_v46 = vadd.f32 %v4684_v29, %v4596_v57  ;;  %v4687_v52 = vpop.f32.mrf.mxu3  ;;  %v3135_v29 = vpack.c.bf16 %v3087_v6, %v3087_v6  ;;  %v8906_v57 = vpop.f32.mrf.mxu0 }
 0x3fb   :  { %10025 = vst [vmem:[#allocation57_spill] sm:$0xff] %v8906_v57 }
 0x3fc   :  { %10018 = vst [vmem:[#allocation55_spill] sm:$0xff] %v8895_v46  ;;  %4913 = vmatmul.bf16.gmra.mxu2 %v3824_v35  ;;  %v4514_v20 = vpop.f32.mrf.mxu1  ;;  %v3543_v10 = vunpack.c.l.b16 %v3135_v29 }
 0x3fe   :  { %4829 = vmatmul.bf16.gmra.mxu1 %v3829_v21  ;;  %v3549_v44 = vpack.c.b16 %v3543_v10, %v10028_v58  ;;  %v10030_v21 = vld [vmem:[#allocation59_spill] sm:$0xff] }
 0x3ff   :  { %v4598_v63 = vpop.f32.mrf.mxu2 }
 0x400   :  { %v4599_v61 = vadd.f32 %v4598_v63, %v4509_v12  ;;  %v10031_v12 = vld [vmem:[#allocation28_spill] sm:$0xff]  ;;  %v3562_v57 = vshll.u32 %v3549_v44, 16 }
 0x401   :  { %v3830_v6 = vpack.c.b16 %v10031_v12, %v10030_v21  ;;  %v3560_v12 = vshrl.u32 %v3549_v44, 16 }
 0x402   :  { %v8908_v46 = vadd.f32 %v4687_v52, %v4599_v61  ;;  %v4689_v22 = vpop.f32.mrf.mxu3  ;;  %v8917_v63 = vpop.f32.mrf.mxu0  ;;  %v10033_v52 = vld [vmem:[#allocation38_spill] sm:$0xff]  ;;  %v10035_v61 = vld [vmem:[#allocation80_spill] sm:$0xff]  ;;  %v3564_v10 = vrot.slane %v3562_v57, 1  ;;  %v10043_v57 = vld [vmem:[#allocation77_spill] sm:$0xff] }
 0x403   :  { %5096 = vmatmul.bf16.gmra.mxu0 %v8207_v15  ;;  %10032 = vst [vmem:[#allocation43_spill] sm:$0xff] %v8917_v63  ;;  %v10034_v15 = vunpack.c.l.b16 %v10033_v52  ;;  %v10036_v29 = vunpack.c.l.b16 %v10035_v61 }
 0x404   :  { %10026 = vst [vmem:[#allocation25_spill] sm:$0xff] %v8908_v46  ;;  %v4516_v35 = vpop.f32.mrf.mxu1 }
 0x405   :  { %v3835_v46 = vpack.c.b16 %v10036_v29, %v10034_v15  ;;  %v10040_v15 = vld [vmem:[#allocation79_spill] sm:$0xff] }
 0x407   :  { %v4600_v50 = vpop.f32.mrf.mxu2  ;;  %5007 = vmatmul.bf16.gmra.mxu3 %v10027_v40 }
 0x408   :  { %v4601_v49 = vadd.f32 %v4600_v50, %v4511_v39  ;;  %v10038_v50 = vld [vmem:[#allocation66_spill] sm:$0xff] }
 0x40a   :  { %v8913_v9 = vadd.f32 %v4689_v22, %v4601_v49  ;;  %v4692_v8 = vpop.f32.mrf.mxu3  ;;  %v6304_v49 = vld [vmem:[#allocation7 + $0x218] sm:$0xff] }
 0x40b   :  { %5156 = vmatpush.bf16.msra.mxu1 %v6304_v49 }
 0x40c   :  { %10029 = vst [vmem:[#allocation42_spill] sm:$0xff] %v8913_v9  ;;  %4918 = vmatmul.bf16.gmra.mxu2 %v3830_v6  ;;  %v4519_v4 = vpop.f32.mrf.mxu1  ;;  %v3565_v6 = vor.u32 %v3564_v10, %v3560_v12  ;;  %v8926_v9 = vpop.f32.mrf.mxu0 }
 0x40d   :  { %10039 = vst [vmem:[#allocation61_spill] sm:$0xff] %v8926_v9 }
 0x40e   :  { %4834 = vmatmul.bf16.gmra.mxu1 %v3835_v46  ;;  %v3614_v63 = vunpack.c.l.b16 %v3565_v6  ;;  %v10046_v6 = vld [vmem:[#allocation48_spill] sm:$0xff] }
 0x40f   :  { %v4603_v40 = vpop.f32.mrf.mxu2 }
 0x410   :  { %v4604_v39 = vadd.f32 %v4603_v40, %v4514_v20  ;;  %v10042_v20 = vld [vmem:[#allocation35_spill] sm:$0xff] }
 0x412   :  { %v8923_v22 = vadd.f32 %v4692_v8, %v4604_v39  ;;  %v4694_v21 = vpop.f32.mrf.mxu3  ;;  %v3836_v8 = vpack.c.b16 %v10043_v57, %v10042_v20  ;;  %v10044_v39 = vld [vmem:[#allocation63_spill] sm:$0xff] }
 0x413   :  { %5101 = vmatmul.bf16.gmra.mxu0 %v10038_v50  ;;  %v3841_v50 = vpack.c.b16 %v3614_v63, %v10044_v39  ;;  %v3844_v9 = vpack.c.b16 %v10044_v39, %v3614_v63  ;;  %v10052_v39 = vld [vmem:[#allocation56_spill] sm:$0xff] }
 0x414   :  { %10037 = vst [vmem:[#allocation52_spill] sm:$0xff] %v8923_v22  ;;  %v4521_v52 = vpop.f32.mrf.mxu1  ;;  %v8934_v10 = vpop.f32.mrf.mxu0 }
 0x417   :  { %v4605_v61 = vpop.f32.mrf.mxu2  ;;  %5012 = vmatmul.bf16.gmra.mxu3 %v10040_v15 }
 0x418   :  { %v4606_v29 = vadd.f32 %v4605_v61, %v4516_v35  ;;  %v3581_v35 = vrot.slane %v3549_v44, 1  ;;  %v3843_v61 = vpack.c.b16 %v10046_v6, %v10028_v58  ;;  %v10051_v44 = vld [vmem:[#allocation71_spill] sm:$0xff]  ;;  %v10053_v58 = vunpack.c.l.b16 %v10052_v39 }
 0x41a   :  { %v8929_v46 = vadd.f32 %v4694_v21, %v4606_v29  ;;  %v4697_v40 = vpop.f32.mrf.mxu3  ;;  %v8941_v20 = vunpack.c.l.b16 %v3581_v35 }
 0x41c   :  { %10041 = vst [vmem:[#allocation78_spill] sm:$0xff] %v8929_v46  ;;  %4923 = vmatmul.bf16.gmra.mxu2 %v3836_v8  ;;  %v4524_v22 = vpop.f32.mrf.mxu1 }
 0x41d   :  { %10047 = vst [vmem:[#allocation28_spill] sm:$0xff] %v8941_v20 }
 0x41e   :  { %4839 = vmatmul.bf16.gmra.mxu1 %v3841_v50  ;;  %v8943_v50 = vpop.f32.mrf.mxu0 }
 0x41f   :  { %v4608_v49 = vpop.f32.mrf.mxu2  ;;  %10048 = vst [vmem:[#allocation38_spill] sm:$0xff] %v8943_v50 }
 0x420   :  { %v4609_v12 = vadd.f32 %v4608_v49, %v4519_v4  ;;  %v10050_v4 = vld [vmem:[#allocation47_spill] sm:$0xff]  ;;  %v10054_v49 = vld [vmem:[#allocation60_spill] sm:$0xff] }
 0x421   :  { %v3842_v63 = vpack.c.b16 %v8941_v20, %v10050_v4 }
 0x422   :  { %v8937_v15 = vadd.f32 %v4697_v40, %v4609_v12  ;;  %v4699_v21 = vpop.f32.mrf.mxu3  ;;  %v3850_v12 = vpack.c.b16 %v10054_v49, %v10053_v58  ;;  %v10060_v49 = vld [vmem:[#allocation41_spill] sm:$0xff] }
 0x423   :  { %5106 = vmatmul.bf16.gmra.mxu0 %v3844_v9  ;;  %v4717_v9 = vadd.f32 %v10051_v44, %v8393_v18  ;;  %v10059_v18 = vld [vmem:[#allocation85_spill] sm:$0xff] }
 0x424   :  { %10045 = vst [vmem:[#allocation59_spill] sm:$0xff] %v8937_v15  ;;  %v4526_v29 = vpop.f32.mrf.mxu1  ;;  %v10067_v15 = vld [vmem:[#allocation40_spill] sm:$0xff] }
 0x426   :  { %v8957_v20 = vpop.f32.mrf.mxu0 }
 0x427   :  { %v4610_v57 = vpop.f32.mrf.mxu2  ;;  %5017 = vmatmul.bf16.gmra.mxu3 %v3843_v61  ;;  %10057 = vst [vmem:[#allocation79_spill] sm:$0xff] %v8957_v20 }
 0x428   :  { %v4611_v8 = vadd.f32 %v4610_v57, %v4521_v52 }
 0x42a   :  { %v8945_v46 = vadd.f32 %v4699_v21, %v4611_v8  ;;  %v4702_v40 = vpop.f32.mrf.mxu3  ;;  %v10056_v21 = vld [vmem:[#allocation81_spill] sm:$0xff]  ;;  %v6303_v8 = vld [vmem:[#allocation7 + $0x210] sm:$0xff] }
 0x42b   :  { %5157 = vmatpush.bf16.msra.mxu1 %v6303_v8  ;;  %v10065_v8 = vld [vmem:[#allocation82_spill] sm:$0xff] }
 0x42c   :  { %10049 = vst [vmem:[#allocation80_spill] sm:$0xff] %v8945_v46  ;;  %4928 = vmatmul.bf16.gmra.mxu2 %v3842_v63  ;;  %v4805_v35 = vpop.f32.mrf.mxu1  ;;  %v10058_v63 = vld [vmem:[#allocation83_spill] sm:$0xff]  ;;  %v10066_v20 = vunpack.c.l.b16 %v10065_v8 }
 0x42d   :  { %v4806_v61 = vadd.f32 %v4805_v35, %v4717_v9  ;;  %v4719_v44 = vadd.f32 %v10059_v18, %v10058_v63  ;;  %v10068_v63 = vunpack.c.l.b16 %v10067_v15  ;;  %v10073_v15 = vld [vmem:[#allocation73_spill] sm:$0xff] }
 0x42e   :  { %4844 = vmatmul.bf16.gmra.mxu1 %v3850_v12  ;;  %v8972_v50 = vpop.f32.mrf.mxu0 }
 0x42f   :  { %v4613_v6 = vpop.f32.mrf.mxu2  ;;  %v3856_v18 = vpack.c.b16 %v10068_v63, %v10066_v20 }
 0x430   :  { %v4614_v52 = vadd.f32 %v4613_v6, %v4524_v22  ;;  %v10061_v22 = vld [vmem:[#allocation53_spill] sm:$0xff] }
 0x432   :  { %v8954_v57 = vadd.f32 %v4702_v40, %v4614_v52  ;;  %v4704_v4 = vpop.f32.mrf.mxu3  ;;  %v10062_v40 = vld [vmem:[#allocation68_spill] sm:$0xff]  ;;  %v10063_v52 = vld [vmem:[#allocation27_spill] sm:$0xff] }
 0x433   :  { %5111 = vmatmul.bf16.gmra.mxu0 %v10056_v21  ;;  %v3851_v35 = vpack.c.b16 %v10062_v40, %v10061_v22  ;;  %v10064_v21 = vld [vmem:[#allocation67_spill] sm:$0xff]  ;;  %v10071_v22 = vld [vmem:[#allocation49_spill] sm:$0xff]  ;;  %v10072_v40 = vld [vmem:[#allocation14_spill] sm:$0xff] }
 0x434   :  { %10055 = vst [vmem:[#allocation66_spill] sm:$0xff] %v8954_v57  ;;  %v4807_v39 = vpop.f32.mrf.mxu1  ;;  %v4722_v57 = vadd.f32 %v10064_v21, %v10063_v52 }
 0x435   :  { %v4808_v58 = vadd.f32 %v4807_v39, %v4719_v44 }
 0x436   :  { %v8980_v20 = vpop.f32.mrf.mxu0 }
 0x437   :  { %v4615_v46 = vpop.f32.mrf.mxu2  ;;  %5022 = vmatmul.bf16.gmra.mxu3 %v10060_v49  ;;  %v10070_v49 = vld [vmem:[#allocation72_spill] sm:$0xff] }
 0x438   :  { %v4616_v9 = vadd.f32 %v4615_v46, %v4526_v29 }
 0x43a   :  { %v8962_v12 = vadd.f32 %v4704_v4, %v4616_v9  ;;  %v4983_v6 = vpop.f32.mrf.mxu3 }
 0x43c   :  { %4933 = vmatmul.bf16.gmra.mxu2 %v3851_v35  ;;  %v4810_v44 = vpop.f32.mrf.mxu1  ;;  %v4724_v35 = vadd.f32 %v10072_v40, %v10071_v22 }
 0x43d   :  { %v4811_v39 = vadd.f32 %v4810_v44, %v4722_v57 }
 0x43e   :  { %4849 = vmatmul.bf16.gmra.mxu1 %v3856_v18  ;;  %v10075_v18 = vld [vmem:[#allocation76_spill] sm:$0xff] }
 0x43f   :  { %v4894_v46 = vpop.f32.mrf.mxu2 }
 0x440   :  { %v4895_v29 = vadd.f32 %v4894_v46, %v4806_v61  ;;  %v10076_v61 = vld [vmem:[#allocation15_spill] sm:$0xff] }
 0x441   :  { %v10077_v46 = vld [vmem:[#allocation19_spill] sm:$0xff] }
 0x442   :  { %v8974_v4 = vadd.f32 %v4983_v6, %v4895_v29  ;;  %v4985_v9 = vpop.f32.mrf.mxu3  ;;  %v3857_v6 = vpack.c.b16 %v10076_v61, %v10075_v18  ;;  %v10078_v29 = vld [vmem:[#allocation36_spill] sm:$0xff]  ;;  %v10083_v18 = vld [vmem:[#allocation23_spill] sm:$0xff] }
 0x443   :  { %5116 = vmatmul.bf16.gmra.mxu0 %v10070_v49  ;;  %v4727_v49 = vadd.f32 %v10078_v29, %v10077_v46 }
 0x444   :  { %10069 = vst [vmem:[#allocation35_spill] sm:$0xff] %v8974_v4  ;;  %v4812_v52 = vpop.f32.mrf.mxu1 }
 0x445   :  { %v4813_v21 = vadd.f32 %v4812_v52, %v4724_v35  ;;  %v8989_v52 = vpop.f32.mrf.mxu0 }
 0x446   :  { %10079 = vst [vmem:[#allocation63_spill] sm:$0xff] %v8989_v52 }
 0x447   :  { %v4896_v8 = vpop.f32.mrf.mxu2  ;;  %5027 = vmatmul.bf16.gmra.mxu3 %v10073_v15 }
 0x448   :  { %v4897_v63 = vadd.f32 %v4896_v8, %v4808_v58  ;;  %v10081_v58 = vld [vmem:[#allocation50_spill] sm:$0xff] }
 0x44a   :  { %v8982_v57 = vadd.f32 %v4985_v9, %v4897_v63  ;;  %v4988_v44 = vpop.f32.mrf.mxu3  ;;  %v6302_v9 = vld [vmem:[#allocation7 + $0x208] sm:$0xff] }
 0x44b   :  { %5158 = vmatpush.bf16.msra.mxu1 %v6302_v9  ;;  %v10082_v63 = vld [vmem:[#allocation45_spill] sm:$0xff]  ;;  %v10088_v9 = vld [vmem:[#allocation12_spill] sm:$0xff] }
 0x44c   :  { %10074 = vst [vmem:[#allocation77_spill] sm:$0xff] %v8982_v57  ;;  %4938 = vmatmul.bf16.gmra.mxu2 %v3857_v6  ;;  %v4815_v4 = vpop.f32.mrf.mxu1  ;;  %v4729_v61 = vadd.f32 %v10083_v18, %v10082_v63 }
 0x44d   :  { %v4816_v22 = vadd.f32 %v4815_v4, %v4727_v49  ;;  %v10084_v4 = vld [vmem:[#allocation16_spill] sm:$0xff] }
 0x44e   :  { %4854 = vmatmul.bf16.gmra.mxu1 %v8738_v42 }
 0x44f   :  { %v4899_v40 = vpop.f32.mrf.mxu2 }
 0x450   :  { %v4900_v35 = vadd.f32 %v4899_v40, %v4811_v39  ;;  %v10085_v39 = vld [vmem:[#allocation26_spill] sm:$0xff] }
 0x451   :  { %v10086_v40 = vld [vmem:[#allocation18_spill] sm:$0xff] }
 0x452   :  { %v8991_v15 = vadd.f32 %v4988_v44, %v4900_v35  ;;  %v4990_v8 = vpop.f32.mrf.mxu3  ;;  %v3863_v44 = vpack.c.b16 %v10086_v40, %v10085_v39  ;;  %v10091_v39 = vld [vmem:[#allocation84_spill] sm:$0xff] }
 0x453   :  { %5121 = vmatmul.bf16.gmra.mxu0 %v10081_v58  ;;  %v10087_v58 = vld [vmem:[#allocation69_spill] sm:$0xff]  ;;  %v3870_v40 = vpack.c.b16 %v10091_v39, %v8520_v26 }
 0x454   :  { %10080 = vst [vmem:[#allocation48_spill] sm:$0xff] %v8991_v15  ;;  %v4817_v6 = vpop.f32.mrf.mxu1  ;;  %v9001_v15 = vpop.f32.mrf.mxu0  ;;  %v4732_v57 = vadd.f32 %v10088_v9, %v10087_v58  ;;  %v10093_v9 = vld [vmem:[#allocation22_spill] sm:$0xff] }
 0x455   :  { %v4818_v46 = vadd.f32 %v4817_v6, %v4729_v61 }
 0x457   :  { %v4901_v29 = vpop.f32.mrf.mxu2  ;;  %5032 = vmatmul.bf16.gmra.mxu3 %v10084_v4  ;;  %v10090_v4 = vld [vmem:[#allocation64_spill] sm:$0xff] }
 0x458   :  { %v4902_v49 = vadd.f32 %v4901_v29, %v4813_v21  ;;  %v3582_v21 = vrot.slane %v8742_v5, 1  ;;  %v10089_v29 = vld [vmem:[#allocation21_spill] sm:$0xff] }
 0x45a   :  { %v8997_v42 = vadd.f32 %v4990_v8, %v4902_v49  ;;  %v4993_v35 = vpop.f32.mrf.mxu3  ;;  %v4734_v49 = vadd.f32 %v10090_v4, %v10089_v29 }
 0x45c   :  { %4943 = vmatmul.bf16.gmra.mxu2 %v3863_v44  ;;  %v4820_v52 = vpop.f32.mrf.mxu1  ;;  %v9014_v44 = vpop.f32.mrf.mxu0 }
 0x45d   :  { %v4821_v63 = vadd.f32 %v4820_v52, %v4732_v57  ;;  %v9016_v52 = vunpack.c.l.b16 %v3582_v21 }
 0x45e   :  { %4859 = vmatmul.bf16.gmra.mxu1 %v8778_v24 }
 0x45f   :  { %v4904_v18 = vpop.f32.mrf.mxu2 }
 0x460   :  { %v4905_v61 = vadd.f32 %v4904_v18, %v4816_v22  ;;  %v4737_v18 = vadd.f32 %v10093_v9, %v8677_v54  ;;  %v10096_v54 = vld [vmem:[#allocation24_spill] sm:$0xff]  ;;  %v10097_v9 = vld [vmem:[#allocation65_spill] sm:$0xff] }
 0x462   :  { %v9006_v6 = vadd.f32 %v4993_v35, %v4905_v61  ;;  %v4995_v8 = vpop.f32.mrf.mxu3  ;;  %v10094_v61 = vld [vmem:[#allocation75_spill] sm:$0xff] }
 0x463   :  { %5126 = vmatmul.bf16.gmra.mxu0 %v8781_v62  ;;  %v10092_v62 = vld [vmem:[#allocation32_spill] sm:$0xff]  ;;  %v10095_v26 = vunpack.c.l.b16 %v10094_v61 }
 0x464   :  { %v4822_v57 = vpop.f32.mrf.mxu1  ;;  %v3869_v5 = vpack.c.b16 %v9016_v52, %v10092_v62 }
 0x465   :  { %v4823_v24 = vadd.f32 %v4822_v57, %v4734_v49  ;;  %v3877_v29 = vpack.c.b16 %v8618_v0, %v10095_v26  ;;  %v6301_v57 = vld [vmem:[#allocation7 + $0x200] sm:$0xff] }
 0x466   :  { %5159 = vmatpush.bf16.msra.mxu1 %v6301_v57  ;;  %v10103_v57 = vld [vmem:[#allocation90_spill] sm:$0xff] }
 0x467   :  { %v4906_v22 = vpop.f32.mrf.mxu2  ;;  %5037 = vmatmul.bf16.gmra.mxu3 %v3870_v40 }
 0x468   :  { %v4907_v35 = vadd.f32 %v4906_v22, %v4818_v46  ;;  %v9029_v46 = vpop.f32.mrf.mxu0  ;;  %v4739_v22 = vadd.f32 %v10096_v54, %v8719_v30  ;;  %v10101_v30 = vld [vmem:[#allocation17_spill] sm:$0xff]  ;;  %v10104_v54 = vunpack.c.l.b16 %v10103_v57  ;;  %v10108_v57 = vld [vmem:[#allocation92_spill] sm:$0xff] }
 0x46a   :  { %v9018_v58 = vadd.f32 %v4995_v8, %v4907_v35  ;;  %v4998_v21 = vpop.f32.mrf.mxu3 }
 0x46c   :  { %4948 = vmatmul.bf16.gmra.mxu2 %v3869_v5  ;;  %v4825_v4 = vpop.f32.mrf.mxu1 }
 0x46d   :  { %v9027_v39 = vadd.f32 %v4825_v4, %v4737_v18  ;;  %v10099_v4 = vld [vmem:[#allocation70_spill] sm:$0xff] }
 0x46e   :  { %4864 = vmatmul.bf16.gmra.mxu1 %v3877_v29  ;;  %v10098_v29 = vld [vmem:[#allocation74_spill] sm:$0xff] }
 0x46f   :  { %v4909_v49 = vpop.f32.mrf.mxu2 }
 0x470   :  { %v4910_v8 = vadd.f32 %v4909_v49, %v4821_v63  ;;  %v9039_v26 = vpop.f32.mrf.mxu0 }
 0x472   :  { %v9031_v40 = vadd.f32 %v4998_v21, %v4910_v8  ;;  %v5000_v61 = vpop.f32.mrf.mxu3  ;;  %v10100_v21 = vld [vmem:[#allocation91_spill] sm:$0xff]  ;;  %v10102_v8 = vunpack.c.l.b16 %v10101_v30 }
 0x473   :  { %5131 = vmatmul.bf16.gmra.mxu0 %v8731_v31  ;;  %v3878_v31 = vpack.c.b16 %v10099_v4, %v10098_v29  ;;  %v4742_v49 = vadd.f32 %v10100_v21, %v8759_v59  ;;  %v10105_v59 = vld [vmem:[#allocation20_spill] sm:$0xff]  ;;  %v10106_v29 = vld [vmem:[#allocation29_spill] sm:$0xff]  ;;  %v4747_v21 = vadd.f32 %v8773_v51, %v8789_v3  ;;  %v10109_v51 = vpack.c.b16 %v8746_v34, %v8679_v16  ;;  %v10110_v3 = vld [vmem:[#allocation94_spill] sm:$0xff] }
 0x474   :  { %v4827_v35 = vpop.f32.mrf.mxu1  ;;  %v10107_v4 = vld [vmem:[#allocation88_spill] sm:$0xff]  ;;  %v10112_v16 = vpack.c.b16 %v8711_v17, %v8705_v38  ;;  %v10113_v34 = vpack.c.b16 %v8821_v19, %v8748_v32  ;;  %v4762_v38 = vadd.f32 %v8854_v55, %v8856_v48  ;;  %v4769_v55 = vadd.f32 %v8886_v33, %v8879_v37  ;;  %v10124_v33 = vld [vmem:[#allocation25_spill] sm:$0xff]  ;;  %v10125_v37 = vld [vmem:[#allocation43_spill] sm:$0xff] }
 0x475   :  { %v9036_v0 = vadd.f32 %v4827_v35, %v4739_v22  ;;  %v3883_v22 = vpack.c.b16 %v10104_v54, %v10102_v8 }
 0x477   :  { %v4911_v5 = vpop.f32.mrf.mxu2  ;;  %5042 = vmatmul.bf16.gmra.mxu3 %v10097_v9 }
 0x478   :  { %v4912_v18 = vadd.f32 %v4911_v5, %v4823_v24  ;;  %v9054_v24 = vpop.f32.mrf.mxu0  ;;  %v4744_v5 = vadd.f32 %v8744_v45, %v8783_v2  ;;  %v4749_v45 = vadd.f32 %v8786_v7, %v8797_v60  ;;  %v10111_v7 = vld [vmem:[#allocation95_spill] sm:$0xff] }
 0x479   :  { %v4754_v60 = vadd.f32 %v10111_v7, %v8811_v13  ;;  %v4759_v13 = vadd.f32 %v8845_v28, %v8848_v41 }
 0x47a   :  { %v9041_v63 = vadd.f32 %v5000_v61, %v4912_v18 }
 0x47c   :  { %4953 = vmatmul.bf16.gmra.mxu2 %v3878_v31  ;;  %v4830_v35 = vpop.f32.mrf.mxu1  ;;  %v3884_v31 = vpack.c.b16 %v10107_v4, %v10106_v29 }
 0x47d   :  { %v9051_v9 = vadd.f32 %v4830_v35, %v4742_v49 }
 0x47e   :  { %4869 = vmatmul.bf16.gmra.mxu1 %v3883_v22  ;;  %v4752_v22 = vadd.f32 %v10110_v3, %v8802_v43  ;;  %v4757_v43 = vadd.f32 %v8816_v1, %v8830_v14  ;;  %v4764_v1 = vadd.f32 %v8860_v25, %v8862_v27  ;;  %v10118_v3 = vld [vmem:[#allocation34_spill] sm:$0xff]  ;;  %v10120_v27 = vld [vmem:[#allocation39_spill] sm:$0xff] }
 0x480   :  { %v9065_v49 = vpop.f32.mrf.mxu0 }
 0x483   :  { %5136 = vmatmul.bf16.gmra.mxu0 %v8717_v56 }
 0x484   :  { %v4832_v18 = vpop.f32.mrf.mxu1 }
 0x485   :  { %v9058_v61 = vadd.f32 %v4832_v18, %v4744_v5 }
 0x487   :  { %5047 = vmatmul.bf16.gmra.mxu3 %v10105_v59 }
 0x488   :  { %v9076_v54 = vpop.f32.mrf.mxu0 }
 0x48c   :  { %4958 = vmatmul.bf16.gmra.mxu2 %v3884_v31  ;;  %v4835_v56 = vpop.f32.mrf.mxu1 }
 0x48d   :  { %v9067_v30 = vadd.f32 %v4835_v56, %v4747_v21  ;;  %v10115_v21 = vld [vmem:[#allocation31_spill] sm:$0xff] }
 0x48e   :  { %4874 = vmatmul.bf16.gmra.mxu1 %v8837_v11 }
 0x493   :  { %5141 = vmatmul.bf16.gmra.mxu0 %v8771_v47  ;;  %v9086_v47 = vpop.f32.mrf.mxu0 }
 0x494   :  { %v4837_v2 = vpop.f32.mrf.mxu1 }
 0x495   :  { %v9073_v8 = vadd.f32 %v4837_v2, %v4749_v45  ;;  %v10116_v45 = vld [vmem:[#allocation33_spill] sm:$0xff] }
 0x496   :  { %v4767_v28 = vadd.f32 %v10116_v45, %v8868_v36  ;;  %v10122_v36 = vld [vmem:[#allocation55_spill] sm:$0xff] }
 0x497   :  { %5052 = vmatmul.bf16.gmra.mxu3 %v10108_v57  ;;  %v10117_v57 = vld [vmem:[#allocation54_spill] sm:$0xff] }
 0x49c   :  { %4963 = vmatmul.bf16.gmra.mxu2 %v10109_v51  ;;  %v4840_v11 = vpop.f32.mrf.mxu1 }
 0x49d   :  { %v9083_v35 = vadd.f32 %v4840_v11, %v4752_v22  ;;  %v10119_v22 = vld [vmem:[#allocation44_spill] sm:$0xff]  ;;  %v10121_v11 = vld [vmem:[#allocation46_spill] sm:$0xff] }
 0x49e   :  { %4879 = vmatmul.bf16.gmra.mxu1 %v8840_v23  ;;  %v4772_v25 = vadd.f32 %v10119_v22, %v10118_v3  ;;  %v3818_v7 = vpack.c.b16 %v10121_v11, %v10120_v27  ;;  %v10131_v3 = vld [vmem:[#allocation78_spill] sm:$0xff] }
 0x49f   :  { %v10132_v22 = vld [vmem:[#allocation38_spill] sm:$0xff] }
 0x4a3   :  { %5146 = vmatmul.bf16.gmra.mxu0 %v8843_v53  ;;  %v10114_v53 = vld [vmem:[#allocation30_spill] sm:$0xff] }
 0x4a4   :  { %v4842_v5 = vpop.f32.mrf.mxu1 }
 0x4a5   :  { %v9091_v18 = vadd.f32 %v4842_v5, %v4754_v60 }
 0x4a7   :  { %5057 = vmatmul.bf16.gmra.mxu3 %v10112_v16  ;;  %v10123_v16 = vld [vmem:[#allocation57_spill] sm:$0xff] }
 0x4ac   :  { %4968 = vmatmul.bf16.gmra.mxu2 %v10113_v34  ;;  %v4845_v23 = vpop.f32.mrf.mxu1  ;;  %v4774_v34 = vadd.f32 %v10123_v16, %v10122_v36 }
 0x4ad   :  { %v9101_v59 = vadd.f32 %v4845_v23, %v4757_v43 }
 0x4ae   :  { %5160 = vmatmul.bf16.vlgmr.msra.gmra.mxu1 %v10114_v53  ;;  %v4777_v53 = vadd.f32 %v10125_v37, %v10124_v33 }
 0x4b4   :  { %v4847_v29 = vpop.f32.mrf.mxu1 }
 0x4b5   :  { %v9106_v4 = vadd.f32 %v4847_v29, %v4759_v13 }
 0x4bc   :  { %v4850_v17 = vpop.f32.mrf.mxu1 }
 0x4bd   :  { %v9110_v31 = vadd.f32 %v4850_v17, %v4762_v38  ;;  %v10126_v38 = vld [vmem:[#allocation62_spill] sm:$0xff] }
 0x4be   :  { %5165 = vmatmul.bf16.gmra.mxu1 %v10115_v21  ;;  %v10127_v17 = vld [vmem:[#allocation42_spill] sm:$0xff]  ;;  %v10128_v21 = vld [vmem:[#allocation61_spill] sm:$0xff] }
 0x4c4   :  { %v4852_v14 = vpop.f32.mrf.mxu1 }
 0x4c5   :  { %v9115_v56 = vadd.f32 %v4852_v14, %v4764_v1  ;;  %v4779_v1 = vadd.f32 %v10128_v21, %v10127_v17  ;;  %v10138_v17 = vld [vmem:[#allocation28_spill] sm:$0xff]  ;;  %v10139_v21 = vld [vmem:[#allocation47_spill] sm:$0xff] }
 0x4cc   :  { %v4855_v41 = vpop.f32.mrf.mxu1 }
 0x4cd   :  { %v9119_v2 = vadd.f32 %v4855_v41, %v4767_v28  ;;  %v10129_v28 = vld [vmem:[#allocation52_spill] sm:$0xff] }
 0x4ce   :  { %5170 = vmatmul.bf16.gmra.mxu1 %v10117_v57  ;;  %v4782_v41 = vadd.f32 %v8934_v10, %v10129_v28  ;;  %v10136_v10 = vld [vmem:[#allocation80_spill] sm:$0xff] }
 0x4cf   :  { %v4789_v33 = vadd.f32 %v8972_v50, %v10136_v10 }
 0x4d4   :  { %v4857_v48 = vpop.f32.mrf.mxu1 }
 0x4d5   :  { %v9124_v51 = vadd.f32 %v4857_v48, %v4769_v55  ;;  %v10130_v48 = vld [vmem:[#allocation51_spill] sm:$0xff] }
 0x4dc   :  { %v4860_v60 = vpop.f32.mrf.mxu1 }
 0x4dd   :  { %v9130_v5 = vadd.f32 %v4860_v60, %v4772_v25  ;;  %v4784_v25 = vadd.f32 %v10132_v22, %v10131_v3  ;;  %v10134_v60 = vld [vmem:[#allocation79_spill] sm:$0xff]  ;;  %v10141_v22 = vld [vmem:[#allocation86_spill] sm:$0xff] }
 0x4de   :  { %5175 = vmatmul.bf16.gmra.mxu1 %v3818_v7  ;;  %v10133_v7 = vld [vmem:[#allocation59_spill] sm:$0xff] }
 0x4df   :  { %v4787_v36 = vadd.f32 %v10134_v60, %v10133_v7  ;;  %v10143_v7 = vld [vmem:[#allocation77_spill] sm:$0xff] }
 0x4e0   :  { %v5075_v60 = vadd.f32 %v9014_v44, %v10143_v7  ;;  %v10145_v44 = vld [vmem:[#allocation37_spill] sm:$0xff] }
 0x4e1   :  { %v10146_v7 = vld [vmem:[#allocation13_spill] sm:$0xff] }
 0x4e4   :  { %v4862_v43 = vpop.f32.mrf.mxu1 }
 0x4e5   :  { %v9134_v23 = vadd.f32 %v4862_v43, %v4774_v34  ;;  %v10135_v43 = vld [vmem:[#allocation58_spill] sm:$0xff] }
 0x4ec   :  { %v4865_v13 = vpop.f32.mrf.mxu1 }
 0x4ed   :  { %v9138_v29 = vadd.f32 %v4865_v13, %v4777_v53  ;;  %v10137_v13 = vld [vmem:[#allocation66_spill] sm:$0xff] }
 0x4ee   :  { %5180 = vmatmul.bf16.gmra.mxu1 %v10126_v38  ;;  %v4792_v38 = vadd.f32 %v8980_v20, %v10137_v13 }
 0x4f4   :  { %v4867_v14 = vpop.f32.mrf.mxu1 }
 0x4f5   :  { %v9143_v45 = vadd.f32 %v4867_v14, %v4779_v1  ;;  %v3845_v1 = vpack.c.b16 %v10139_v21, %v10138_v17 }
 0x4fc   :  { %v4870_v57 = vpop.f32.mrf.mxu1 }
 0x4fd   :  { %v9147_v55 = vadd.f32 %v4870_v57, %v4782_v41  ;;  %v10140_v41 = vld [vmem:[#allocation63_spill] sm:$0xff] }
 0x4fe   :  { %5185 = vmatmul.bf16.gmra.mxu1 %v10130_v48  ;;  %v4794_v57 = vadd.f32 %v10140_v41, %v8962_v12 }
 0x504   :  { %v4872_v27 = vpop.f32.mrf.mxu1 }
 0x505   :  { %v9152_v11 = vadd.f32 %v4872_v27, %v4784_v25  ;;  %v10142_v25 = vld [vmem:[#allocation35_spill] sm:$0xff] }
 0x506   :  { %v5073_v27 = vadd.f32 %v9001_v15, %v10142_v25 }
 0x50c   :  { %v4875_v16 = vpop.f32.mrf.mxu1 }
 0x50d   :  { %v9156_v34 = vadd.f32 %v4875_v16, %v4787_v36 }
 0x50e   :  { %5190 = vmatmul.bf16.gmra.mxu1 %v10135_v43 }
 0x514   :  { %v4877_v37 = vpop.f32.mrf.mxu1 }
 0x515   :  { %v9161_v53 = vadd.f32 %v4877_v37, %v4789_v33  ;;  %v10144_v37 = vld [vmem:[#allocation48_spill] sm:$0xff] }
 0x516   :  { %v5078_v15 = vadd.f32 %v9029_v46, %v10144_v37  ;;  %v3872_v37 = vpack.c.b16 %v10092_v62, %v9016_v52  ;;  %v5003_v62 = vpop.f32.mrf.mxu3 }
 0x51c   :  { %v4880_v14 = vpop.f32.mrf.mxu1 }
 0x51d   :  { %v9167_v28 = vadd.f32 %v4880_v14, %v4792_v38  ;;  %v5080_v14 = vadd.f32 %v9039_v26, %v8997_v42 }
 0x51e   :  { %5195 = vmatmul.bf16.gmra.mxu1 %v3845_v1 }
 0x524   :  { %v4882_v48 = vpop.f32.mrf.mxu1 }
 0x525   :  { %v9171_v3 = vadd.f32 %v4882_v48, %v4794_v57 }
 0x52c   :  { %v5161_v50 = vpop.f32.mrf.mxu1 }
 0x52d   :  { %v9176_v20 = vadd.f32 %v5161_v50, %v5073_v27 }
 0x52e   :  { %5200 = vmatmul.bf16.gmra.mxu1 %v10141_v22  ;;  %v5083_v22 = vadd.f32 %v9054_v24, %v9006_v6 }
 0x52f   :  { %v5297_v12 = vmul.f32 %v9176_v20, %v9176_v20 }
 0x534   :  { %v5163_v36 = vpop.f32.mrf.mxu1 }
 0x535   :  { %v9180_v16 = vadd.f32 %v5163_v36, %v5075_v60  ;;  %v5085_v36 = vadd.f32 %v9065_v49, %v9018_v58 }
 0x537   :  { %v5241_v43 = vadd.f32 %v9180_v16, %v9176_v20  ;;  %v5298_v10 = vmul.f32 %v9180_v16, %v9180_v16 }
 0x539   :  { %v5329_v33 = vadd.f32 %v5298_v10, %v5297_v12 }
 0x53c   :  { %v5166_v13 = vpop.f32.mrf.mxu1 }
 0x53d   :  { %v9190_v38 = vadd.f32 %v5166_v13, %v5078_v15 }
 0x53e   :  { %5205 = vmatmul.bf16.gmra.mxu1 %v10145_v44 }
 0x53f   :  { %v5242_v17 = vadd.f32 %v5241_v43, %v9190_v38  ;;  %v5299_v21 = vmul.f32 %v9190_v38, %v9190_v38 }
 0x541   :  { %v5330_v1 = vadd.f32 %v5329_v33, %v5299_v21  ;;  %v5088_v33 = vadd.f32 %v9076_v54, %v9031_v40  ;;  %v5090_v21 = vadd.f32 %v9086_v47, %v9041_v63 }
 0x544   :  { %v5168_v41 = vpop.f32.mrf.mxu1 }
 0x545   :  { %v9198_v57 = vadd.f32 %v5168_v41, %v5080_v14 }
 0x547   :  { %v5243_v48 = vadd.f32 %v5242_v17, %v9198_v57  ;;  %v5300_v46 = vmul.f32 %v9198_v57, %v9198_v57  ;;  %v4914_v17 = vpop.f32.mrf.mxu2 }
 0x549   :  { %v5331_v50 = vadd.f32 %v5330_v1, %v5300_v46 }
 0x54c   :  { %v5171_v25 = vpop.f32.mrf.mxu1 }
 0x54d   :  { %v9205_v27 = vadd.f32 %v5171_v25, %v5083_v22 }
 0x54e   :  { %5210 = vmatmul.bf16.gmra.mxu1 %v10146_v7 }
 0x54f   :  { %v5244_v60 = vadd.f32 %v5243_v48, %v9205_v27  ;;  %v5301_v42 = vmul.f32 %v9205_v27, %v9205_v27  ;;  %v5092_v48 = vpop.f32.mrf.mxu0  ;;  %v4916_v22 = vpop.f32.mrf.mxu2 }
 0x551   :  { %v5332_v26 = vadd.f32 %v5331_v50, %v5301_v42 }
 0x554   :  { %v5173_v12 = vpop.f32.mrf.mxu1 }
 0x555   :  { %v9213_v43 = vadd.f32 %v5173_v12, %v5085_v36  ;;  %v5005_v36 = vpop.f32.mrf.mxu3 }
 0x557   :  { %v5245_v10 = vadd.f32 %v5244_v60, %v9213_v43  ;;  %v5302_v6 = vmul.f32 %v9213_v43, %v9213_v43  ;;  %v10147_v60 = vld [vmem:[#allocation87_spill] sm:$0xff] }
 0x559   :  { %v5333_v24 = vadd.f32 %v5332_v26, %v5302_v6  ;;  %v5094_v6 = vpop.f32.mrf.mxu0 }
 0x55c   :  { %v5176_v15 = vpop.f32.mrf.mxu1 }
 0x55d   :  { %v9222_v13 = vadd.f32 %v5176_v15, %v5088_v33 }
 0x55e   :  { %5215 = vmatmul.bf16.gmra.mxu1 %v3872_v37  ;;  %v4919_v37 = vpop.f32.mrf.mxu2 }
 0x55f   :  { %v5246_v58 = vadd.f32 %v5245_v10, %v9222_v13  ;;  %v5303_v49 = vmul.f32 %v9222_v13, %v9222_v13 }
 0x561   :  { %v5334_v44 = vadd.f32 %v5333_v24, %v5303_v49 }
 0x564   :  { %v5178_v1 = vpop.f32.mrf.mxu1 }
 0x565   :  { %v9229_v14 = vadd.f32 %v5178_v1, %v5090_v21 }
 0x567   :  { %v5247_v40 = vadd.f32 %v5246_v58, %v9229_v14  ;;  %v5304_v52 = vmul.f32 %v9229_v14, %v9229_v14 }
 0x569   :  { %v5248_v54 = vrot.slane %v5247_v40, 4  ;;  %v5335_v41 = vadd.f32 %v5334_v44, %v5304_v52 }
 0x56b   :  { %v5249_v46 = vadd.f32 %v5248_v54, %v5247_v40  ;;  %v5336_v50 = vrot.slane %v5335_v41, 4  ;;  %v4915_v54 = vadd.f32 %v4914_v17, %v9027_v39  ;;  %v4921_v39 = vpop.f32.mrf.mxu2 }
 0x56d   :  { %v5250_v25 = vrot.slane %v5249_v46, 2  ;;  %v5337_v7 = vadd.f32 %v5336_v50, %v5335_v41  ;;  %v5008_v50 = vpop.f32.mrf.mxu3 }
 0x56e   :  { %5220 = vmatmul.bf16.gmra.mxu1 %v10147_v60  ;;  %v5097_v60 = vpop.f32.mrf.mxu0 }
 0x56f   :  { %v5251_v63 = vadd.f32 %v5250_v25, %v5249_v46  ;;  %v5338_v47 = vrot.slane %v5337_v7, 2  ;;  %v5004_v25 = vadd.f32 %v5003_v62, %v4915_v54 }
 0x571   :  { %v5252_v42 = vrot.slane %v5251_v63, 1  ;;  %v5339_v26 = vadd.f32 %v5338_v47, %v5337_v7  ;;  %v5093_v17 = vadd.f32 %v5092_v48, %v5004_v25 }
 0x573   :  { %v5253_v12 = vadd.f32 %v5252_v42, %v5251_v63  ;;  %v5340_v10 = vrot.slane %v5339_v26, 1  ;;  %v4920_v63 = vadd.f32 %v4919_v37, %v9051_v9  ;;  %v4922_v37 = vadd.f32 %v4921_v39, %v9058_v61 }
 0x575   :  { %v9235_v24 = vmul.f32 0.015625, %v5253_v12  ;;  %v5341_v33 = vadd.f32 %v5340_v10, %v5339_v26  ;;  %v5009_v62 = vadd.f32 %v5008_v50, %v4920_v63 }
 0x576   :  { %v5099_v10 = vpop.f32.mrf.mxu0 }
 0x577   :  { %v5381_v15 = vmul.f32 0.015625, %v5341_v33  ;;  %v5385_v58 = vmul.f32 %v9235_v24, %v9235_v24  ;;  %v5397_v49 = vsub.f32 %v9176_v20, %v9235_v24  ;;  %v5398_v44 = vsub.f32 %v9180_v16, %v9235_v24 }
 0x578   :  { %v5399_v21 = vsub.f32 %v9190_v38, %v9235_v24  ;;  %v5400_v1 = vsub.f32 %v9198_v57, %v9235_v24  ;;  %v5401_v40 = vsub.f32 %v9205_v27, %v9235_v24  ;;  %v5402_v52 = vsub.f32 %v9213_v43, %v9235_v24  ;;  %v5181_v57 = vpop.f32.mrf.mxu1  ;;  %v10148_v27 = vld [vmem:[#allocation89_spill] sm:$0xff] }
 0x579   :  { %v5389_v41 = vsub.f32 %v5381_v15, %v5385_v58  ;;  %v5403_v20 = vsub.f32 %v9222_v13, %v9235_v24  ;;  %v5404_v16 = vsub.f32 %v9229_v14, %v9235_v24  ;;  %v4917_v38 = vadd.f32 %v4916_v22, %v9036_v0  ;;  %v5010_v22 = vpop.f32.mrf.mxu3 }
 0x57a   :  { %v9259_v13 = vadd.f32 %v5181_v57, %v5093_v17  ;;  %v5098_v15 = vadd.f32 %v5097_v60, %v5009_v62  ;;  %v5011_v50 = vadd.f32 %v5010_v22, %v4922_v37  ;;  %v6349_v22 = vld [vmem:[#allocation2] sm:$0xff] }
 0x57b   :  { %v5393_v46 = vmax.f32 %v5389_v41, 0.0  ;;  %v5006_v43 = vadd.f32 %v5005_v36, %v4917_v38  ;;  %v10149_v38 = vld [vmem:[#allocation93_spill] sm:$0xff] }
 0x57c   :  { %v5305_v12 = vmul.f32 %v9259_v13, %v9259_v13 }
 0x57d   :  { %v5429_v7 = vadd.f32 1e-05, %v5393_v46  ;;  %v5095_v47 = vadd.f32 %v5094_v6, %v5006_v43  ;;  %v4924_v6 = vpop.f32.mrf.mxu2 }
 0x57e   :  { %5225 = vmatmul.bf16.gmra.mxu1 %v10148_v27  ;;  %v4925_v27 = vadd.f32 %v4924_v6, %v9067_v30  ;;  %v5100_v30 = vadd.f32 %v5099_v10, %v5011_v50  ;;  %v6352_v6 = vld [vmem:[#allocation2 + $0x18] sm:$0xff] }
 0x57f   :  { %6341 = vrsqrt.f32 %v5429_v7  ;;  %vm5439_vm14 = vweird.f32 %v5429_v7 }
 0x580   :  { %v5183_v14 = vpop.f32.mrf.mxu1 }
 0x581   :  { %v9261_v0 = vadd.f32 %v5183_v14, %v5095_v47  ;;  %v5013_v25 = vpop.f32.mrf.mxu3 }
 0x583   :  { %v5254_v36 = vadd.f32 %v9261_v0, %v9259_v13  ;;  %v5306_v48 = vmul.f32 %v9261_v0, %v9261_v0 }
 0x585   :  { %v6342_v42 = vpop.eup %6341  ;;  %v5342_v24 = vadd.f32 %v5306_v48, %v5305_v12  ;;  %v6350_v48 = vld [vmem:[#allocation2 + $0x8] sm:$0xff] }
 0x586   :  { %v5434_v26 = vmul.f32 %v6342_v42, %v5429_v7  ;;  %vm5440_vm13 = vweird.f32 %v6342_v42  ;;  %v5102_v7 = vpop.f32.mrf.mxu0 }
 0x587   :  { %vm5441_vm15 = vmor %vm5439_vm14, %vm5440_vm13 }
 0x588   :  { %v5435_v9 = vmul.f32 %v6342_v42, %v5434_v26  ;;  %v5186_v54 = vpop.f32.mrf.mxu1 }
 0x589   :  { %v9270_v41 = vadd.f32 %v5186_v54, %v5098_v15 }
 0x58a   :  { %v5436_v33 = vmul.f32 0.5, %v5435_v9  ;;  %v6351_v9 = vld [vmem:[#allocation2 + $0x10] sm:$0xff] }
 0x58b   :  { %v5255_v57 = vadd.f32 %v5254_v36, %v9270_v41  ;;  %v5307_v61 = vmul.f32 %v9270_v41, %v9270_v41 }
 0x58c   :  { %v5437_v58 = vsub.f32 1.5, %v5436_v33 }
 0x58e   :  { %5230 = vmatmul.bf16.gmra.mxu1 %v10149_v38  ;;  %v5438_v46 = vmul.f32 %v6342_v42, %v5437_v58  ;;  %v6356_v38 = vld [vmem:[#allocation2 + $0x38] sm:$0xff] }
 0x590   :  { %v5442_v43 = vsel %vm5441_vm15, %v6342_v42, %v5438_v46  ;;  %v4926_v42 = vpop.f32.mrf.mxu2  ;;  %v5188_v15 = vpop.f32.mrf.mxu1 }
 0x591   :  { %v5473_v60 = vmul.f32 %v5442_v43, %v5397_v49  ;;  %v5474_v39 = vmul.f32 %v5442_v43, %v5398_v44  ;;  %v5475_v17 = vmul.f32 %v5442_v43, %v5399_v21  ;;  %v5476_v63 = vmul.f32 %v5442_v43, %v5400_v1  ;;  %v6353_v49 = vld [vmem:[#allocation2 + $0x20] sm:$0xff] }
 0x592   :  { %v5477_v47 = vmul.f32 %v5442_v43, %v5401_v40  ;;  %v5478_v14 = vmul.f32 %v5442_v43, %v5402_v52  ;;  %v5479_v26 = vmul.f32 %v5442_v43, %v5403_v20  ;;  %v5480_v62 = vmul.f32 %v5442_v43, %v5404_v16  ;;  %v6354_v40 = vld [vmem:[#allocation2 + $0x28] sm:$0xff]  ;;  %v6355_v16 = vld [vmem:[#allocation2 + $0x30] sm:$0xff] }
 0x593   :  { %v5505_v12 = vadd.f32 %v6349_v22, %v5473_v60  ;;  %v5506_v36 = vadd.f32 %v6350_v48, %v5474_v39  ;;  %v5507_v33 = vadd.f32 %v6351_v9, %v5475_v17  ;;  %v5508_v37 = vadd.f32 %v6352_v6, %v5476_v63 }
 0x594   :  { %v5509_v44 = vadd.f32 %v6353_v49, %v5477_v47  ;;  %v5343_v21 = vadd.f32 %v5342_v24, %v5307_v61  ;;  %v9277_v1 = vadd.f32 %v5188_v15, %v5100_v30  ;;  %v5510_v52 = vadd.f32 %v6354_v40, %v5478_v14  ;;  %v5015_v24 = vpop.f32.mrf.mxu3 }
 0x595   :  { %5537 = vst [vmem:[#allocation8] sm:$0xff] %v5505_v12  ;;  %v5014_v20 = vadd.f32 %v5013_v25, %v4925_v27  ;;  %v5511_v58 = vadd.f32 %v6355_v16, %v5479_v26  ;;  %v5512_v46 = vadd.f32 %v6356_v38, %v5480_v62  ;;  %v4927_v43 = vadd.f32 %v4926_v42, %v9073_v8  ;;  %v5104_v27 = vpop.f32.mrf.mxu0 }
 0x596   :  { %5538 = vst [vmem:[#allocation8 + $0x8] sm:$0xff] %v5506_v36  ;;  %v5256_v54 = vadd.f32 %v5255_v57, %v9277_v1  ;;  %v5308_v10 = vmul.f32 %v9277_v1, %v9277_v1  ;;  %v10150_v57 = vpack.c.b16 %v8748_v32, %v8821_v19 }
 0x597   :  { %5539 = vst [vmem:[#allocation8 + $0x10] sm:$0xff] %v5507_v33  ;;  %v5103_v61 = vadd.f32 %v5102_v7, %v5014_v20  ;;  %v5016_v17 = vadd.f32 %v5015_v24, %v4927_v43 }
 0x598   :  { %5540 = vst [vmem:[#allocation8 + $0x18] sm:$0xff] %v5508_v37  ;;  %v5344_v50 = vadd.f32 %v5343_v21, %v5308_v10  ;;  %v5191_v25 = vpop.f32.mrf.mxu1  ;;  %v4929_v39 = vpop.f32.mrf.mxu2 }
 0x599   :  { %5541 = vst [vmem:[#allocation8 + $0x20] sm:$0xff] %v5509_v44  ;;  %v9283_v60 = vadd.f32 %v5191_v25, %v5103_v61  ;;  %v4930_v8 = vadd.f32 %v4929_v39, %v9083_v35  ;;  %v5105_v26 = vadd.f32 %v5104_v27, %v5016_v17 }
 0x59a   :  { %5542 = vst [vmem:[#allocation8 + $0x28] sm:$0xff] %v5510_v52 }
 0x59b   :  { %5543 = vst [vmem:[#allocation8 + $0x30] sm:$0xff] %v5511_v58  ;;  %v5257_v63 = vadd.f32 %v5256_v54, %v9283_v60  ;;  %v5309_v47 = vmul.f32 %v9283_v60, %v9283_v60 }
 0x59c   :  { %5544 = vst [vmem:[#allocation8 + $0x38] sm:$0xff] %v5512_v46  ;;  %v5018_v62 = vpop.f32.mrf.mxu3 }
 0x59d   :  { %v5345_v14 = vadd.f32 %v5344_v50, %v5309_v47  ;;  %v5107_v12 = vpop.f32.mrf.mxu0  ;;  %v5019_v48 = vadd.f32 %v5018_v62, %v4930_v8 }
 0x59e   :  { %5235 = vmatmul.bf16.gmra.mxu1 %v10150_v57 }
 0x59f   :  { %v5108_v30 = vadd.f32 %v5107_v12, %v5019_v48 }
 0x5a0   :  { %v5193_v7 = vpop.f32.mrf.mxu1  ;;  %v4931_v36 = vpop.f32.mrf.mxu2 }
 0x5a1   :  { %v9292_v22 = vadd.f32 %v5193_v7, %v5105_v26  ;;  %v4932_v33 = vadd.f32 %v4931_v36, %v9091_v18 }
 0x5a3   :  { %v5258_v32 = vadd.f32 %v5257_v63, %v9292_v22  ;;  %v5310_v19 = vmul.f32 %v9292_v22, %v9292_v22 }
 0x5a4   :  { %v5020_v35 = vpop.f32.mrf.mxu3 }
 0x5a5   :  { %v5346_v9 = vadd.f32 %v5345_v14, %v5310_v19  ;;  %v5021_v37 = vadd.f32 %v5020_v35, %v4932_v33  ;;  %v5109_v44 = vpop.f32.mrf.mxu0 }
 0x5a7   :  { %v5110_v52 = vadd.f32 %v5109_v44, %v5021_v37 }
 0x5a8   :  { %v5196_v42 = vpop.f32.mrf.mxu1  ;;  %v4934_v40 = vpop.f32.mrf.mxu2 }
 0x5a9   :  { %v9298_v6 = vadd.f32 %v5196_v42, %v5108_v30  ;;  %v4935_v42 = vadd.f32 %v4934_v40, %v9101_v59 }
 0x5ab   :  { %v5259_v15 = vadd.f32 %v5258_v32, %v9298_v6  ;;  %v5311_v49 = vmul.f32 %v9298_v6, %v9298_v6 }
 0x5ac   :  { %v5023_v54 = vpop.f32.mrf.mxu3 }
 0x5ad   :  { %v5347_v21 = vadd.f32 %v5346_v9, %v5311_v49  ;;  %v5112_v46 = vpop.f32.mrf.mxu0  ;;  %v5024_v49 = vadd.f32 %v5023_v54, %v4935_v42 }
 0x5b0   :  { %v5198_v20 = vpop.f32.mrf.mxu1  ;;  %v4936_v43 = vpop.f32.mrf.mxu2 }
 0x5b1   :  { %v9303_v16 = vadd.f32 %v5198_v20, %v5110_v52  ;;  %v5113_v52 = vadd.f32 %v5112_v46, %v5024_v49  ;;  %v6357_v49 = vld [vmem:[#allocation2 + $0x40] sm:$0xff] }
 0x5b3   :  { %v5260_v18 = vadd.f32 %v5259_v15, %v9303_v16  ;;  %v5312_v58 = vmul.f32 %v9303_v16, %v9303_v16 }
 0x5b4   :  { %v5025_v63 = vpop.f32.mrf.mxu3 }
 0x5b5   :  { %v5261_v10 = vrot.slane %v5260_v18, 4  ;;  %v5348_v38 = vadd.f32 %v5347_v21, %v5312_v58  ;;  %v5114_v8 = vpop.f32.mrf.mxu0 }
 0x5b7   :  { %v5262_v50 = vadd.f32 %v5261_v10, %v5260_v18  ;;  %v5349_v24 = vrot.slane %v5348_v38, 4 }
 0x5b8   :  { %v4939_v7 = vpop.f32.mrf.mxu2 }
 0x5b9   :  { %v5263_v61 = vrot.slane %v5262_v50, 2  ;;  %v5350_v25 = vadd.f32 %v5349_v24, %v5348_v38  ;;  %v4940_v59 = vadd.f32 %v4939_v7, %v9110_v31 }
 0x5bb   :  { %v5264_v27 = vadd.f32 %v5263_v61, %v5262_v50  ;;  %v5351_v57 = vrot.slane %v5350_v25, 2 }
 0x5bc   :  { %v5028_v15 = vpop.f32.mrf.mxu3 }
 0x5bd   :  { %v5265_v39 = vrot.slane %v5264_v27, 1  ;;  %v5352_v17 = vadd.f32 %v5351_v57, %v5350_v25  ;;  %v5029_v10 = vadd.f32 %v5028_v15, %v4940_v59 }
 0x5bf   :  { %v5266_v47 = vadd.f32 %v5265_v39, %v5264_v27  ;;  %v5353_v14 = vrot.slane %v5352_v17, 1 }
 0x5c1   :  { %v9308_v26 = vmul.f32 0.015625, %v5266_v47  ;;  %v5354_v62 = vadd.f32 %v5353_v14, %v5352_v17 }
 0x5c3   :  { %v5382_v12 = vmul.f32 0.015625, %v5354_v62  ;;  %v5386_v48 = vmul.f32 %v9308_v26, %v9308_v26  ;;  %v5405_v32 = vsub.f32 %v9259_v13, %v9308_v26  ;;  %v5406_v19 = vsub.f32 %v9261_v0, %v9308_v26 }
 0x5c4   :  { %v5407_v36 = vsub.f32 %v9270_v41, %v9308_v26  ;;  %v5408_v9 = vsub.f32 %v9277_v1, %v9308_v26  ;;  %v5409_v33 = vsub.f32 %v9283_v60, %v9308_v26  ;;  %v5410_v30 = vsub.f32 %v9292_v22, %v9308_v26  ;;  %v5201_v1 = vpop.f32.mrf.mxu1  ;;  %v5117_v60 = vpop.f32.mrf.mxu0 }
 0x5c5   :  { %v5390_v35 = vsub.f32 %v5382_v12, %v5386_v48  ;;  %v5411_v13 = vsub.f32 %v9298_v6, %v9308_v26  ;;  %v5412_v0 = vsub.f32 %v9303_v16, %v9308_v26  ;;  %v4937_v41 = vadd.f32 %v4936_v43, %v9106_v4  ;;  %v4941_v22 = vpop.f32.mrf.mxu2  ;;  %v5030_v4 = vpop.f32.mrf.mxu3 }
 0x5c6   :  { %v9331_v40 = vadd.f32 %v5201_v1, %v5113_v52  ;;  %v4942_v25 = vadd.f32 %v4941_v22, %v9115_v56  ;;  %v5118_v27 = vadd.f32 %v5117_v60, %v5029_v10  ;;  %v6358_v60 = vld [vmem:[#allocation2 + $0x48] sm:$0xff]  ;;  %v6359_v22 = vld [vmem:[#allocation2 + $0x50] sm:$0xff] }
 0x5c7   :  { %v5394_v37 = vmax.f32 %v5390_v35, 0.0  ;;  %v5026_v21 = vadd.f32 %v5025_v63, %v4937_v41 }
 0x5c8   :  { %v5313_v54 = vmul.f32 %v9331_v40, %v9331_v40  ;;  %v5031_v47 = vadd.f32 %v5030_v4, %v4942_v25 }
 0x5c9   :  { %v5430_v44 = vadd.f32 1e-05, %v5394_v37  ;;  %v5115_v6 = vadd.f32 %v5114_v8, %v5026_v21 }
 0x5cb   :  { %6343 = vrsqrt.f32 %v5430_v44  ;;  %vm5449_vm1 = vweird.f32 %v5430_v44 }
 0x5cc   :  { %v5203_v20 = vpop.f32.mrf.mxu1  ;;  %v5119_v50 = vpop.f32.mrf.mxu0 }
 0x5cd   :  { %v9333_v16 = vadd.f32 %v5203_v20, %v5115_v6  ;;  %v4944_v43 = vpop.f32.mrf.mxu2  ;;  %v5033_v8 = vpop.f32.mrf.mxu3  ;;  %v6360_v6 = vld [vmem:[#allocation2 + $0x58] sm:$0xff] }
 0x5ce   :  { %v4945_v26 = vadd.f32 %v4944_v43, %v9119_v2  ;;  %v5120_v2 = vadd.f32 %v5119_v50, %v5031_v47 }
 0x5cf   :  { %v5267_v38 = vadd.f32 %v9333_v16, %v9331_v40  ;;  %v5314_v46 = vmul.f32 %v9333_v16, %v9333_v16 }
 0x5d1   :  { %v6344_v18 = vpop.eup %6343  ;;  %v5355_v24 = vadd.f32 %v5314_v46, %v5313_v54  ;;  %v6364_v54 = vld [vmem:[#allocation2 + $0x78] sm:$0xff] }
 0x5d2   :  { %v5444_v58 = vmul.f32 %v6344_v18, %v5430_v44  ;;  %vm5450_vm0 = vweird.f32 %v6344_v18 }
 0x5d3   :  { %vm5451_vm2 = vmor %vm5449_vm1, %vm5450_vm0 }
 0x5d4   :  { %v5445_v31 = vmul.f32 %v6344_v18, %v5444_v58  ;;  %v5206_v39 = vpop.f32.mrf.mxu1  ;;  %v5122_v1 = vpop.f32.mrf.mxu0 }
 0x5d5   :  { %v9342_v17 = vadd.f32 %v5206_v39, %v5118_v27  ;;  %v4946_v59 = vpop.f32.mrf.mxu2 }
 0x5d6   :  { %v5446_v61 = vmul.f32 0.5, %v5445_v31  ;;  %v5035_v31 = vpop.f32.mrf.mxu3  ;;  %v4947_v50 = vadd.f32 %v4946_v59, %v9124_v51 }
 0x5d7   :  { %v5268_v14 = vadd.f32 %v5267_v38, %v9342_v17  ;;  %v5315_v7 = vmul.f32 %v9342_v17, %v9342_v17 }
 0x5d8   :  { %v5447_v57 = vsub.f32 1.5, %v5446_v61 }
 0x5da   :  { %v5448_v63 = vmul.f32 %v6344_v18, %v5447_v57  ;;  %v5036_v57 = vadd.f32 %v5035_v31, %v4947_v50 }
 0x5dc   :  { %v5452_v62 = vsel %vm5451_vm2, %v6344_v18, %v5448_v63  ;;  %v5208_v18 = vpop.f32.mrf.mxu1  ;;  %v5124_v61 = vpop.f32.mrf.mxu0 }
 0x5dd   :  { %v5481_v56 = vmul.f32 %v5452_v62, %v5405_v32  ;;  %v5482_v12 = vmul.f32 %v5452_v62, %v5406_v19  ;;  %v5483_v48 = vmul.f32 %v5452_v62, %v5407_v36  ;;  %v5484_v42 = vmul.f32 %v5452_v62, %v5408_v9  ;;  %v6361_v32 = vld [vmem:[#allocation2 + $0x60] sm:$0xff]  ;;  %v4949_v27 = vpop.f32.mrf.mxu2 }
 0x5de   :  { %v5485_v35 = vmul.f32 %v5452_v62, %v5409_v33  ;;  %v5486_v41 = vmul.f32 %v5452_v62, %v5410_v30  ;;  %v5487_v37 = vmul.f32 %v5452_v62, %v5411_v13  ;;  %v5488_v15 = vmul.f32 %v5452_v62, %v5412_v0  ;;  %v6362_v33 = vld [vmem:[#allocation2 + $0x68] sm:$0xff]  ;;  %v6363_v0 = vld [vmem:[#allocation2 + $0x70] sm:$0xff] }
 0x5df   :  { %v5513_v44 = vadd.f32 %v6357_v49, %v5481_v56  ;;  %v5514_v21 = vadd.f32 %v6358_v60, %v5482_v12  ;;  %v5515_v52 = vadd.f32 %v6359_v22, %v5483_v48  ;;  %v5516_v20 = vadd.f32 %v6360_v6, %v5484_v42 }
 0x5e0   :  { %v5517_v19 = vadd.f32 %v6361_v32, %v5485_v35  ;;  %v5356_v36 = vadd.f32 %v5355_v24, %v5315_v7  ;;  %v9348_v9 = vadd.f32 %v5208_v18, %v5120_v2  ;;  %v5518_v30 = vadd.f32 %v6362_v33, %v5486_v41 }
 0x5e1   :  { %5545 = vst [vmem:[#allocation8 + $0x40] sm:$0xff] %v5513_v44  ;;  %v5034_v13 = vadd.f32 %v5033_v8, %v4945_v26  ;;  %v5519_v4 = vadd.f32 %v6363_v0, %v5487_v37  ;;  %v5520_v38 = vadd.f32 %v6364_v54, %v5488_v15  ;;  %v5125_v8 = vadd.f32 %v5124_v61, %v5036_v57  ;;  %v5038_v26 = vpop.f32.mrf.mxu3 }
 0x5e2   :  { %5546 = vst [vmem:[#allocation8 + $0x48] sm:$0xff] %v5514_v21  ;;  %v5269_v58 = vadd.f32 %v5268_v14, %v9348_v9  ;;  %v5316_v10 = vmul.f32 %v9348_v9, %v9348_v9  ;;  %v4950_v14 = vadd.f32 %v4949_v27, %v9130_v5 }
 0x5e3   :  { %5547 = vst [vmem:[#allocation8 + $0x50] sm:$0xff] %v5515_v52  ;;  %v5123_v24 = vadd.f32 %v5122_v1, %v5034_v13 }
 0x5e4   :  { %5548 = vst [vmem:[#allocation8 + $0x58] sm:$0xff] %v5516_v20  ;;  %v5357_v46 = vadd.f32 %v5356_v36, %v5316_v10  ;;  %v5211_v43 = vpop.f32.mrf.mxu1  ;;  %v5127_v7 = vpop.f32.mrf.mxu0  ;;  %v5039_v56 = vadd.f32 %v5038_v26, %v4950_v14 }
 0x5e5   :  { %5549 = vst [vmem:[#allocation8 + $0x60] sm:$0xff] %v5517_v19  ;;  %v9354_v25 = vadd.f32 %v5211_v43, %v5123_v24  ;;  %v4951_v42 = vpop.f32.mrf.mxu2 }
 0x5e6   :  { %5550 = vst [vmem:[#allocation8 + $0x68] sm:$0xff] %v5518_v30  ;;  %v4952_v41 = vadd.f32 %v4951_v42, %v9134_v23  ;;  %v5128_v37 = vadd.f32 %v5127_v7, %v5039_v56 }
 0x5e7   :  { %5551 = vst [vmem:[#allocation8 + $0x70] sm:$0xff] %v5519_v4  ;;  %v5270_v39 = vadd.f32 %v5269_v58, %v9354_v25  ;;  %v5317_v63 = vmul.f32 %v9354_v25, %v9354_v25 }
 0x5e8   :  { %5552 = vst [vmem:[#allocation8 + $0x78] sm:$0xff] %v5520_v38 }
 0x5e9   :  { %v5358_v47 = vadd.f32 %v5357_v46, %v5317_v63  ;;  %v5040_v5 = vpop.f32.mrf.mxu3 }
 0x5ea   :  { %v5041_v49 = vadd.f32 %v5040_v5, %v4952_v41 }
 0x5ec   :  { %v5213_v51 = vpop.f32.mrf.mxu1  ;;  %v5129_v21 = vpop.f32.mrf.mxu0 }
 0x5ed   :  { %v9360_v62 = vadd.f32 %v5213_v51, %v5125_v8  ;;  %v4954_v52 = vpop.f32.mrf.mxu2  ;;  %v5130_v2 = vadd.f32 %v5129_v21, %v5041_v49 }
 0x5ee   :  { %v4955_v7 = vadd.f32 %v4954_v52, %v9138_v29 }
 0x5ef   :  { %v5271_v12 = vadd.f32 %v5270_v39, %v9360_v62  ;;  %v5318_v48 = vmul.f32 %v9360_v62, %v9360_v62 }
 0x5f1   :  { %v5359_v35 = vadd.f32 %v5358_v47, %v5318_v48  ;;  %v5043_v18 = vpop.f32.mrf.mxu3 }
 0x5f2   :  { %v5044_v42 = vadd.f32 %v5043_v18, %v4955_v7  ;;  %v6366_v7 = vld [vmem:[#allocation2 + $0x88] sm:$0xff] }
 0x5f4   :  { %v5216_v15 = vpop.f32.mrf.mxu1  ;;  %v5132_v36 = vpop.f32.mrf.mxu0 }
 0x5f5   :  { %v9366_v1 = vadd.f32 %v5216_v15, %v5128_v37  ;;  %v4956_v13 = vpop.f32.mrf.mxu2  ;;  %v5133_v37 = vadd.f32 %v5132_v36, %v5044_v42 }
 0x5f7   :  { %v5272_v44 = vadd.f32 %v5271_v12, %v9366_v1  ;;  %v5319_v60 = vmul.f32 %v9366_v1, %v9366_v1 }
 0x5f9   :  { %v5360_v22 = vadd.f32 %v5359_v35, %v5319_v60  ;;  %v5045_v46 = vpop.f32.mrf.mxu3 }
 0x5fc   :  { %v5218_v59 = vpop.f32.mrf.mxu1  ;;  %v5134_v24 = vpop.f32.mrf.mxu0 }
 0x5fd   :  { %v9371_v6 = vadd.f32 %v5218_v59, %v5130_v2  ;;  %v4959_v27 = vpop.f32.mrf.mxu2 }
 0x5fe   :  { %v4960_v29 = vadd.f32 %v4959_v27, %v9147_v55 }
 0x5ff   :  { %v5273_v23 = vadd.f32 %v5272_v44, %v9371_v6  ;;  %v5320_v20 = vmul.f32 %v9371_v6, %v9371_v6 }
 0x601   :  { %v5274_v32 = vrot.slane %v5273_v23, 4  ;;  %v5361_v19 = vadd.f32 %v5360_v22, %v5320_v20  ;;  %v5048_v48 = vpop.f32.mrf.mxu3 }
 0x602   :  { %v5049_v21 = vadd.f32 %v5048_v48, %v4960_v29 }
 0x603   :  { %v5275_v33 = vadd.f32 %v5274_v32, %v5273_v23  ;;  %v5362_v30 = vrot.slane %v5361_v19, 4 }
 0x605   :  { %v5276_v0 = vrot.slane %v5275_v33, 2  ;;  %v5363_v4 = vadd.f32 %v5362_v30, %v5361_v19 }
 0x607   :  { %v5277_v58 = vadd.f32 %v5276_v0, %v5275_v33  ;;  %v5364_v10 = vrot.slane %v5363_v4, 2 }
 0x609   :  { %v5278_v54 = vrot.slane %v5277_v58, 1  ;;  %v5365_v38 = vadd.f32 %v5364_v10, %v5363_v4 }
 0x60b   :  { %v5279_v31 = vadd.f32 %v5278_v54, %v5277_v58  ;;  %v5366_v50 = vrot.slane %v5365_v38, 1 }
 0x60d   :  { %v9376_v43 = vmul.f32 0.015625, %v5279_v31  ;;  %v5367_v61 = vadd.f32 %v5366_v50, %v5365_v38 }
 0x60f   :  { %v5383_v57 = vmul.f32 0.015625, %v5367_v61  ;;  %v5387_v39 = vmul.f32 %v9376_v43, %v9376_v43  ;;  %v5413_v63 = vsub.f32 %v9331_v40, %v9376_v43  ;;  %v5414_v47 = vsub.f32 %v9333_v16, %v9376_v43 }
 0x610   :  { %v5415_v14 = vsub.f32 %v9342_v17, %v9376_v43  ;;  %v5416_v8 = vsub.f32 %v9348_v9, %v9376_v43  ;;  %v5417_v26 = vsub.f32 %v9354_v25, %v9376_v43  ;;  %v5418_v51 = vsub.f32 %v9360_v62, %v9376_v43  ;;  %v5221_v9 = vpop.f32.mrf.mxu1  ;;  %v5137_v25 = vpop.f32.mrf.mxu0 }
 0x611   :  { %v5391_v56 = vsub.f32 %v5383_v57, %v5387_v39  ;;  %v5419_v40 = vsub.f32 %v9366_v1, %v9376_v43  ;;  %v5420_v16 = vsub.f32 %v9371_v6, %v9376_v43  ;;  %v4957_v17 = vadd.f32 %v4956_v13, %v9143_v45  ;;  %v4961_v62 = vpop.f32.mrf.mxu2  ;;  %v5050_v45 = vpop.f32.mrf.mxu3  ;;  %v6365_v57 = vld [vmem:[#allocation2 + $0x80] sm:$0xff] }
 0x612   :  { %v9399_v15 = vadd.f32 %v5221_v9, %v5133_v37  ;;  %v4962_v18 = vadd.f32 %v4961_v62, %v9152_v11  ;;  %v5138_v32 = vadd.f32 %v5137_v25, %v5049_v21  ;;  %v6368_v9 = vld [vmem:[#allocation2 + $0x98] sm:$0xff] }
 0x613   :  { %v5395_v12 = vmax.f32 %v5391_v56, 0.0  ;;  %v5046_v41 = vadd.f32 %v5045_v46, %v4957_v17  ;;  %v6367_v17 = vld [vmem:[#allocation2 + $0x90] sm:$0xff]  ;;  %v6372_v37 = vld [vmem:[#allocation2 + $0xb8] sm:$0xff] }
 0x614   :  { %v5321_v22 = vmul.f32 %v9399_v15, %v9399_v15  ;;  %v5051_v13 = vadd.f32 %v5050_v45, %v4962_v18 }
 0x615   :  { %v5431_v35 = vadd.f32 1e-05, %v5395_v12  ;;  %v5135_v1 = vadd.f32 %v5134_v24, %v5046_v41 }
 0x617   :  { %6345 = vrsqrt.f32 %v5431_v35  ;;  %vm5459_vm4 = vweird.f32 %v5431_v35 }
 0x618   :  { %v5223_v5 = vpop.f32.mrf.mxu1  ;;  %v5139_v59 = vpop.f32.mrf.mxu0 }
 0x619   :  { %v9401_v44 = vadd.f32 %v5223_v5, %v5135_v1  ;;  %v4964_v23 = vpop.f32.mrf.mxu2  ;;  %v5053_v4 = vpop.f32.mrf.mxu3 }
 0x61a   :  { %v4965_v58 = vadd.f32 %v4964_v23, %v9156_v34  ;;  %v5140_v34 = vadd.f32 %v5139_v59, %v5051_v13 }
 0x61b   :  { %v5280_v52 = vadd.f32 %v9401_v44, %v9399_v15  ;;  %v5322_v2 = vmul.f32 %v9401_v44, %v9401_v44 }
 0x61d   :  { %v6346_v49 = vpop.eup %6345  ;;  %v5368_v6 = vadd.f32 %v5322_v2, %v5321_v22 }
 0x61e   :  { %v5454_v60 = vmul.f32 %v6346_v49, %v5431_v35  ;;  %vm5460_vm3 = vweird.f32 %v6346_v49 }
 0x61f   :  { %vm5461_vm5 = vmor %vm5459_vm4, %vm5460_vm3 }
 0x620   :  { %v5455_v55 = vmul.f32 %v6346_v49, %v5454_v60  ;;  %v5226_v36 = vpop.f32.mrf.mxu1  ;;  %v5142_v27 = vpop.f32.mrf.mxu0 }
 0x621   :  { %v9410_v33 = vadd.f32 %v5226_v36, %v5138_v32  ;;  %v4966_v48 = vpop.f32.mrf.mxu2  ;;  %v5055_v5 = vpop.f32.mrf.mxu3 }
 0x622   :  { %v5456_v20 = vmul.f32 0.5, %v5455_v55 }
 0x623   :  { %v5281_v0 = vadd.f32 %v5280_v52, %v9410_v33  ;;  %v5323_v54 = vmul.f32 %v9410_v33, %v9410_v33 }
 0x624   :  { %v5457_v19 = vsub.f32 1.5, %v5456_v20 }
 0x626   :  { %v5458_v30 = vmul.f32 %v6346_v49, %v5457_v19 }
 0x628   :  { %v5462_v10 = vsel %vm5461_vm5, %v6346_v49, %v5458_v30  ;;  %v5228_v35 = vpop.f32.mrf.mxu1  ;;  %v4967_v49 = vadd.f32 %v4966_v48, %v9161_v53  ;;  %v5144_v22 = vpop.f32.mrf.mxu0 }
 0x629   :  { %v5489_v11 = vmul.f32 %v5462_v10, %v5413_v63  ;;  %v5490_v38 = vmul.f32 %v5462_v10, %v5414_v47  ;;  %v5491_v46 = vmul.f32 %v5462_v10, %v5415_v14  ;;  %v5492_v31 = vmul.f32 %v5462_v10, %v5416_v8  ;;  %v6369_v63 = vld [vmem:[#allocation2 + $0xa0] sm:$0xff]  ;;  %v4969_v52 = vpop.f32.mrf.mxu2  ;;  %v5058_v18 = vpop.f32.mrf.mxu3 }
 0x62a   :  { %v5493_v50 = vmul.f32 %v5462_v10, %v5417_v26  ;;  %v5494_v24 = vmul.f32 %v5462_v10, %v5418_v51  ;;  %v5495_v43 = vmul.f32 %v5462_v10, %v5419_v40  ;;  %v5496_v61 = vmul.f32 %v5462_v10, %v5420_v16  ;;  %v6370_v26 = vld [vmem:[#allocation2 + $0xa8] sm:$0xff]  ;;  %v6371_v16 = vld [vmem:[#allocation2 + $0xb0] sm:$0xff] }
 0x62b   :  { %v5521_v39 = vadd.f32 %v6365_v57, %v5489_v11  ;;  %v5522_v56 = vadd.f32 %v6366_v7, %v5490_v38  ;;  %v5523_v12 = vadd.f32 %v6367_v17, %v5491_v46  ;;  %v5524_v42 = vadd.f32 %v6368_v9, %v5492_v31 }
 0x62c   :  { %v5525_v47 = vadd.f32 %v6369_v63, %v5493_v50  ;;  %v5369_v14 = vadd.f32 %v5368_v6, %v5323_v54  ;;  %v9416_v8 = vadd.f32 %v5228_v35, %v5140_v34  ;;  %v5526_v51 = vadd.f32 %v6370_v26, %v5494_v24 }
 0x62d   :  { %5553 = vst [vmem:[#allocation8 + $0x80] sm:$0xff] %v5521_v39  ;;  %v5054_v40 = vadd.f32 %v5053_v4, %v4965_v58  ;;  %v5527_v25 = vadd.f32 %v6371_v16, %v5495_v43  ;;  %v5528_v29 = vadd.f32 %v6372_v37, %v5496_v61  ;;  %v5056_v2 = vadd.f32 %v5055_v5, %v4967_v49 }
 0x62e   :  { %5554 = vst [vmem:[#allocation8 + $0x88] sm:$0xff] %v5522_v56  ;;  %v5282_v41 = vadd.f32 %v5281_v0, %v9416_v8  ;;  %v5324_v62 = vmul.f32 %v9416_v8, %v9416_v8  ;;  %v4970_v23 = vadd.f32 %v4969_v52, %v9167_v28 }
 0x62f   :  { %5555 = vst [vmem:[#allocation8 + $0x90] sm:$0xff] %v5523_v12  ;;  %v5143_v45 = vadd.f32 %v5142_v27, %v5054_v40  ;;  %v5145_v20 = vadd.f32 %v5144_v22, %v5056_v2 }
 0x630   :  { %5556 = vst [vmem:[#allocation8 + $0x98] sm:$0xff] %v5524_v42  ;;  %v5370_v1 = vadd.f32 %v5369_v14, %v5324_v62  ;;  %v5231_v60 = vpop.f32.mrf.mxu1  ;;  %v5059_v19 = vadd.f32 %v5058_v18, %v4970_v23  ;;  %v5147_v13 = vpop.f32.mrf.mxu0 }
 0x631   :  { %5557 = vst [vmem:[#allocation8 + $0xa0] sm:$0xff] %v5525_v47  ;;  %v9422_v21 = vadd.f32 %v5231_v60, %v5143_v45  ;;  %v4971_v0 = vpop.f32.mrf.mxu2  ;;  %v5060_v28 = vpop.f32.mrf.mxu3 }
 0x632   :  { %5558 = vst [vmem:[#allocation8 + $0xa8] sm:$0xff] %v5526_v51  ;;  %v4972_v58 = vadd.f32 %v4971_v0, %v9171_v3  ;;  %v5148_v10 = vadd.f32 %v5147_v13, %v5059_v19  ;;  %v6375_v13 = vld [vmem:[#allocation2 + $0xd0] sm:$0xff] }
 0x633   :  { %5559 = vst [vmem:[#allocation8 + $0xb0] sm:$0xff] %v5527_v25  ;;  %v5283_v55 = vadd.f32 %v5282_v41, %v9422_v21  ;;  %v5325_v59 = vmul.f32 %v9422_v21, %v9422_v21 }
 0x634   :  { %5560 = vst [vmem:[#allocation8 + $0xb8] sm:$0xff] %v5528_v29  ;;  %v5061_v38 = vadd.f32 %v5060_v28, %v4972_v58 }
 0x635   :  { %v5371_v6 = vadd.f32 %v5370_v1, %v5325_v59 }
 0x638   :  { %v5233_v53 = vpop.f32.mrf.mxu1  ;;  %v5149_v24 = vpop.f32.mrf.mxu0 }
 0x639   :  { %v9428_v32 = vadd.f32 %v5233_v53, %v5145_v20  ;;  %v5150_v43 = vadd.f32 %v5149_v24, %v5061_v38  ;;  %v6379_v38 = vld [vmem:[#allocation2 + $0xf0] sm:$0xff] }
 0x63b   :  { %v5284_v36 = vadd.f32 %v5283_v55, %v9428_v32  ;;  %v5326_v30 = vmul.f32 %v9428_v32, %v9428_v32 }
 0x63d   :  { %v5372_v4 = vadd.f32 %v5371_v6, %v5326_v30 }
 0x640   :  { %v5236_v54 = vpop.f32.mrf.mxu1 }
 0x641   :  { %v5237_v11 = vadd.f32 %v5236_v54, %v5148_v10  ;;  %v6377_v10 = vld [vmem:[#allocation2 + $0xe0] sm:$0xff] }
 0x643   :  { %v5285_v46 = vadd.f32 %v5284_v36, %v5237_v11  ;;  %v5327_v31 = vmul.f32 %v5237_v11, %v5237_v11  ;;  %v6374_v36 = vld [vmem:[#allocation2 + $0xc8] sm:$0xff] }
 0x645   :  { %v5373_v50 = vadd.f32 %v5372_v4, %v5327_v31  ;;  %v6376_v4 = vld [vmem:[#allocation2 + $0xd8] sm:$0xff] }
 0x646   :  { %v6380_v31 = vld [vmem:[#allocation2 + $0xf8] sm:$0xff] }
 0x648   :  { %v5238_v61 = vpop.f32.mrf.mxu1 }
 0x649   :  { %v5239_v27 = vadd.f32 %v5238_v61, %v5150_v43 }
 0x64b   :  { %v5286_v57 = vadd.f32 %v5285_v46, %v5239_v27  ;;  %v5328_v39 = vmul.f32 %v5239_v27, %v5239_v27 }
 0x64d   :  { %v5287_v7 = vrot.slane %v5286_v57, 4  ;;  %v5374_v56 = vadd.f32 %v5373_v50, %v5328_v39 }
 0x64f   :  { %v5288_v17 = vadd.f32 %v5287_v7, %v5286_v57  ;;  %v5375_v12 = vrot.slane %v5374_v56, 4 }
 0x651   :  { %v5289_v34 = vrot.slane %v5288_v17, 2  ;;  %v5376_v3 = vadd.f32 %v5375_v12, %v5374_v56 }
 0x653   :  { %v5290_v48 = vadd.f32 %v5289_v34, %v5288_v17  ;;  %v5377_v9 = vrot.slane %v5376_v3, 2 }
 0x655   :  { %v5291_v42 = vrot.slane %v5290_v48, 1  ;;  %v5378_v35 = vadd.f32 %v5377_v9, %v5376_v3 }
 0x657   :  { %v5292_v63 = vadd.f32 %v5291_v42, %v5290_v48  ;;  %v5379_v47 = vrot.slane %v5378_v35, 1 }
 0x659   :  { %v5296_v14 = vmul.f32 0.015625, %v5292_v63  ;;  %v5380_v26 = vadd.f32 %v5379_v47, %v5378_v35 }
 0x65b   :  { %v5384_v51 = vmul.f32 0.015625, %v5380_v26  ;;  %v5388_v40 = vmul.f32 %v5296_v14, %v5296_v14  ;;  %v5421_v16 = vsub.f32 %v9399_v15, %v5296_v14  ;;  %v5422_v25 = vsub.f32 %v9401_v44, %v5296_v14 }
 0x65c   :  { %v5423_v41 = vsub.f32 %v9410_v33, %v5296_v14  ;;  %v5424_v62 = vsub.f32 %v9416_v8, %v5296_v14  ;;  %v5425_v37 = vsub.f32 %v9422_v21, %v5296_v14  ;;  %v5426_v29 = vsub.f32 %v9428_v32, %v5296_v14  ;;  %v6373_v32 = vld [vmem:[#allocation2 + $0xc0] sm:$0xff] }
 0x65d   :  { %v5392_v1 = vsub.f32 %v5384_v51, %v5388_v40  ;;  %v5427_v5 = vsub.f32 %v5237_v11, %v5296_v14  ;;  %v5428_v49 = vsub.f32 %v5239_v27, %v5296_v14  ;;  %v6378_v11 = vld [vmem:[#allocation2 + $0xe8] sm:$0xff] }
 0x65f   :  { %v5396_v45 = vmax.f32 %v5392_v1, 0.0 }
 0x661   :  { %v5432_v60 = vadd.f32 1e-05, %v5396_v45 }
 0x663   :  { %6347 = vrsqrt.f32 %v5432_v60  ;;  %vm5469_vm7 = vweird.f32 %v5432_v60 }
 0x669   :  { %v6348_v22 = vpop.eup %6347 }
 0x66a   :  { %v5464_v52 = vmul.f32 %v6348_v22, %v5432_v60  ;;  %vm5470_vm6 = vweird.f32 %v6348_v22 }
 0x66b   :  { %vm5471_vm8 = vmor %vm5469_vm7, %vm5470_vm6 }
 0x66c   :  { %v5465_v2 = vmul.f32 %v6348_v22, %v5464_v52 }
 0x66e   :  { %v5466_v15 = vmul.f32 0.5, %v5465_v2 }
 0x670   :  { %v5467_v55 = vsub.f32 1.5, %v5466_v15 }
 0x672   :  { %v5468_v44 = vmul.f32 %v6348_v22, %v5467_v55 }
 0x674   :  { %v5472_v33 = vsel %vm5471_vm8, %v6348_v22, %v5468_v44 }
 0x675   :  { %v5497_v8 = vmul.f32 %v5472_v33, %v5421_v16  ;;  %v5498_v21 = vmul.f32 %v5472_v33, %v5422_v25  ;;  %v5499_v59 = vmul.f32 %v5472_v33, %v5423_v41  ;;  %v5500_v6 = vmul.f32 %v5472_v33, %v5424_v62 }
 0x676   :  { %v5501_v23 = vmul.f32 %v5472_v33, %v5425_v37  ;;  %v5502_v20 = vmul.f32 %v5472_v33, %v5426_v29  ;;  %v5503_v18 = vmul.f32 %v5472_v33, %v5427_v5  ;;  %v5504_v53 = vmul.f32 %v5472_v33, %v5428_v49 }
 0x677   :  { %v5529_v19 = vadd.f32 %v6373_v32, %v5497_v8  ;;  %v5530_v30 = vadd.f32 %v6374_v36, %v5498_v21  ;;  %v5531_v0 = vadd.f32 %v6375_v13, %v5499_v59  ;;  %v5532_v58 = vadd.f32 %v6376_v4, %v5500_v6 }
 0x678   :  { %v5533_v54 = vadd.f32 %v6377_v10, %v5501_v23  ;;  %v5534_v28 = vadd.f32 %v6378_v11, %v5502_v20  ;;  %v5535_v46 = vadd.f32 %v6379_v38, %v5503_v18  ;;  %v5536_v50 = vadd.f32 %v6380_v31, %v5504_v53 }
 0x679   :  { %5561 = vst [vmem:[#allocation8 + $0xc0] sm:$0xff] %v5529_v19 }
 0x67a   :  { %5562 = vst [vmem:[#allocation8 + $0xc8] sm:$0xff] %v5530_v30 }
 0x67b   :  { %5563 = vst [vmem:[#allocation8 + $0xd0] sm:$0xff] %v5531_v0 }
 0x67c   :  { %5564 = vst [vmem:[#allocation8 + $0xd8] sm:$0xff] %v5532_v58 }
 0x67d   :  { %5565 = vst [vmem:[#allocation8 + $0xe0] sm:$0xff] %v5533_v54 }
 0x67e   :  { %5566 = vst [vmem:[#allocation8 + $0xe8] sm:$0xff] %v5534_v28 }
 0x67f   :  { %5567 = vst [vmem:[#allocation8 + $0xf0] sm:$0xff] %v5535_v46 }
 0x680   :  { %5568 = vst [vmem:[#allocation8 + $0xf8] sm:$0xff] %v5536_v50 }
 0x681   :  { %5581 = dma.vmem_to_hbm [thread:$0]  %s5574_s29, 4096, %s5576_s5, [#allocation4], %s6487_s24, %s6487_s24, %s6488_s25  }
 0x682   :  { %6481 = dma.done.wait [#allocation4], 4096  }
 0x683   :  { %6482 = vsyncadd [#allocation4], 4294963200 }
 0x684   :  { %5586 = vsyncpa [#allocation3], 1 }
 0x685   :  { %5587 = vsyncpa [#allocation6], 1 }
 0x686   :  { %5588 = vsyncpa [#allocation4], 1 }

</bundles_post_ra>
